<compile_context>
chip_gen: v6e
topology: v6e:2x2x1
jax: 0.10.0
libtpu: 0.0.40
codegen_flags: <defaults>
</compile_context>

<pallas_src>
import functools

import jax
import jax.numpy as jnp
from jax.experimental import pallas as pl
from jax.experimental.pallas import tpu as pltpu


# ----------------------------------------------------------------------------- kernel
def _rec_kernel(params_ref, pts_ref, assign_ref, out_ref, *, num_cuboids):
    """REC partial sums for one (batch b, point-block n) grid step.

    params_ref : SMEM (B, M*15) f32   per cuboid: [mu0..2 | s0..2 | R^T row-major (9)]
    pts_ref    : VMEM (1, 7, TR, 128) channels: [pc_x, pc_y, pc_z, n_x, n_y, n_z, noise]
    assign_ref : VMEM (1, M, TR, 128)
    out_ref    : VMEM (1, 8, 128)     resident accumulator over the point-block axis
    """
    b = pl.program_id(0)
    n = pl.program_id(1)

    @pl.when(n == 0)
    def _init():
        out_ref[...] = jnp.zeros_like(out_ref)

    pc0 = pts_ref[0, 0]      # (TR, 128)
    pc1 = pts_ref[0, 1]
    pc2 = pts_ref[0, 2]
    nw0 = pts_ref[0, 3]
    nw1 = pts_ref[0, 4]
    nw2 = pts_ref[0, 5]
    noise = pts_ref[0, 6]

    tr = pc0.shape[0]
    acc = jnp.zeros((tr, 128), jnp.float32)

    # NOTE: M is small (<= ~16) -> a static Python loop keeps everything in vregs.
    # TODO(synk): switch to lax.fori_loop(..., unroll=2) if num_cuboids grows large.
    for m in range(num_cuboids):
        base = m * 15
        mu0 = params_ref[b, base + 0]
        mu1 = params_ref[b, base + 1]
        mu2 = params_ref[b, base + 2]
        s0 = params_ref[b, base + 3]
        s1 = params_ref[b, base + 4]
        s2 = params_ref[b, base + 5]
        r00 = params_ref[b, base + 6]    # (R^T)[0, :]
        r01 = params_ref[b, base + 7]
        r02 = params_ref[b, base + 8]
        r10 = params_ref[b, base + 9]    # (R^T)[1, :]
        r11 = params_ref[b, base + 10]
        r12 = params_ref[b, base + 11]
        r20 = params_ref[b, base + 12]   # (R^T)[2, :]
        r21 = params_ref[b, base + 13]
        r22 = params_ref[b, base + 14]

        e0 = pc0 - mu0
        e1 = pc1 - mu1
        e2 = pc2 - mu2
        # clean point in the cuboid frame:  y = R^T (pc - mu)
        y0 = r00 * e0 + r01 * e1 + r02 * e2
        y1 = r10 * e0 + r11 * e1 + r12 * e2
        y2 = r20 * e0 + r21 * e1 + r22 * e2
        # rotated normal:  nr = R^T n
        nr0 = r00 * nw0 + r01 * nw1 + r02 * nw2
        nr1 = r10 * nw0 + r11 * nw1 + r12 * nw2
        nr2 = r20 * nw0 + r21 * nw1 + r22 * nw2
        # noised sample point in the cuboid frame (rotation is linear):
        #   x = R^T (pc + noise*n - mu) = y + noise * nr
        x0 = y0 + noise * nr0
        x1 = y1 + noise * nr1
        x2 = y2 + noise * nr2

        # Face selection == first-wins argmax over [-nr0, nr0, -nr1, nr1, -nr2, nr2]:
        # axis with the largest |nr_k| (earlier axis wins ties); positive face iff
        # nr_k > 0 (nr_k == 0 resolves to the negative face, as in the reference).
        a0 = jnp.abs(nr0)
        a1 = jnp.abs(nr1)
        a2 = jnp.abs(nr2)
        use1 = a1 > a0
        best01 = jnp.where(use1, a1, a0)
        use2 = a2 > best01
        not2 = jnp.logical_not(use2)
        sel0 = jnp.logical_and(jnp.logical_not(use1), not2)
        sel1 = jnp.logical_and(use1, not2)
        sel2 = use2

        face0 = jnp.where(nr0 > 0.0, s0, -s0)
        face1 = jnp.where(nr1 > 0.0, s1, -s1)
        face2 = jnp.where(nr2 > 0.0, s2, -s2)

        # project onto the chosen face; clamp free coordinates to the box  max(min(p, s), -s)
        p0 = jnp.where(sel0, face0, jnp.maximum(jnp.minimum(x0, s0), -s0))
        p1 = jnp.where(sel1, face1, jnp.maximum(jnp.minimum(x1, s1), -s1))
        p2 = jnp.where(sel2, face2, jnp.maximum(jnp.minimum(x2, s2), -s2))

        d = (p0 - y0) ** 2 + (p1 - y1) ** 2 + (p2 - y2) ** 2
        acc = acc + d * assign_ref[0, m]

    # fold TR sublane rows down to 8 (pure VPU adds), accumulate into the resident tile
    part = acc[0:8, :]
    for g in range(1, tr // 8):
        part = part + acc[8 * g:8 * (g + 1), :]
    out_ref[0] = out_ref[0] + part


# --------------------------------------------------------------------------- wrapper
@functools.partial(jax.jit, static_argnames=("sublanes_per_block",))
def compute_REC_pallas(pc, normals, randn_dis, pc_assign_mean, rotate, scale,
                       assign_matrix, *, sublanes_per_block=16):
    B, N, _ = pc.shape
    M = scale.shape[1]
    f32 = jnp.float32

    # sublane-dense tiling of the point axis: point p -> (row = p // 128, lane = p % 128)
    nb_needed = -(-N // 128)
    tr = min(sublanes_per_block, ((nb_needed + 7) // 8) * 8)
    tr = max(8, (tr // 8) * 8)                       # multiple of 8 sublanes
    tile_pts = tr * 128                              # points per grid step
    n_pad = -(-N // tile_pts) * tile_pts
    pad = n_pad - N

    pcT = jnp.transpose(pc.astype(f32), (0, 2, 1))                 # (B, 3, N)
    nrmT = jnp.transpose(normals.astype(f32), (0, 2, 1))           # (B, 3, N)
    noise = randn_dis.astype(f32).reshape(B, 1, N)                 # (B, 1, N)
    pts = jnp.concatenate([pcT, nrmT, noise], axis=1)              # (B, 7, N) single stream
    assignT = jnp.transpose(assign_matrix.astype(f32), (0, 2, 1))  # (B, M, N)
    if pad:
        # padded points carry zero assign weight -> contribute nothing to the sum
        pts = jnp.pad(pts, ((0, 0), (0, 0), (0, pad)))
        assignT = jnp.pad(assignT, ((0, 0), (0, 0), (0, pad)))

    nb = n_pad // 128
    pts = pts.reshape(B, 7, nb, 128)
    assignT = assignT.reshape(B, M, nb, 128)

    # per-cuboid parameters -> SMEM via scalar prefetch: [mean(3) | scale(3) | R^T(9)]
    rt = jnp.transpose(rotate.astype(f32), (0, 1, 3, 2)).reshape(B, M, 9)   # (R^T) rows
    params = jnp.concatenate(
        [pc_assign_mean.astype(f32), scale.astype(f32), rt], axis=-1).reshape(B, M * 15)

    grid = (B, nb // tr)
    out = pl.pallas_call(
        functools.partial(_rec_kernel, num_cuboids=M),
        out_shape=jax.ShapeDtypeStruct((B, 8, 128), jnp.float32),
        grid_spec=pltpu.PrefetchScalarGridSpec(
            num_scalar_prefetch=1,
            grid=grid,
            in_specs=[
                pl.BlockSpec((1, 7, tr, 128), lambda b, n, prm: (b, 0, n, 0)),
                pl.BlockSpec((1, M, tr, 128), lambda b, n, prm: (b, 0, n, 0)),
            ],
            out_specs=pl.BlockSpec((1, 8, 128), lambda b, n, prm: (b, 0, 0)),
        ),
        compiler_params=pltpu.CompilerParams(
            dimension_semantics=("parallel", "arbitrary")),
    )(params, pts, assignT)

    # REC = mean over batch of mean over points of (sum over cuboids)  ==  global sum / (B*N)
    return jnp.sum(out) / (B * N)


# ------------------------------------------------------------ pure-JAX REC (self-check)
def compute_REC_reference(pc, normals, randn_dis, pc_assign_mean, rotate, scale,
                          assign_matrix):
    """Straightforward JAX port of loss_whole.compute_REC, used only to validate the kernel."""
    pc_sample = pc + randn_dis[..., None] * normals
    rt = jnp.transpose(rotate, (0, 1, 3, 2))                        # R^T  (B, M, 3, 3)

    def to_cuboid_frame(x):                                         # (B, N, 3) -> (B, M, N, 3)
        d = x[:, None, :, :] - pc_assign_mean[:, :, None, :]
        return jnp.einsum('bmij,bmnj->bmni', rt, d)

    pcs_inv = to_cuboid_frame(pc_sample)
    pc_inv = to_cuboid_frame(pc)
    nrm_inv = jnp.einsum('bmij,bnj->bmni', rt, normals)

    cube_normal = jnp.array([[-1, 0, 0], [1, 0, 0], [0, -1, 0],
                             [0, 1, 0], [0, 0, -1], [0, 0, 1]], jnp.float32)
    # cosine-similarity argmax == dot-product argmax (same denominator for all 6 faces)
    sims = jnp.einsum('bmni,fi->bmnf', nrm_inv, cube_normal)
    idx = jnp.argmax(sims, axis=-1)                                 # (B, M, N)
    axis = idx // 2
    sgn = (idx % 2).astype(jnp.float32) * 2.0 - 1.0

    s = scale[:, :, None, :]                                        # (B, M, 1, 3)
    onehot = jax.nn.one_hot(axis, 3, dtype=jnp.float32)             # (B, M, N, 3)
    pval = sgn[..., None] * jnp.sum(onehot * s, -1, keepdims=True)
    proj = pcs_inv * (1.0 - onehot) + onehot * pval
    proj = jnp.maximum(jnp.minimum(proj, s), -s)
    d = jnp.sum((proj - pc_inv) ** 2, axis=-1)                      # (B, M, N)
    w = jnp.transpose(assign_matrix, (0, 2, 1))                     # (B, M, N)
    return jnp.mean(jnp.sum(d * w, axis=1))


# ------------------------------------------------------------------ small JAX losses
def compute_SPS(assign_matrix):
    num_points = assign_matrix.shape[1]
    norm_05 = jnp.sqrt(assign_matrix.sum(axis=1) / num_points + 0.01)   # (B, M)
    norm_05 = jnp.mean(norm_05, axis=1) ** 2                            # (B,)
    return jnp.mean(norm_05)


def compute_EXT(assign_matrix, exist):
    thred = 24.0
    gt = (assign_matrix.sum(axis=1) > thred).astype(jnp.float32)        # (B, M)
    x = jnp.squeeze(exist, axis=-1)                                     # (B, M)
    # BCEWithLogitsLoss (mean reduction), numerically stable form
    bce = jnp.maximum(x, 0.0) - x * gt + jnp.log1p(jnp.exp(-jnp.abs(x)))
    return jnp.mean(bce)


def compute_KLD(mu, log_var):
    return jnp.mean(-0.5 * jnp.sum(1.0 + log_var - mu ** 2 - jnp.exp(log_var), axis=1))


def compute_CST(pc_assign_mean, trans):
    diff = jnp.sqrt(jnp.sum((pc_assign_mean - trans) ** 2, axis=-1))    # (B, M)
    return jnp.mean(diff)


# -------------------------------------------------------------------------- forward
def loss_whole_forward(pc, normals, out_dict_1, out_dict_2, hypara, noise_key):
    """Forward pass of loss_whole.  Returns (loss_ins, loss_dict).

    All loss terms stay on-device; a single jax.device_get at the end converts the
    logging dict to Python floats (one host sync instead of one per term).
    """
    W = hypara['W']
    B = out_dict_1['scale'].shape[0]
    N = pc.shape[1]

    loss_ins = jnp.zeros((1,), jnp.float32)
    dev = {}                         # device-side scalars for the logging dict
    REC = None
    SPS = None

    if (not W['W_euclidean_dual_loss']) and W['W_REC'] != 0:
        # torch.randn noise -> deterministic jax.random noise
        randn_dis = jax.random.normal(noise_key, (B, N), jnp.float32) * W['W_std']
        REC = compute_REC_pallas(pc, normals, randn_dis,
                                 out_dict_1['pc_assign_mean'],
                                 out_dict_1['rotate'],
                                 out_dict_1['scale'],
                                 out_dict_1['assign_matrix'])
        loss_ins = loss_ins + REC * W['W_REC']
        dev['REC'] = REC

    if W['W_SPS'] != 0:
        SPS = compute_SPS(out_dict_1['assign_matrix'])
        loss_ins = loss_ins + SPS * W['W_SPS']
        dev['SPS'] = SPS

    if W['W_EXT'] != 0:
        EXT = compute_EXT(out_dict_1['assign_matrix'], out_dict_1['exist'])
        loss_ins = loss_ins + EXT * W['W_EXT']
        dev['EXT'] = EXT

    if W['W_KLD'] != 0:
        KLD = compute_KLD(out_dict_1['mu'], out_dict_1['log_var'])
        loss_ins = loss_ins + KLD * W['W_KLD']
        dev['KLD'] = KLD

    if W['W_CST'] != 0:
        CST = compute_CST(out_dict_1['pc_assign_mean'], out_dict_1['trans'])
        loss_ins = loss_ins + CST * W['W_CST']
        dev['CST'] = CST

    dev['ALL'] = loss_ins[0]
    rec_term = REC if REC is not None else 0.0
    if W['W_SPS'] != 0:
        dev['eval'] = rec_term * W['W_REC'] + SPS * W['W_SPS']
    elif REC is not None:
        dev['eval'] = REC * W['W_REC']

    if out_dict_1['mu'] is not None:
        dev['mu'] = jnp.mean(out_dict_1['mu'])
        dev['var'] = jnp.mean(jnp.exp(out_dict_1['log_var']))

    host = jax.device_get(dev)       # single device -> host transfer for all logged scalars
    loss_dict = {'REC': 0, 'eval': 0.0, 'mu': 0.0, 'var': 0.0}
    loss_dict.update({k: float(v) for k, v in host.items()})
    return loss_ins, loss_dict


# ------------------------------------------------------------------------------ main
if __name__ == "__main__":
    key = jax.random.PRNGKey(0)
    ks = jax.random.split(key, 12)

    B, N, M, LAT = 2, 4096, 8, 32

    pc = jax.random.normal(ks[0], (B, N, 3), jnp.float32)
    nrm_raw = jax.random.normal(ks[1], (B, N, 3), jnp.float32)
    normals = nrm_raw / (jnp.linalg.norm(nrm_raw, axis=-1, keepdims=True) + 1e-8)

    scale = jax.random.uniform(ks[2], (B, M, 3), jnp.float32, minval=0.2, maxval=1.0)
    ang = jax.random.uniform(ks[3], (B, M), jnp.float32, minval=0.0, maxval=2.0 * jnp.pi)
    c, s = jnp.cos(ang), jnp.sin(ang)
    z, o = jnp.zeros_like(c), jnp.ones_like(c)
    rotate = jnp.stack([jnp.stack([c, -s, z], -1),
                        jnp.stack([s, c, z], -1),
                        jnp.stack([z, z, o], -1)], -2)          # (B, M, 3, 3)

    pc_assign_mean = jax.random.normal(ks[4], (B, M, 3), jnp.float32) * 0.5
    assign_matrix = jax.nn.softmax(jax.random.normal(ks[5], (B, N, M), jnp.float32), axis=-1)
    exist = jax.random.normal(ks[6], (B, M, 1), jnp.float32)
    mu = jax.random.normal(ks[7], (B, LAT), jnp.float32) * 0.1
    log_var = jax.random.normal(ks[8], (B, LAT), jnp.float32) * 0.1
    trans = jax.random.normal(ks[9], (B, M, 3), jnp.float32) * 0.5

    out_dict_1 = {
        'scale': scale, 'rotate': rotate, 'pc_assign_mean': pc_assign_mean,
        'assign_matrix': assign_matrix, 'exist': exist,
        'mu': mu, 'log_var': log_var, 'trans': trans,
    }
    out_dict_2 = None  # unused by the reference forward

    hypara = {'W': {
        'W_std': 0.01, 'W_REC': 1.0, 'W_SPS': 0.1, 'W_EXT': 0.01,
        'W_KLD': 0.001, 'W_CST': 0.1, 'W_euclidean_dual_loss': False,
    }}

    # self-check the Pallas REC term against a plain-JAX port of the torch reference
    randn_dis = jax.random.normal(ks[10], (B, N), jnp.float32) * hypara['W']['W_std']
    rec_kernel = float(compute_REC_pallas(pc, normals, randn_dis, pc_assign_mean,
                                          rotate, scale, assign_matrix))
    rec_ref = float(compute_REC_reference(pc, normals, randn_dis, pc_assign_mean,
                                          rotate, scale, assign_matrix))
    assert abs(rec_kernel - rec_ref) <= 5e-3 * max(1.0, abs(rec_ref)), \
        f"REC mismatch: pallas={rec_kernel} ref={rec_ref}"

    loss_ins, loss_dict = loss_whole_forward(pc, normals, out_dict_1, out_dict_2,
                                             hypara, noise_key=ks[10])
    jax.block_until_ready(loss_ins)
    print("KERNEL_OK")
</pallas_src>

<mosaic_0001>
module attributes {stable_mosaic.version = 11 : i64} {
  func.func @_rec_kernel(%arg0: i32, %arg1: i32, %arg2: memref<2x120xf32, #tpu.memory_space<smem>>, %arg3: memref<1x7x16x128xf32, #tpu.memory_space<vmem>>, %arg4: memref<1x8x16x128xf32, #tpu.memory_space<vmem>>, %arg5: memref<1x8x128xf32, #tpu.memory_space<vmem>>) attributes {dimension_semantics = [#tpu.dimension_semantics<parallel>, #tpu.dimension_semantics<arbitrary>], iteration_bounds = array<i64: 2, 2>, scalar_prefetch = 1 : i64, scratch_operands = 0 : i64, tpu.core_type = #tpu.core_type<tc>, window_params = [{transform_indices = @transform_0, window_bounds = array<i64: 1, 7, 16, 128>}, {transform_indices = @transform_1, window_bounds = array<i64: 1, 8, 16, 128>}, {transform_indices = @transform_2, window_bounds = array<i64: 1, 8, 128>}]} {
    %c0_i32 = arith.constant 0 : i32
    %0 = arith.cmpi eq, %arg1, %c0_i32 : i32
    %1 = arith.extui %0 : i1 to i32
    %c0_i32_0 = arith.constant 0 : i32
    %2 = arith.cmpi ne, %1, %c0_i32_0 : i32
    scf.if %2 {
      %cst_155 = arith.constant 0.000000e+00 : f32
      %1211 = vector.broadcast %cst_155 : f32 to vector<1x8x128xf32>
      %c0_156 = arith.constant 0 : index
      %c0_157 = arith.constant 0 : index
      %c0_158 = arith.constant 0 : index
      %1212 = vector.load %arg5[%c0_156, %c0_157, %c0_158] : memref<1x8x128xf32, #tpu.memory_space<vmem>>, vector<1x8x128xf32>
      tpu.vector_store %arg5[%c0_156, %c0_157, %c0_158], %1211 {strides = array<i32>} : memref<1x8x128xf32, #tpu.memory_space<vmem>>, vector<1x8x128xf32>,
    } else {
    }
    %c0 = arith.constant 0 : index
    %c0_1 = arith.constant 0 : index
    %c0_2 = arith.constant 0 : index
    %c0_3 = arith.constant 0 : index
    %3 = vector.load %arg3[%c0, %c0_1, %c0_2, %c0_3] : memref<1x7x16x128xf32, #tpu.memory_space<vmem>>, vector<1x1x16x128xf32>
    %4 = vector.shape_cast %3 : vector<1x1x16x128xf32> to vector<16x128xf32>
    %c0_4 = arith.constant 0 : index
    %c1 = arith.constant 1 : index
    %c0_5 = arith.constant 0 : index
    %c0_6 = arith.constant 0 : index
    %5 = vector.load %arg3[%c0_4, %c1, %c0_5, %c0_6] : memref<1x7x16x128xf32, #tpu.memory_space<vmem>>, vector<1x1x16x128xf32>
    %6 = vector.shape_cast %5 : vector<1x1x16x128xf32> to vector<16x128xf32>
    %c0_7 = arith.constant 0 : index
    %c2 = arith.constant 2 : index
    %c0_8 = arith.constant 0 : index
    %c0_9 = arith.constant 0 : index
    %7 = vector.load %arg3[%c0_7, %c2, %c0_8, %c0_9] : memref<1x7x16x128xf32, #tpu.memory_space<vmem>>, vector<1x1x16x128xf32>
    %8 = vector.shape_cast %7 : vector<1x1x16x128xf32> to vector<16x128xf32>
    %c0_10 = arith.constant 0 : index
    %c3 = arith.constant 3 : index
    %c0_11 = arith.constant 0 : index
    %c0_12 = arith.constant 0 : index
    %9 = vector.load %arg3[%c0_10, %c3, %c0_11, %c0_12] : memref<1x7x16x128xf32, #tpu.memory_space<vmem>>, vector<1x1x16x128xf32>
    %10 = vector.shape_cast %9 : vector<1x1x16x128xf32> to vector<16x128xf32>
    %c0_13 = arith.constant 0 : index
    %c4 = arith.constant 4 : index
    %c0_14 = arith.constant 0 : index
    %c0_15 = arith.constant 0 : index
    %11 = vector.load %arg3[%c0_13, %c4, %c0_14, %c0_15] : memref<1x7x16x128xf32, #tpu.memory_space<vmem>>, vector<1x1x16x128xf32>
    %12 = vector.shape_cast %11 : vector<1x1x16x128xf32> to vector<16x128xf32>
    %c0_16 = arith.constant 0 : index
    %c5 = arith.constant 5 : index
    %c0_17 = arith.constant 0 : index
    %c0_18 = arith.constant 0 : index
    %13 = vector.load %arg3[%c0_16, %c5, %c0_17, %c0_18] : memref<1x7x16x128xf32, #tpu.memory_space<vmem>>, vector<1x1x16x128xf32>
    %14 = vector.shape_cast %13 : vector<1x1x16x128xf32> to vector<16x128xf32>
    %c0_19 = arith.constant 0 : index
    %c6 = arith.constant 6 : index
    %c0_20 = arith.constant 0 : index
    %c0_21 = arith.constant 0 : index
    %15 = vector.load %arg3[%c0_19, %c6, %c0_20, %c0_21] : memref<1x7x16x128xf32, #tpu.memory_space<vmem>>, vector<1x1x16x128xf32>
    %16 = vector.shape_cast %15 : vector<1x1x16x128xf32> to vector<16x128xf32>
    %cst = arith.constant 0.000000e+00 : f32
    %17 = vector.broadcast %cst : f32 to vector<16x128xf32>
    %18 = arith.index_cast %arg0 : i32 to index
    %c0_22 = arith.constant 0 : index
    %19 = memref.load %arg2[%18, %c0_22] : memref<2x120xf32, #tpu.memory_space<smem>>
    %20 = arith.index_cast %arg0 : i32 to index
    %c1_23 = arith.constant 1 : index
    %21 = memref.load %arg2[%20, %c1_23] : memref<2x120xf32, #tpu.memory_space<smem>>
    %22 = arith.index_cast %arg0 : i32 to index
    %c2_24 = arith.constant 2 : index
    %23 = memref.load %arg2[%22, %c2_24] : memref<2x120xf32, #tpu.memory_space<smem>>
    %24 = arith.index_cast %arg0 : i32 to index
    %c3_25 = arith.constant 3 : index
    %25 = memref.load %arg2[%24, %c3_25] : memref<2x120xf32, #tpu.memory_space<smem>>
    %26 = arith.index_cast %arg0 : i32 to index
    %c4_26 = arith.constant 4 : index
    %27 = memref.load %arg2[%26, %c4_26] : memref<2x120xf32, #tpu.memory_space<smem>>
    %28 = arith.index_cast %arg0 : i32 to index
    %c5_27 = arith.constant 5 : index
    %29 = memref.load %arg2[%28, %c5_27] : memref<2x120xf32, #tpu.memory_space<smem>>
    %30 = arith.index_cast %arg0 : i32 to index
    %c6_28 = arith.constant 6 : index
    %31 = memref.load %arg2[%30, %c6_28] : memref<2x120xf32, #tpu.memory_space<smem>>
    %32 = arith.index_cast %arg0 : i32 to index
    %c7 = arith.constant 7 : index
    %33 = memref.load %arg2[%32, %c7] : memref<2x120xf32, #tpu.memory_space<smem>>
    %34 = arith.index_cast %arg0 : i32 to index
    %c8 = arith.constant 8 : index
    %35 = memref.load %arg2[%34, %c8] : memref<2x120xf32, #tpu.memory_space<smem>>
    %36 = arith.index_cast %arg0 : i32 to index
    %c9 = arith.constant 9 : index
    %37 = memref.load %arg2[%36, %c9] : memref<2x120xf32, #tpu.memory_space<smem>>
    %38 = arith.index_cast %arg0 : i32 to index
    %c10 = arith.constant 10 : index
    %39 = memref.load %arg2[%38, %c10] : memref<2x120xf32, #tpu.memory_space<smem>>
    %40 = arith.index_cast %arg0 : i32 to index
    %c11 = arith.constant 11 : index
    %41 = memref.load %arg2[%40, %c11] : memref<2x120xf32, #tpu.memory_space<smem>>
    %42 = arith.index_cast %arg0 : i32 to index
    %c12 = arith.constant 12 : index
    %43 = memref.load %arg2[%42, %c12] : memref<2x120xf32, #tpu.memory_space<smem>>
    %44 = arith.index_cast %arg0 : i32 to index
    %c13 = arith.constant 13 : index
    %45 = memref.load %arg2[%44, %c13] : memref<2x120xf32, #tpu.memory_space<smem>>
    %46 = arith.index_cast %arg0 : i32 to index
    %c14 = arith.constant 14 : index
    %47 = memref.load %arg2[%46, %c14] : memref<2x120xf32, #tpu.memory_space<smem>>
    %48 = vector.broadcast %19 : f32 to vector<16x128xf32>
    %49 = arith.subf %4, %48 : vector<16x128xf32>
    %50 = vector.broadcast %21 : f32 to vector<16x128xf32>
    %51 = arith.subf %6, %50 : vector<16x128xf32>
    %52 = vector.broadcast %23 : f32 to vector<16x128xf32>
    %53 = arith.subf %8, %52 : vector<16x128xf32>
    %54 = vector.broadcast %31 : f32 to vector<16x128xf32>
    %55 = arith.mulf %54, %49 : vector<16x128xf32>
    %56 = vector.broadcast %33 : f32 to vector<16x128xf32>
    %57 = arith.mulf %56, %51 : vector<16x128xf32>
    %58 = arith.addf %55, %57 : vector<16x128xf32>
    %59 = vector.broadcast %35 : f32 to vector<16x128xf32>
    %60 = arith.mulf %59, %53 : vector<16x128xf32>
    %61 = arith.addf %58, %60 : vector<16x128xf32>
    %62 = vector.broadcast %37 : f32 to vector<16x128xf32>
    %63 = arith.mulf %62, %49 : vector<16x128xf32>
    %64 = vector.broadcast %39 : f32 to vector<16x128xf32>
    %65 = arith.mulf %64, %51 : vector<16x128xf32>
    %66 = arith.addf %63, %65 : vector<16x128xf32>
    %67 = vector.broadcast %41 : f32 to vector<16x128xf32>
    %68 = arith.mulf %67, %53 : vector<16x128xf32>
    %69 = arith.addf %66, %68 : vector<16x128xf32>
    %70 = vector.broadcast %43 : f32 to vector<16x128xf32>
    %71 = arith.mulf %70, %49 : vector<16x128xf32>
    %72 = vector.broadcast %45 : f32 to vector<16x128xf32>
    %73 = arith.mulf %72, %51 : vector<16x128xf32>
    %74 = arith.addf %71, %73 : vector<16x128xf32>
    %75 = vector.broadcast %47 : f32 to vector<16x128xf32>
    %76 = arith.mulf %75, %53 : vector<16x128xf32>
    %77 = arith.addf %74, %76 : vector<16x128xf32>
    %78 = vector.broadcast %31 : f32 to vector<16x128xf32>
    %79 = arith.mulf %78, %10 : vector<16x128xf32>
    %80 = vector.broadcast %33 : f32 to vector<16x128xf32>
    %81 = arith.mulf %80, %12 : vector<16x128xf32>
    %82 = arith.addf %79, %81 : vector<16x128xf32>
    %83 = vector.broadcast %35 : f32 to vector<16x128xf32>
    %84 = arith.mulf %83, %14 : vector<16x128xf32>
    %85 = arith.addf %82, %84 : vector<16x128xf32>
    %86 = vector.broadcast %37 : f32 to vector<16x128xf32>
    %87 = arith.mulf %86, %10 : vector<16x128xf32>
    %88 = vector.broadcast %39 : f32 to vector<16x128xf32>
    %89 = arith.mulf %88, %12 : vector<16x128xf32>
    %90 = arith.addf %87, %89 : vector<16x128xf32>
    %91 = vector.broadcast %41 : f32 to vector<16x128xf32>
    %92 = arith.mulf %91, %14 : vector<16x128xf32>
    %93 = arith.addf %90, %92 : vector<16x128xf32>
    %94 = vector.broadcast %43 : f32 to vector<16x128xf32>
    %95 = arith.mulf %94, %10 : vector<16x128xf32>
    %96 = vector.broadcast %45 : f32 to vector<16x128xf32>
    %97 = arith.mulf %96, %12 : vector<16x128xf32>
    %98 = arith.addf %95, %97 : vector<16x128xf32>
    %99 = vector.broadcast %47 : f32 to vector<16x128xf32>
    %100 = arith.mulf %99, %14 : vector<16x128xf32>
    %101 = arith.addf %98, %100 : vector<16x128xf32>
    %102 = arith.mulf %16, %85 : vector<16x128xf32>
    %103 = arith.addf %61, %102 : vector<16x128xf32>
    %104 = arith.mulf %16, %93 : vector<16x128xf32>
    %105 = arith.addf %69, %104 : vector<16x128xf32>
    %106 = arith.mulf %16, %101 : vector<16x128xf32>
    %107 = arith.addf %77, %106 : vector<16x128xf32>
    %108 = math.absf %85 : vector<16x128xf32>
    %109 = math.absf %93 : vector<16x128xf32>
    %110 = math.absf %101 : vector<16x128xf32>
    %111 = arith.cmpf ogt, %109, %108 : vector<16x128xf32>
    %112 = arith.select %111, %109, %108 : vector<16x128xi1>, vector<16x128xf32>
    %113 = arith.cmpf ogt, %110, %112 : vector<16x128xf32>
    %cst_29 = arith.constant dense<true> : vector<16x128xi1>
    %114 = arith.xori %113, %cst_29 : vector<16x128xi1>
    %cst_30 = arith.constant dense<true> : vector<16x128xi1>
    %115 = arith.xori %111, %cst_30 : vector<16x128xi1>
    %116 = arith.andi %115, %114 : vector<16x128xi1>
    %117 = arith.andi %111, %114 : vector<16x128xi1>
    %cst_31 = arith.constant 0.000000e+00 : f32
    %118 = vector.broadcast %cst_31 : f32 to vector<16x128xf32>
    %119 = arith.cmpf ogt, %85, %118 : vector<16x128xf32>
    %cst_32 = arith.constant 0.000000e+00 : f32
    %120 = arith.subf %cst_32, %25 : f32
    %121 = vector.broadcast %25 : f32 to vector<16x128xf32>
    %122 = vector.broadcast %120 : f32 to vector<16x128xf32>
    %123 = arith.select %119, %121, %122 : vector<16x128xi1>, vector<16x128xf32>
    %cst_33 = arith.constant 0.000000e+00 : f32
    %124 = vector.broadcast %cst_33 : f32 to vector<16x128xf32>
    %125 = arith.cmpf ogt, %93, %124 : vector<16x128xf32>
    %cst_34 = arith.constant 0.000000e+00 : f32
    %126 = arith.subf %cst_34, %27 : f32
    %127 = vector.broadcast %27 : f32 to vector<16x128xf32>
    %128 = vector.broadcast %126 : f32 to vector<16x128xf32>
    %129 = arith.select %125, %127, %128 : vector<16x128xi1>, vector<16x128xf32>
    %cst_35 = arith.constant 0.000000e+00 : f32
    %130 = vector.broadcast %cst_35 : f32 to vector<16x128xf32>
    %131 = arith.cmpf ogt, %101, %130 : vector<16x128xf32>
    %cst_36 = arith.constant 0.000000e+00 : f32
    %132 = arith.subf %cst_36, %29 : f32
    %133 = vector.broadcast %29 : f32 to vector<16x128xf32>
    %134 = vector.broadcast %132 : f32 to vector<16x128xf32>
    %135 = arith.select %131, %133, %134 : vector<16x128xi1>, vector<16x128xf32>
    %136 = vector.broadcast %25 : f32 to vector<16x128xf32>
    %137 = arith.minimumf %103, %136 : vector<16x128xf32>
    %cst_37 = arith.constant 0.000000e+00 : f32
    %138 = arith.subf %cst_37, %25 : f32
    %139 = vector.broadcast %138 : f32 to vector<16x128xf32>
    %140 = arith.maximumf %137, %139 : vector<16x128xf32>
    %141 = arith.select %116, %123, %140 : vector<16x128xi1>, vector<16x128xf32>
    %142 = vector.broadcast %27 : f32 to vector<16x128xf32>
    %143 = arith.minimumf %105, %142 : vector<16x128xf32>
    %cst_38 = arith.constant 0.000000e+00 : f32
    %144 = arith.subf %cst_38, %27 : f32
    %145 = vector.broadcast %144 : f32 to vector<16x128xf32>
    %146 = arith.maximumf %143, %145 : vector<16x128xf32>
    %147 = arith.select %117, %129, %146 : vector<16x128xi1>, vector<16x128xf32>
    %148 = vector.broadcast %29 : f32 to vector<16x128xf32>
    %149 = arith.minimumf %107, %148 : vector<16x128xf32>
    %cst_39 = arith.constant 0.000000e+00 : f32
    %150 = arith.subf %cst_39, %29 : f32
    %151 = vector.broadcast %150 : f32 to vector<16x128xf32>
    %152 = arith.maximumf %149, %151 : vector<16x128xf32>
    %153 = arith.select %113, %135, %152 : vector<16x128xi1>, vector<16x128xf32>
    %154 = arith.subf %141, %61 : vector<16x128xf32>
    %155 = arith.mulf %154, %154 : vector<16x128xf32>
    %156 = arith.subf %147, %69 : vector<16x128xf32>
    %157 = arith.mulf %156, %156 : vector<16x128xf32>
    %158 = arith.addf %155, %157 : vector<16x128xf32>
    %159 = arith.subf %153, %77 : vector<16x128xf32>
    %160 = arith.mulf %159, %159 : vector<16x128xf32>
    %161 = arith.addf %158, %160 : vector<16x128xf32>
    %c0_40 = arith.constant 0 : index
    %c0_41 = arith.constant 0 : index
    %c0_42 = arith.constant 0 : index
    %c0_43 = arith.constant 0 : index
    %162 = vector.load %arg4[%c0_40, %c0_41, %c0_42, %c0_43] : memref<1x8x16x128xf32, #tpu.memory_space<vmem>>, vector<1x1x16x128xf32>
    %163 = vector.shape_cast %162 : vector<1x1x16x128xf32> to vector<16x128xf32>
    %164 = arith.mulf %161, %163 : vector<16x128xf32>
    %165 = arith.addf %17, %164 : vector<16x128xf32>
    %166 = arith.index_cast %arg0 : i32 to index
    %c15 = arith.constant 15 : index
    %167 = memref.load %arg2[%166, %c15] : memref<2x120xf32, #tpu.memory_space<smem>>
    %168 = arith.index_cast %arg0 : i32 to index
    %c16 = arith.constant 16 : index
    %169 = memref.load %arg2[%168, %c16] : memref<2x120xf32, #tpu.memory_space<smem>>
    %170 = arith.index_cast %arg0 : i32 to index
    %c17 = arith.constant 17 : index
    %171 = memref.load %arg2[%170, %c17] : memref<2x120xf32, #tpu.memory_space<smem>>
    %172 = arith.index_cast %arg0 : i32 to index
    %c18 = arith.constant 18 : index
    %173 = memref.load %arg2[%172, %c18] : memref<2x120xf32, #tpu.memory_space<smem>>
    %174 = arith.index_cast %arg0 : i32 to index
    %c19 = arith.constant 19 : index
    %175 = memref.load %arg2[%174, %c19] : memref<2x120xf32, #tpu.memory_space<smem>>
    %176 = arith.index_cast %arg0 : i32 to index
    %c20 = arith.constant 20 : index
    %177 = memref.load %arg2[%176, %c20] : memref<2x120xf32, #tpu.memory_space<smem>>
    %178 = arith.index_cast %arg0 : i32 to index
    %c21 = arith.constant 21 : index
    %179 = memref.load %arg2[%178, %c21] : memref<2x120xf32, #tpu.memory_space<smem>>
    %180 = arith.index_cast %arg0 : i32 to index
    %c22 = arith.constant 22 : index
    %181 = memref.load %arg2[%180, %c22] : memref<2x120xf32, #tpu.memory_space<smem>>
    %182 = arith.index_cast %arg0 : i32 to index
    %c23 = arith.constant 23 : index
    %183 = memref.load %arg2[%182, %c23] : memref<2x120xf32, #tpu.memory_space<smem>>
    %184 = arith.index_cast %arg0 : i32 to index
    %c24 = arith.constant 24 : index
    %185 = memref.load %arg2[%184, %c24] : memref<2x120xf32, #tpu.memory_space<smem>>
    %186 = arith.index_cast %arg0 : i32 to index
    %c25 = arith.constant 25 : index
    %187 = memref.load %arg2[%186, %c25] : memref<2x120xf32, #tpu.memory_space<smem>>
    %188 = arith.index_cast %arg0 : i32 to index
    %c26 = arith.constant 26 : index
    %189 = memref.load %arg2[%188, %c26] : memref<2x120xf32, #tpu.memory_space<smem>>
    %190 = arith.index_cast %arg0 : i32 to index
    %c27 = arith.constant 27 : index
    %191 = memref.load %arg2[%190, %c27] : memref<2x120xf32, #tpu.memory_space<smem>>
    %192 = arith.index_cast %arg0 : i32 to index
    %c28 = arith.constant 28 : index
    %193 = memref.load %arg2[%192, %c28] : memref<2x120xf32, #tpu.memory_space<smem>>
    %194 = arith.index_cast %arg0 : i32 to index
    %c29 = arith.constant 29 : index
    %195 = memref.load %arg2[%194, %c29] : memref<2x120xf32, #tpu.memory_space<smem>>
    %196 = vector.broadcast %167 : f32 to vector<16x128xf32>
    %197 = arith.subf %4, %196 : vector<16x128xf32>
    %198 = vector.broadcast %169 : f32 to vector<16x128xf32>
    %199 = arith.subf %6, %198 : vector<16x128xf32>
    %200 = vector.broadcast %171 : f32 to vector<16x128xf32>
    %201 = arith.subf %8, %200 : vector<16x128xf32>
    %202 = vector.broadcast %179 : f32 to vector<16x128xf32>
    %203 = arith.mulf %202, %197 : vector<16x128xf32>
    %204 = vector.broadcast %181 : f32 to vector<16x128xf32>
    %205 = arith.mulf %204, %199 : vector<16x128xf32>
    %206 = arith.addf %203, %205 : vector<16x128xf32>
    %207 = vector.broadcast %183 : f32 to vector<16x128xf32>
    %208 = arith.mulf %207, %201 : vector<16x128xf32>
    %209 = arith.addf %206, %208 : vector<16x128xf32>
    %210 = vector.broadcast %185 : f32 to vector<16x128xf32>
    %211 = arith.mulf %210, %197 : vector<16x128xf32>
    %212 = vector.broadcast %187 : f32 to vector<16x128xf32>
    %213 = arith.mulf %212, %199 : vector<16x128xf32>
    %214 = arith.addf %211, %213 : vector<16x128xf32>
    %215 = vector.broadcast %189 : f32 to vector<16x128xf32>
    %216 = arith.mulf %215, %201 : vector<16x128xf32>
    %217 = arith.addf %214, %216 : vector<16x128xf32>
    %218 = vector.broadcast %191 : f32 to vector<16x128xf32>
    %219 = arith.mulf %218, %197 : vector<16x128xf32>
    %220 = vector.broadcast %193 : f32 to vector<16x128xf32>
    %221 = arith.mulf %220, %199 : vector<16x128xf32>
    %222 = arith.addf %219, %221 : vector<16x128xf32>
    %223 = vector.broadcast %195 : f32 to vector<16x128xf32>
    %224 = arith.mulf %223, %201 : vector<16x128xf32>
    %225 = arith.addf %222, %224 : vector<16x128xf32>
    %226 = vector.broadcast %179 : f32 to vector<16x128xf32>
    %227 = arith.mulf %226, %10 : vector<16x128xf32>
    %228 = vector.broadcast %181 : f32 to vector<16x128xf32>
    %229 = arith.mulf %228, %12 : vector<16x128xf32>
    %230 = arith.addf %227, %229 : vector<16x128xf32>
    %231 = vector.broadcast %183 : f32 to vector<16x128xf32>
    %232 = arith.mulf %231, %14 : vector<16x128xf32>
    %233 = arith.addf %230, %232 : vector<16x128xf32>
    %234 = vector.broadcast %185 : f32 to vector<16x128xf32>
    %235 = arith.mulf %234, %10 : vector<16x128xf32>
    %236 = vector.broadcast %187 : f32 to vector<16x128xf32>
    %237 = arith.mulf %236, %12 : vector<16x128xf32>
    %238 = arith.addf %235, %237 : vector<16x128xf32>
    %239 = vector.broadcast %189 : f32 to vector<16x128xf32>
    %240 = arith.mulf %239, %14 : vector<16x128xf32>
    %241 = arith.addf %238, %240 : vector<16x128xf32>
    %242 = vector.broadcast %191 : f32 to vector<16x128xf32>
    %243 = arith.mulf %242, %10 : vector<16x128xf32>
    %244 = vector.broadcast %193 : f32 to vector<16x128xf32>
    %245 = arith.mulf %244, %12 : vector<16x128xf32>
    %246 = arith.addf %243, %245 : vector<16x128xf32>
    %247 = vector.broadcast %195 : f32 to vector<16x128xf32>
    %248 = arith.mulf %247, %14 : vector<16x128xf32>
    %249 = arith.addf %246, %248 : vector<16x128xf32>
    %250 = arith.mulf %16, %233 : vector<16x128xf32>
    %251 = arith.addf %209, %250 : vector<16x128xf32>
    %252 = arith.mulf %16, %241 : vector<16x128xf32>
    %253 = arith.addf %217, %252 : vector<16x128xf32>
    %254 = arith.mulf %16, %249 : vector<16x128xf32>
    %255 = arith.addf %225, %254 : vector<16x128xf32>
    %256 = math.absf %233 : vector<16x128xf32>
    %257 = math.absf %241 : vector<16x128xf32>
    %258 = math.absf %249 : vector<16x128xf32>
    %259 = arith.cmpf ogt, %257, %256 : vector<16x128xf32>
    %260 = arith.select %259, %257, %256 : vector<16x128xi1>, vector<16x128xf32>
    %261 = arith.cmpf ogt, %258, %260 : vector<16x128xf32>
    %cst_44 = arith.constant dense<true> : vector<16x128xi1>
    %262 = arith.xori %261, %cst_44 : vector<16x128xi1>
    %cst_45 = arith.constant dense<true> : vector<16x128xi1>
    %263 = arith.xori %259, %cst_45 : vector<16x128xi1>
    %264 = arith.andi %263, %262 : vector<16x128xi1>
    %265 = arith.andi %259, %262 : vector<16x128xi1>
    %cst_46 = arith.constant 0.000000e+00 : f32
    %266 = vector.broadcast %cst_46 : f32 to vector<16x128xf32>
    %267 = arith.cmpf ogt, %233, %266 : vector<16x128xf32>
    %cst_47 = arith.constant 0.000000e+00 : f32
    %268 = arith.subf %cst_47, %173 : f32
    %269 = vector.broadcast %173 : f32 to vector<16x128xf32>
    %270 = vector.broadcast %268 : f32 to vector<16x128xf32>
    %271 = arith.select %267, %269, %270 : vector<16x128xi1>, vector<16x128xf32>
    %cst_48 = arith.constant 0.000000e+00 : f32
    %272 = vector.broadcast %cst_48 : f32 to vector<16x128xf32>
    %273 = arith.cmpf ogt, %241, %272 : vector<16x128xf32>
    %cst_49 = arith.constant 0.000000e+00 : f32
    %274 = arith.subf %cst_49, %175 : f32
    %275 = vector.broadcast %175 : f32 to vector<16x128xf32>
    %276 = vector.broadcast %274 : f32 to vector<16x128xf32>
    %277 = arith.select %273, %275, %276 : vector<16x128xi1>, vector<16x128xf32>
    %cst_50 = arith.constant 0.000000e+00 : f32
    %278 = vector.broadcast %cst_50 : f32 to vector<16x128xf32>
    %279 = arith.cmpf ogt, %249, %278 : vector<16x128xf32>
    %cst_51 = arith.constant 0.000000e+00 : f32
    %280 = arith.subf %cst_51, %177 : f32
    %281 = vector.broadcast %177 : f32 to vector<16x128xf32>
    %282 = vector.broadcast %280 : f32 to vector<16x128xf32>
    %283 = arith.select %279, %281, %282 : vector<16x128xi1>, vector<16x128xf32>
    %284 = vector.broadcast %173 : f32 to vector<16x128xf32>
    %285 = arith.minimumf %251, %284 : vector<16x128xf32>
    %cst_52 = arith.constant 0.000000e+00 : f32
    %286 = arith.subf %cst_52, %173 : f32
    %287 = vector.broadcast %286 : f32 to vector<16x128xf32>
    %288 = arith.maximumf %285, %287 : vector<16x128xf32>
    %289 = arith.select %264, %271, %288 : vector<16x128xi1>, vector<16x128xf32>
    %290 = vector.broadcast %175 : f32 to vector<16x128xf32>
    %291 = arith.minimumf %253, %290 : vector<16x128xf32>
    %cst_53 = arith.constant 0.000000e+00 : f32
    %292 = arith.subf %cst_53, %175 : f32
    %293 = vector.broadcast %292 : f32 to vector<16x128xf32>
    %294 = arith.maximumf %291, %293 : vector<16x128xf32>
    %295 = arith.select %265, %277, %294 : vector<16x128xi1>, vector<16x128xf32>
    %296 = vector.broadcast %177 : f32 to vector<16x128xf32>
    %297 = arith.minimumf %255, %296 : vector<16x128xf32>
    %cst_54 = arith.constant 0.000000e+00 : f32
    %298 = arith.subf %cst_54, %177 : f32
    %299 = vector.broadcast %298 : f32 to vector<16x128xf32>
    %300 = arith.maximumf %297, %299 : vector<16x128xf32>
    %301 = arith.select %261, %283, %300 : vector<16x128xi1>, vector<16x128xf32>
    %302 = arith.subf %289, %209 : vector<16x128xf32>
    %303 = arith.mulf %302, %302 : vector<16x128xf32>
    %304 = arith.subf %295, %217 : vector<16x128xf32>
    %305 = arith.mulf %304, %304 : vector<16x128xf32>
    %306 = arith.addf %303, %305 : vector<16x128xf32>
    %307 = arith.subf %301, %225 : vector<16x128xf32>
    %308 = arith.mulf %307, %307 : vector<16x128xf32>
    %309 = arith.addf %306, %308 : vector<16x128xf32>
    %c0_55 = arith.constant 0 : index
    %c1_56 = arith.constant 1 : index
    %c0_57 = arith.constant 0 : index
    %c0_58 = arith.constant 0 : index
    %310 = vector.load %arg4[%c0_55, %c1_56, %c0_57, %c0_58] : memref<1x8x16x128xf32, #tpu.memory_space<vmem>>, vector<1x1x16x128xf32>
    %311 = vector.shape_cast %310 : vector<1x1x16x128xf32> to vector<16x128xf32>
    %312 = arith.mulf %309, %311 : vector<16x128xf32>
    %313 = arith.addf %165, %312 : vector<16x128xf32>
    %314 = arith.index_cast %arg0 : i32 to index
    %c30 = arith.constant 30 : index
    %315 = memref.load %arg2[%314, %c30] : memref<2x120xf32, #tpu.memory_space<smem>>
    %316 = arith.index_cast %arg0 : i32 to index
    %c31 = arith.constant 31 : index
    %317 = memref.load %arg2[%316, %c31] : memref<2x120xf32, #tpu.memory_space<smem>>
    %318 = arith.index_cast %arg0 : i32 to index
    %c32 = arith.constant 32 : index
    %319 = memref.load %arg2[%318, %c32] : memref<2x120xf32, #tpu.memory_space<smem>>
    %320 = arith.index_cast %arg0 : i32 to index
    %c33 = arith.constant 33 : index
    %321 = memref.load %arg2[%320, %c33] : memref<2x120xf32, #tpu.memory_space<smem>>
    %322 = arith.index_cast %arg0 : i32 to index
    %c34 = arith.constant 34 : index
    %323 = memref.load %arg2[%322, %c34] : memref<2x120xf32, #tpu.memory_space<smem>>
    %324 = arith.index_cast %arg0 : i32 to index
    %c35 = arith.constant 35 : index
    %325 = memref.load %arg2[%324, %c35] : memref<2x120xf32, #tpu.memory_space<smem>>
    %326 = arith.index_cast %arg0 : i32 to index
    %c36 = arith.constant 36 : index
    %327 = memref.load %arg2[%326, %c36] : memref<2x120xf32, #tpu.memory_space<smem>>
    %328 = arith.index_cast %arg0 : i32 to index
    %c37 = arith.constant 37 : index
    %329 = memref.load %arg2[%328, %c37] : memref<2x120xf32, #tpu.memory_space<smem>>
    %330 = arith.index_cast %arg0 : i32 to index
    %c38 = arith.constant 38 : index
    %331 = memref.load %arg2[%330, %c38] : memref<2x120xf32, #tpu.memory_space<smem>>
    %332 = arith.index_cast %arg0 : i32 to index
    %c39 = arith.constant 39 : index
    %333 = memref.load %arg2[%332, %c39] : memref<2x120xf32, #tpu.memory_space<smem>>
    %334 = arith.index_cast %arg0 : i32 to index
    %c40 = arith.constant 40 : index
    %335 = memref.load %arg2[%334, %c40] : memref<2x120xf32, #tpu.memory_space<smem>>
    %336 = arith.index_cast %arg0 : i32 to index
    %c41 = arith.constant 41 : index
    %337 = memref.load %arg2[%336, %c41] : memref<2x120xf32, #tpu.memory_space<smem>>
    %338 = arith.index_cast %arg0 : i32 to index
    %c42 = arith.constant 42 : index
    %339 = memref.load %arg2[%338, %c42] : memref<2x120xf32, #tpu.memory_space<smem>>
    %340 = arith.index_cast %arg0 : i32 to index
    %c43 = arith.constant 43 : index
    %341 = memref.load %arg2[%340, %c43] : memref<2x120xf32, #tpu.memory_space<smem>>
    %342 = arith.index_cast %arg0 : i32 to index
    %c44 = arith.constant 44 : index
    %343 = memref.load %arg2[%342, %c44] : memref<2x120xf32, #tpu.memory_space<smem>>
    %344 = vector.broadcast %315 : f32 to vector<16x128xf32>
    %345 = arith.subf %4, %344 : vector<16x128xf32>
    %346 = vector.broadcast %317 : f32 to vector<16x128xf32>
    %347 = arith.subf %6, %346 : vector<16x128xf32>
    %348 = vector.broadcast %319 : f32 to vector<16x128xf32>
    %349 = arith.subf %8, %348 : vector<16x128xf32>
    %350 = vector.broadcast %327 : f32 to vector<16x128xf32>
    %351 = arith.mulf %350, %345 : vector<16x128xf32>
    %352 = vector.broadcast %329 : f32 to vector<16x128xf32>
    %353 = arith.mulf %352, %347 : vector<16x128xf32>
    %354 = arith.addf %351, %353 : vector<16x128xf32>
    %355 = vector.broadcast %331 : f32 to vector<16x128xf32>
    %356 = arith.mulf %355, %349 : vector<16x128xf32>
    %357 = arith.addf %354, %356 : vector<16x128xf32>
    %358 = vector.broadcast %333 : f32 to vector<16x128xf32>
    %359 = arith.mulf %358, %345 : vector<16x128xf32>
    %360 = vector.broadcast %335 : f32 to vector<16x128xf32>
    %361 = arith.mulf %360, %347 : vector<16x128xf32>
    %362 = arith.addf %359, %361 : vector<16x128xf32>
    %363 = vector.broadcast %337 : f32 to vector<16x128xf32>
    %364 = arith.mulf %363, %349 : vector<16x128xf32>
    %365 = arith.addf %362, %364 : vector<16x128xf32>
    %366 = vector.broadcast %339 : f32 to vector<16x128xf32>
    %367 = arith.mulf %366, %345 : vector<16x128xf32>
    %368 = vector.broadcast %341 : f32 to vector<16x128xf32>
    %369 = arith.mulf %368, %347 : vector<16x128xf32>
    %370 = arith.addf %367, %369 : vector<16x128xf32>
    %371 = vector.broadcast %343 : f32 to vector<16x128xf32>
    %372 = arith.mulf %371, %349 : vector<16x128xf32>
    %373 = arith.addf %370, %372 : vector<16x128xf32>
    %374 = vector.broadcast %327 : f32 to vector<16x128xf32>
    %375 = arith.mulf %374, %10 : vector<16x128xf32>
    %376 = vector.broadcast %329 : f32 to vector<16x128xf32>
    %377 = arith.mulf %376, %12 : vector<16x128xf32>
    %378 = arith.addf %375, %377 : vector<16x128xf32>
    %379 = vector.broadcast %331 : f32 to vector<16x128xf32>
    %380 = arith.mulf %379, %14 : vector<16x128xf32>
    %381 = arith.addf %378, %380 : vector<16x128xf32>
    %382 = vector.broadcast %333 : f32 to vector<16x128xf32>
    %383 = arith.mulf %382, %10 : vector<16x128xf32>
    %384 = vector.broadcast %335 : f32 to vector<16x128xf32>
    %385 = arith.mulf %384, %12 : vector<16x128xf32>
    %386 = arith.addf %383, %385 : vector<16x128xf32>
    %387 = vector.broadcast %337 : f32 to vector<16x128xf32>
    %388 = arith.mulf %387, %14 : vector<16x128xf32>
    %389 = arith.addf %386, %388 : vector<16x128xf32>
    %390 = vector.broadcast %339 : f32 to vector<16x128xf32>
    %391 = arith.mulf %390, %10 : vector<16x128xf32>
    %392 = vector.broadcast %341 : f32 to vector<16x128xf32>
    %393 = arith.mulf %392, %12 : vector<16x128xf32>
    %394 = arith.addf %391, %393 : vector<16x128xf32>
    %395 = vector.broadcast %343 : f32 to vector<16x128xf32>
    %396 = arith.mulf %395, %14 : vector<16x128xf32>
    %397 = arith.addf %394, %396 : vector<16x128xf32>
    %398 = arith.mulf %16, %381 : vector<16x128xf32>
    %399 = arith.addf %357, %398 : vector<16x128xf32>
    %400 = arith.mulf %16, %389 : vector<16x128xf32>
    %401 = arith.addf %365, %400 : vector<16x128xf32>
    %402 = arith.mulf %16, %397 : vector<16x128xf32>
    %403 = arith.addf %373, %402 : vector<16x128xf32>
    %404 = math.absf %381 : vector<16x128xf32>
    %405 = math.absf %389 : vector<16x128xf32>
    %406 = math.absf %397 : vector<16x128xf32>
    %407 = arith.cmpf ogt, %405, %404 : vector<16x128xf32>
    %408 = arith.select %407, %405, %404 : vector<16x128xi1>, vector<16x128xf32>
    %409 = arith.cmpf ogt, %406, %408 : vector<16x128xf32>
    %cst_59 = arith.constant dense<true> : vector<16x128xi1>
    %410 = arith.xori %409, %cst_59 : vector<16x128xi1>
    %cst_60 = arith.constant dense<true> : vector<16x128xi1>
    %411 = arith.xori %407, %cst_60 : vector<16x128xi1>
    %412 = arith.andi %411, %410 : vector<16x128xi1>
    %413 = arith.andi %407, %410 : vector<16x128xi1>
    %cst_61 = arith.constant 0.000000e+00 : f32
    %414 = vector.broadcast %cst_61 : f32 to vector<16x128xf32>
    %415 = arith.cmpf ogt, %381, %414 : vector<16x128xf32>
    %cst_62 = arith.constant 0.000000e+00 : f32
    %416 = arith.subf %cst_62, %321 : f32
    %417 = vector.broadcast %321 : f32 to vector<16x128xf32>
    %418 = vector.broadcast %416 : f32 to vector<16x128xf32>
    %419 = arith.select %415, %417, %418 : vector<16x128xi1>, vector<16x128xf32>
    %cst_63 = arith.constant 0.000000e+00 : f32
    %420 = vector.broadcast %cst_63 : f32 to vector<16x128xf32>
    %421 = arith.cmpf ogt, %389, %420 : vector<16x128xf32>
    %cst_64 = arith.constant 0.000000e+00 : f32
    %422 = arith.subf %cst_64, %323 : f32
    %423 = vector.broadcast %323 : f32 to vector<16x128xf32>
    %424 = vector.broadcast %422 : f32 to vector<16x128xf32>
    %425 = arith.select %421, %423, %424 : vector<16x128xi1>, vector<16x128xf32>
    %cst_65 = arith.constant 0.000000e+00 : f32
    %426 = vector.broadcast %cst_65 : f32 to vector<16x128xf32>
    %427 = arith.cmpf ogt, %397, %426 : vector<16x128xf32>
    %cst_66 = arith.constant 0.000000e+00 : f32
    %428 = arith.subf %cst_66, %325 : f32
    %429 = vector.broadcast %325 : f32 to vector<16x128xf32>
    %430 = vector.broadcast %428 : f32 to vector<16x128xf32>
    %431 = arith.select %427, %429, %430 : vector<16x128xi1>, vector<16x128xf32>
    %432 = vector.broadcast %321 : f32 to vector<16x128xf32>
    %433 = arith.minimumf %399, %432 : vector<16x128xf32>
    %cst_67 = arith.constant 0.000000e+00 : f32
    %434 = arith.subf %cst_67, %321 : f32
    %435 = vector.broadcast %434 : f32 to vector<16x128xf32>
    %436 = arith.maximumf %433, %435 : vector<16x128xf32>
    %437 = arith.select %412, %419, %436 : vector<16x128xi1>, vector<16x128xf32>
    %438 = vector.broadcast %323 : f32 to vector<16x128xf32>
    %439 = arith.minimumf %401, %438 : vector<16x128xf32>
    %cst_68 = arith.constant 0.000000e+00 : f32
    %440 = arith.subf %cst_68, %323 : f32
    %441 = vector.broadcast %440 : f32 to vector<16x128xf32>
    %442 = arith.maximumf %439, %441 : vector<16x128xf32>
    %443 = arith.select %413, %425, %442 : vector<16x128xi1>, vector<16x128xf32>
    %444 = vector.broadcast %325 : f32 to vector<16x128xf32>
    %445 = arith.minimumf %403, %444 : vector<16x128xf32>
    %cst_69 = arith.constant 0.000000e+00 : f32
    %446 = arith.subf %cst_69, %325 : f32
    %447 = vector.broadcast %446 : f32 to vector<16x128xf32>
    %448 = arith.maximumf %445, %447 : vector<16x128xf32>
    %449 = arith.select %409, %431, %448 : vector<16x128xi1>, vector<16x128xf32>
    %450 = arith.subf %437, %357 : vector<16x128xf32>
    %451 = arith.mulf %450, %450 : vector<16x128xf32>
    %452 = arith.subf %443, %365 : vector<16x128xf32>
    %453 = arith.mulf %452, %452 : vector<16x128xf32>
    %454 = arith.addf %451, %453 : vector<16x128xf32>
    %455 = arith.subf %449, %373 : vector<16x128xf32>
    %456 = arith.mulf %455, %455 : vector<16x128xf32>
    %457 = arith.addf %454, %456 : vector<16x128xf32>
    %c0_70 = arith.constant 0 : index
    %c2_71 = arith.constant 2 : index
    %c0_72 = arith.constant 0 : index
    %c0_73 = arith.constant 0 : index
    %458 = vector.load %arg4[%c0_70, %c2_71, %c0_72, %c0_73] : memref<1x8x16x128xf32, #tpu.memory_space<vmem>>, vector<1x1x16x128xf32>
    %459 = vector.shape_cast %458 : vector<1x1x16x128xf32> to vector<16x128xf32>
    %460 = arith.mulf %457, %459 : vector<16x128xf32>
    %461 = arith.addf %313, %460 : vector<16x128xf32>
    %462 = arith.index_cast %arg0 : i32 to index
    %c45 = arith.constant 45 : index
    %463 = memref.load %arg2[%462, %c45] : memref<2x120xf32, #tpu.memory_space<smem>>
    %464 = arith.index_cast %arg0 : i32 to index
    %c46 = arith.constant 46 : index
    %465 = memref.load %arg2[%464, %c46] : memref<2x120xf32, #tpu.memory_space<smem>>
    %466 = arith.index_cast %arg0 : i32 to index
    %c47 = arith.constant 47 : index
    %467 = memref.load %arg2[%466, %c47] : memref<2x120xf32, #tpu.memory_space<smem>>
    %468 = arith.index_cast %arg0 : i32 to index
    %c48 = arith.constant 48 : index
    %469 = memref.load %arg2[%468, %c48] : memref<2x120xf32, #tpu.memory_space<smem>>
    %470 = arith.index_cast %arg0 : i32 to index
    %c49 = arith.constant 49 : index
    %471 = memref.load %arg2[%470, %c49] : memref<2x120xf32, #tpu.memory_space<smem>>
    %472 = arith.index_cast %arg0 : i32 to index
    %c50 = arith.constant 50 : index
    %473 = memref.load %arg2[%472, %c50] : memref<2x120xf32, #tpu.memory_space<smem>>
    %474 = arith.index_cast %arg0 : i32 to index
    %c51 = arith.constant 51 : index
    %475 = memref.load %arg2[%474, %c51] : memref<2x120xf32, #tpu.memory_space<smem>>
    %476 = arith.index_cast %arg0 : i32 to index
    %c52 = arith.constant 52 : index
    %477 = memref.load %arg2[%476, %c52] : memref<2x120xf32, #tpu.memory_space<smem>>
    %478 = arith.index_cast %arg0 : i32 to index
    %c53 = arith.constant 53 : index
    %479 = memref.load %arg2[%478, %c53] : memref<2x120xf32, #tpu.memory_space<smem>>
    %480 = arith.index_cast %arg0 : i32 to index
    %c54 = arith.constant 54 : index
    %481 = memref.load %arg2[%480, %c54] : memref<2x120xf32, #tpu.memory_space<smem>>
    %482 = arith.index_cast %arg0 : i32 to index
    %c55 = arith.constant 55 : index
    %483 = memref.load %arg2[%482, %c55] : memref<2x120xf32, #tpu.memory_space<smem>>
    %484 = arith.index_cast %arg0 : i32 to index
    %c56 = arith.constant 56 : index
    %485 = memref.load %arg2[%484, %c56] : memref<2x120xf32, #tpu.memory_space<smem>>
    %486 = arith.index_cast %arg0 : i32 to index
    %c57 = arith.constant 57 : index
    %487 = memref.load %arg2[%486, %c57] : memref<2x120xf32, #tpu.memory_space<smem>>
    %488 = arith.index_cast %arg0 : i32 to index
    %c58 = arith.constant 58 : index
    %489 = memref.load %arg2[%488, %c58] : memref<2x120xf32, #tpu.memory_space<smem>>
    %490 = arith.index_cast %arg0 : i32 to index
    %c59 = arith.constant 59 : index
    %491 = memref.load %arg2[%490, %c59] : memref<2x120xf32, #tpu.memory_space<smem>>
    %492 = vector.broadcast %463 : f32 to vector<16x128xf32>
    %493 = arith.subf %4, %492 : vector<16x128xf32>
    %494 = vector.broadcast %465 : f32 to vector<16x128xf32>
    %495 = arith.subf %6, %494 : vector<16x128xf32>
    %496 = vector.broadcast %467 : f32 to vector<16x128xf32>
    %497 = arith.subf %8, %496 : vector<16x128xf32>
    %498 = vector.broadcast %475 : f32 to vector<16x128xf32>
    %499 = arith.mulf %498, %493 : vector<16x128xf32>
    %500 = vector.broadcast %477 : f32 to vector<16x128xf32>
    %501 = arith.mulf %500, %495 : vector<16x128xf32>
    %502 = arith.addf %499, %501 : vector<16x128xf32>
    %503 = vector.broadcast %479 : f32 to vector<16x128xf32>
    %504 = arith.mulf %503, %497 : vector<16x128xf32>
    %505 = arith.addf %502, %504 : vector<16x128xf32>
    %506 = vector.broadcast %481 : f32 to vector<16x128xf32>
    %507 = arith.mulf %506, %493 : vector<16x128xf32>
    %508 = vector.broadcast %483 : f32 to vector<16x128xf32>
    %509 = arith.mulf %508, %495 : vector<16x128xf32>
    %510 = arith.addf %507, %509 : vector<16x128xf32>
    %511 = vector.broadcast %485 : f32 to vector<16x128xf32>
    %512 = arith.mulf %511, %497 : vector<16x128xf32>
    %513 = arith.addf %510, %512 : vector<16x128xf32>
    %514 = vector.broadcast %487 : f32 to vector<16x128xf32>
    %515 = arith.mulf %514, %493 : vector<16x128xf32>
    %516 = vector.broadcast %489 : f32 to vector<16x128xf32>
    %517 = arith.mulf %516, %495 : vector<16x128xf32>
    %518 = arith.addf %515, %517 : vector<16x128xf32>
    %519 = vector.broadcast %491 : f32 to vector<16x128xf32>
    %520 = arith.mulf %519, %497 : vector<16x128xf32>
    %521 = arith.addf %518, %520 : vector<16x128xf32>
    %522 = vector.broadcast %475 : f32 to vector<16x128xf32>
    %523 = arith.mulf %522, %10 : vector<16x128xf32>
    %524 = vector.broadcast %477 : f32 to vector<16x128xf32>
    %525 = arith.mulf %524, %12 : vector<16x128xf32>
    %526 = arith.addf %523, %525 : vector<16x128xf32>
    %527 = vector.broadcast %479 : f32 to vector<16x128xf32>
    %528 = arith.mulf %527, %14 : vector<16x128xf32>
    %529 = arith.addf %526, %528 : vector<16x128xf32>
    %530 = vector.broadcast %481 : f32 to vector<16x128xf32>
    %531 = arith.mulf %530, %10 : vector<16x128xf32>
    %532 = vector.broadcast %483 : f32 to vector<16x128xf32>
    %533 = arith.mulf %532, %12 : vector<16x128xf32>
    %534 = arith.addf %531, %533 : vector<16x128xf32>
    %535 = vector.broadcast %485 : f32 to vector<16x128xf32>
    %536 = arith.mulf %535, %14 : vector<16x128xf32>
    %537 = arith.addf %534, %536 : vector<16x128xf32>
    %538 = vector.broadcast %487 : f32 to vector<16x128xf32>
    %539 = arith.mulf %538, %10 : vector<16x128xf32>
    %540 = vector.broadcast %489 : f32 to vector<16x128xf32>
    %541 = arith.mulf %540, %12 : vector<16x128xf32>
    %542 = arith.addf %539, %541 : vector<16x128xf32>
    %543 = vector.broadcast %491 : f32 to vector<16x128xf32>
    %544 = arith.mulf %543, %14 : vector<16x128xf32>
    %545 = arith.addf %542, %544 : vector<16x128xf32>
    %546 = arith.mulf %16, %529 : vector<16x128xf32>
    %547 = arith.addf %505, %546 : vector<16x128xf32>
    %548 = arith.mulf %16, %537 : vector<16x128xf32>
    %549 = arith.addf %513, %548 : vector<16x128xf32>
    %550 = arith.mulf %16, %545 : vector<16x128xf32>
    %551 = arith.addf %521, %550 : vector<16x128xf32>
    %552 = math.absf %529 : vector<16x128xf32>
    %553 = math.absf %537 : vector<16x128xf32>
    %554 = math.absf %545 : vector<16x128xf32>
    %555 = arith.cmpf ogt, %553, %552 : vector<16x128xf32>
    %556 = arith.select %555, %553, %552 : vector<16x128xi1>, vector<16x128xf32>
    %557 = arith.cmpf ogt, %554, %556 : vector<16x128xf32>
    %cst_74 = arith.constant dense<true> : vector<16x128xi1>
    %558 = arith.xori %557, %cst_74 : vector<16x128xi1>
    %cst_75 = arith.constant dense<true> : vector<16x128xi1>
    %559 = arith.xori %555, %cst_75 : vector<16x128xi1>
    %560 = arith.andi %559, %558 : vector<16x128xi1>
    %561 = arith.andi %555, %558 : vector<16x128xi1>
    %cst_76 = arith.constant 0.000000e+00 : f32
    %562 = vector.broadcast %cst_76 : f32 to vector<16x128xf32>
    %563 = arith.cmpf ogt, %529, %562 : vector<16x128xf32>
    %cst_77 = arith.constant 0.000000e+00 : f32
    %564 = arith.subf %cst_77, %469 : f32
    %565 = vector.broadcast %469 : f32 to vector<16x128xf32>
    %566 = vector.broadcast %564 : f32 to vector<16x128xf32>
    %567 = arith.select %563, %565, %566 : vector<16x128xi1>, vector<16x128xf32>
    %cst_78 = arith.constant 0.000000e+00 : f32
    %568 = vector.broadcast %cst_78 : f32 to vector<16x128xf32>
    %569 = arith.cmpf ogt, %537, %568 : vector<16x128xf32>
    %cst_79 = arith.constant 0.000000e+00 : f32
    %570 = arith.subf %cst_79, %471 : f32
    %571 = vector.broadcast %471 : f32 to vector<16x128xf32>
    %572 = vector.broadcast %570 : f32 to vector<16x128xf32>
    %573 = arith.select %569, %571, %572 : vector<16x128xi1>, vector<16x128xf32>
    %cst_80 = arith.constant 0.000000e+00 : f32
    %574 = vector.broadcast %cst_80 : f32 to vector<16x128xf32>
    %575 = arith.cmpf ogt, %545, %574 : vector<16x128xf32>
    %cst_81 = arith.constant 0.000000e+00 : f32
    %576 = arith.subf %cst_81, %473 : f32
    %577 = vector.broadcast %473 : f32 to vector<16x128xf32>
    %578 = vector.broadcast %576 : f32 to vector<16x128xf32>
    %579 = arith.select %575, %577, %578 : vector<16x128xi1>, vector<16x128xf32>
    %580 = vector.broadcast %469 : f32 to vector<16x128xf32>
    %581 = arith.minimumf %547, %580 : vector<16x128xf32>
    %cst_82 = arith.constant 0.000000e+00 : f32
    %582 = arith.subf %cst_82, %469 : f32
    %583 = vector.broadcast %582 : f32 to vector<16x128xf32>
    %584 = arith.maximumf %581, %583 : vector<16x128xf32>
    %585 = arith.select %560, %567, %584 : vector<16x128xi1>, vector<16x128xf32>
    %586 = vector.broadcast %471 : f32 to vector<16x128xf32>
    %587 = arith.minimumf %549, %586 : vector<16x128xf32>
    %cst_83 = arith.constant 0.000000e+00 : f32
    %588 = arith.subf %cst_83, %471 : f32
    %589 = vector.broadcast %588 : f32 to vector<16x128xf32>
    %590 = arith.maximumf %587, %589 : vector<16x128xf32>
    %591 = arith.select %561, %573, %590 : vector<16x128xi1>, vector<16x128xf32>
    %592 = vector.broadcast %473 : f32 to vector<16x128xf32>
    %593 = arith.minimumf %551, %592 : vector<16x128xf32>
    %cst_84 = arith.constant 0.000000e+00 : f32
    %594 = arith.subf %cst_84, %473 : f32
    %595 = vector.broadcast %594 : f32 to vector<16x128xf32>
    %596 = arith.maximumf %593, %595 : vector<16x128xf32>
    %597 = arith.select %557, %579, %596 : vector<16x128xi1>, vector<16x128xf32>
    %598 = arith.subf %585, %505 : vector<16x128xf32>
    %599 = arith.mulf %598, %598 : vector<16x128xf32>
    %600 = arith.subf %591, %513 : vector<16x128xf32>
    %601 = arith.mulf %600, %600 : vector<16x128xf32>
    %602 = arith.addf %599, %601 : vector<16x128xf32>
    %603 = arith.subf %597, %521 : vector<16x128xf32>
    %604 = arith.mulf %603, %603 : vector<16x128xf32>
    %605 = arith.addf %602, %604 : vector<16x128xf32>
    %c0_85 = arith.constant 0 : index
    %c3_86 = arith.constant 3 : index
    %c0_87 = arith.constant 0 : index
    %c0_88 = arith.constant 0 : index
    %606 = vector.load %arg4[%c0_85, %c3_86, %c0_87, %c0_88] : memref<1x8x16x128xf32, #tpu.memory_space<vmem>>, vector<1x1x16x128xf32>
    %607 = vector.shape_cast %606 : vector<1x1x16x128xf32> to vector<16x128xf32>
    %608 = arith.mulf %605, %607 : vector<16x128xf32>
    %609 = arith.addf %461, %608 : vector<16x128xf32>
    %610 = arith.index_cast %arg0 : i32 to index
    %c60 = arith.constant 60 : index
    %611 = memref.load %arg2[%610, %c60] : memref<2x120xf32, #tpu.memory_space<smem>>
    %612 = arith.index_cast %arg0 : i32 to index
    %c61 = arith.constant 61 : index
    %613 = memref.load %arg2[%612, %c61] : memref<2x120xf32, #tpu.memory_space<smem>>
    %614 = arith.index_cast %arg0 : i32 to index
    %c62 = arith.constant 62 : index
    %615 = memref.load %arg2[%614, %c62] : memref<2x120xf32, #tpu.memory_space<smem>>
    %616 = arith.index_cast %arg0 : i32 to index
    %c63 = arith.constant 63 : index
    %617 = memref.load %arg2[%616, %c63] : memref<2x120xf32, #tpu.memory_space<smem>>
    %618 = arith.index_cast %arg0 : i32 to index
    %c64 = arith.constant 64 : index
    %619 = memref.load %arg2[%618, %c64] : memref<2x120xf32, #tpu.memory_space<smem>>
    %620 = arith.index_cast %arg0 : i32 to index
    %c65 = arith.constant 65 : index
    %621 = memref.load %arg2[%620, %c65] : memref<2x120xf32, #tpu.memory_space<smem>>
    %622 = arith.index_cast %arg0 : i32 to index
    %c66 = arith.constant 66 : index
    %623 = memref.load %arg2[%622, %c66] : memref<2x120xf32, #tpu.memory_space<smem>>
    %624 = arith.index_cast %arg0 : i32 to index
    %c67 = arith.constant 67 : index
    %625 = memref.load %arg2[%624, %c67] : memref<2x120xf32, #tpu.memory_space<smem>>
    %626 = arith.index_cast %arg0 : i32 to index
    %c68 = arith.constant 68 : index
    %627 = memref.load %arg2[%626, %c68] : memref<2x120xf32, #tpu.memory_space<smem>>
    %628 = arith.index_cast %arg0 : i32 to index
    %c69 = arith.constant 69 : index
    %629 = memref.load %arg2[%628, %c69] : memref<2x120xf32, #tpu.memory_space<smem>>
    %630 = arith.index_cast %arg0 : i32 to index
    %c70 = arith.constant 70 : index
    %631 = memref.load %arg2[%630, %c70] : memref<2x120xf32, #tpu.memory_space<smem>>
    %632 = arith.index_cast %arg0 : i32 to index
    %c71 = arith.constant 71 : index
    %633 = memref.load %arg2[%632, %c71] : memref<2x120xf32, #tpu.memory_space<smem>>
    %634 = arith.index_cast %arg0 : i32 to index
    %c72 = arith.constant 72 : index
    %635 = memref.load %arg2[%634, %c72] : memref<2x120xf32, #tpu.memory_space<smem>>
    %636 = arith.index_cast %arg0 : i32 to index
    %c73 = arith.constant 73 : index
    %637 = memref.load %arg2[%636, %c73] : memref<2x120xf32, #tpu.memory_space<smem>>
    %638 = arith.index_cast %arg0 : i32 to index
    %c74 = arith.constant 74 : index
    %639 = memref.load %arg2[%638, %c74] : memref<2x120xf32, #tpu.memory_space<smem>>
    %640 = vector.broadcast %611 : f32 to vector<16x128xf32>
    %641 = arith.subf %4, %640 : vector<16x128xf32>
    %642 = vector.broadcast %613 : f32 to vector<16x128xf32>
    %643 = arith.subf %6, %642 : vector<16x128xf32>
    %644 = vector.broadcast %615 : f32 to vector<16x128xf32>
    %645 = arith.subf %8, %644 : vector<16x128xf32>
    %646 = vector.broadcast %623 : f32 to vector<16x128xf32>
    %647 = arith.mulf %646, %641 : vector<16x128xf32>
    %648 = vector.broadcast %625 : f32 to vector<16x128xf32>
    %649 = arith.mulf %648, %643 : vector<16x128xf32>
    %650 = arith.addf %647, %649 : vector<16x128xf32>
    %651 = vector.broadcast %627 : f32 to vector<16x128xf32>
    %652 = arith.mulf %651, %645 : vector<16x128xf32>
    %653 = arith.addf %650, %652 : vector<16x128xf32>
    %654 = vector.broadcast %629 : f32 to vector<16x128xf32>
    %655 = arith.mulf %654, %641 : vector<16x128xf32>
    %656 = vector.broadcast %631 : f32 to vector<16x128xf32>
    %657 = arith.mulf %656, %643 : vector<16x128xf32>
    %658 = arith.addf %655, %657 : vector<16x128xf32>
    %659 = vector.broadcast %633 : f32 to vector<16x128xf32>
    %660 = arith.mulf %659, %645 : vector<16x128xf32>
    %661 = arith.addf %658, %660 : vector<16x128xf32>
    %662 = vector.broadcast %635 : f32 to vector<16x128xf32>
    %663 = arith.mulf %662, %641 : vector<16x128xf32>
    %664 = vector.broadcast %637 : f32 to vector<16x128xf32>
    %665 = arith.mulf %664, %643 : vector<16x128xf32>
    %666 = arith.addf %663, %665 : vector<16x128xf32>
    %667 = vector.broadcast %639 : f32 to vector<16x128xf32>
    %668 = arith.mulf %667, %645 : vector<16x128xf32>
    %669 = arith.addf %666, %668 : vector<16x128xf32>
    %670 = vector.broadcast %623 : f32 to vector<16x128xf32>
    %671 = arith.mulf %670, %10 : vector<16x128xf32>
    %672 = vector.broadcast %625 : f32 to vector<16x128xf32>
    %673 = arith.mulf %672, %12 : vector<16x128xf32>
    %674 = arith.addf %671, %673 : vector<16x128xf32>
    %675 = vector.broadcast %627 : f32 to vector<16x128xf32>
    %676 = arith.mulf %675, %14 : vector<16x128xf32>
    %677 = arith.addf %674, %676 : vector<16x128xf32>
    %678 = vector.broadcast %629 : f32 to vector<16x128xf32>
    %679 = arith.mulf %678, %10 : vector<16x128xf32>
    %680 = vector.broadcast %631 : f32 to vector<16x128xf32>
    %681 = arith.mulf %680, %12 : vector<16x128xf32>
    %682 = arith.addf %679, %681 : vector<16x128xf32>
    %683 = vector.broadcast %633 : f32 to vector<16x128xf32>
    %684 = arith.mulf %683, %14 : vector<16x128xf32>
    %685 = arith.addf %682, %684 : vector<16x128xf32>
    %686 = vector.broadcast %635 : f32 to vector<16x128xf32>
    %687 = arith.mulf %686, %10 : vector<16x128xf32>
    %688 = vector.broadcast %637 : f32 to vector<16x128xf32>
    %689 = arith.mulf %688, %12 : vector<16x128xf32>
    %690 = arith.addf %687, %689 : vector<16x128xf32>
    %691 = vector.broadcast %639 : f32 to vector<16x128xf32>
    %692 = arith.mulf %691, %14 : vector<16x128xf32>
    %693 = arith.addf %690, %692 : vector<16x128xf32>
    %694 = arith.mulf %16, %677 : vector<16x128xf32>
    %695 = arith.addf %653, %694 : vector<16x128xf32>
    %696 = arith.mulf %16, %685 : vector<16x128xf32>
    %697 = arith.addf %661, %696 : vector<16x128xf32>
    %698 = arith.mulf %16, %693 : vector<16x128xf32>
    %699 = arith.addf %669, %698 : vector<16x128xf32>
    %700 = math.absf %677 : vector<16x128xf32>
    %701 = math.absf %685 : vector<16x128xf32>
    %702 = math.absf %693 : vector<16x128xf32>
    %703 = arith.cmpf ogt, %701, %700 : vector<16x128xf32>
    %704 = arith.select %703, %701, %700 : vector<16x128xi1>, vector<16x128xf32>
    %705 = arith.cmpf ogt, %702, %704 : vector<16x128xf32>
    %cst_89 = arith.constant dense<true> : vector<16x128xi1>
    %706 = arith.xori %705, %cst_89 : vector<16x128xi1>
    %cst_90 = arith.constant dense<true> : vector<16x128xi1>
    %707 = arith.xori %703, %cst_90 : vector<16x128xi1>
    %708 = arith.andi %707, %706 : vector<16x128xi1>
    %709 = arith.andi %703, %706 : vector<16x128xi1>
    %cst_91 = arith.constant 0.000000e+00 : f32
    %710 = vector.broadcast %cst_91 : f32 to vector<16x128xf32>
    %711 = arith.cmpf ogt, %677, %710 : vector<16x128xf32>
    %cst_92 = arith.constant 0.000000e+00 : f32
    %712 = arith.subf %cst_92, %617 : f32
    %713 = vector.broadcast %617 : f32 to vector<16x128xf32>
    %714 = vector.broadcast %712 : f32 to vector<16x128xf32>
    %715 = arith.select %711, %713, %714 : vector<16x128xi1>, vector<16x128xf32>
    %cst_93 = arith.constant 0.000000e+00 : f32
    %716 = vector.broadcast %cst_93 : f32 to vector<16x128xf32>
    %717 = arith.cmpf ogt, %685, %716 : vector<16x128xf32>
    %cst_94 = arith.constant 0.000000e+00 : f32
    %718 = arith.subf %cst_94, %619 : f32
    %719 = vector.broadcast %619 : f32 to vector<16x128xf32>
    %720 = vector.broadcast %718 : f32 to vector<16x128xf32>
    %721 = arith.select %717, %719, %720 : vector<16x128xi1>, vector<16x128xf32>
    %cst_95 = arith.constant 0.000000e+00 : f32
    %722 = vector.broadcast %cst_95 : f32 to vector<16x128xf32>
    %723 = arith.cmpf ogt, %693, %722 : vector<16x128xf32>
    %cst_96 = arith.constant 0.000000e+00 : f32
    %724 = arith.subf %cst_96, %621 : f32
    %725 = vector.broadcast %621 : f32 to vector<16x128xf32>
    %726 = vector.broadcast %724 : f32 to vector<16x128xf32>
    %727 = arith.select %723, %725, %726 : vector<16x128xi1>, vector<16x128xf32>
    %728 = vector.broadcast %617 : f32 to vector<16x128xf32>
    %729 = arith.minimumf %695, %728 : vector<16x128xf32>
    %cst_97 = arith.constant 0.000000e+00 : f32
    %730 = arith.subf %cst_97, %617 : f32
    %731 = vector.broadcast %730 : f32 to vector<16x128xf32>
    %732 = arith.maximumf %729, %731 : vector<16x128xf32>
    %733 = arith.select %708, %715, %732 : vector<16x128xi1>, vector<16x128xf32>
    %734 = vector.broadcast %619 : f32 to vector<16x128xf32>
    %735 = arith.minimumf %697, %734 : vector<16x128xf32>
    %cst_98 = arith.constant 0.000000e+00 : f32
    %736 = arith.subf %cst_98, %619 : f32
    %737 = vector.broadcast %736 : f32 to vector<16x128xf32>
    %738 = arith.maximumf %735, %737 : vector<16x128xf32>
    %739 = arith.select %709, %721, %738 : vector<16x128xi1>, vector<16x128xf32>
    %740 = vector.broadcast %621 : f32 to vector<16x128xf32>
    %741 = arith.minimumf %699, %740 : vector<16x128xf32>
    %cst_99 = arith.constant 0.000000e+00 : f32
    %742 = arith.subf %cst_99, %621 : f32
    %743 = vector.broadcast %742 : f32 to vector<16x128xf32>
    %744 = arith.maximumf %741, %743 : vector<16x128xf32>
    %745 = arith.select %705, %727, %744 : vector<16x128xi1>, vector<16x128xf32>
    %746 = arith.subf %733, %653 : vector<16x128xf32>
    %747 = arith.mulf %746, %746 : vector<16x128xf32>
    %748 = arith.subf %739, %661 : vector<16x128xf32>
    %749 = arith.mulf %748, %748 : vector<16x128xf32>
    %750 = arith.addf %747, %749 : vector<16x128xf32>
    %751 = arith.subf %745, %669 : vector<16x128xf32>
    %752 = arith.mulf %751, %751 : vector<16x128xf32>
    %753 = arith.addf %750, %752 : vector<16x128xf32>
    %c0_100 = arith.constant 0 : index
    %c4_101 = arith.constant 4 : index
    %c0_102 = arith.constant 0 : index
    %c0_103 = arith.constant 0 : index
    %754 = vector.load %arg4[%c0_100, %c4_101, %c0_102, %c0_103] : memref<1x8x16x128xf32, #tpu.memory_space<vmem>>, vector<1x1x16x128xf32>
    %755 = vector.shape_cast %754 : vector<1x1x16x128xf32> to vector<16x128xf32>
    %756 = arith.mulf %753, %755 : vector<16x128xf32>
    %757 = arith.addf %609, %756 : vector<16x128xf32>
    %758 = arith.index_cast %arg0 : i32 to index
    %c75 = arith.constant 75 : index
    %759 = memref.load %arg2[%758, %c75] : memref<2x120xf32, #tpu.memory_space<smem>>
    %760 = arith.index_cast %arg0 : i32 to index
    %c76 = arith.constant 76 : index
    %761 = memref.load %arg2[%760, %c76] : memref<2x120xf32, #tpu.memory_space<smem>>
    %762 = arith.index_cast %arg0 : i32 to index
    %c77 = arith.constant 77 : index
    %763 = memref.load %arg2[%762, %c77] : memref<2x120xf32, #tpu.memory_space<smem>>
    %764 = arith.index_cast %arg0 : i32 to index
    %c78 = arith.constant 78 : index
    %765 = memref.load %arg2[%764, %c78] : memref<2x120xf32, #tpu.memory_space<smem>>
    %766 = arith.index_cast %arg0 : i32 to index
    %c79 = arith.constant 79 : index
    %767 = memref.load %arg2[%766, %c79] : memref<2x120xf32, #tpu.memory_space<smem>>
    %768 = arith.index_cast %arg0 : i32 to index
    %c80 = arith.constant 80 : index
    %769 = memref.load %arg2[%768, %c80] : memref<2x120xf32, #tpu.memory_space<smem>>
    %770 = arith.index_cast %arg0 : i32 to index
    %c81 = arith.constant 81 : index
    %771 = memref.load %arg2[%770, %c81] : memref<2x120xf32, #tpu.memory_space<smem>>
    %772 = arith.index_cast %arg0 : i32 to index
    %c82 = arith.constant 82 : index
    %773 = memref.load %arg2[%772, %c82] : memref<2x120xf32, #tpu.memory_space<smem>>
    %774 = arith.index_cast %arg0 : i32 to index
    %c83 = arith.constant 83 : index
    %775 = memref.load %arg2[%774, %c83] : memref<2x120xf32, #tpu.memory_space<smem>>
    %776 = arith.index_cast %arg0 : i32 to index
    %c84 = arith.constant 84 : index
    %777 = memref.load %arg2[%776, %c84] : memref<2x120xf32, #tpu.memory_space<smem>>
    %778 = arith.index_cast %arg0 : i32 to index
    %c85 = arith.constant 85 : index
    %779 = memref.load %arg2[%778, %c85] : memref<2x120xf32, #tpu.memory_space<smem>>
    %780 = arith.index_cast %arg0 : i32 to index
    %c86 = arith.constant 86 : index
    %781 = memref.load %arg2[%780, %c86] : memref<2x120xf32, #tpu.memory_space<smem>>
    %782 = arith.index_cast %arg0 : i32 to index
    %c87 = arith.constant 87 : index
    %783 = memref.load %arg2[%782, %c87] : memref<2x120xf32, #tpu.memory_space<smem>>
    %784 = arith.index_cast %arg0 : i32 to index
    %c88 = arith.constant 88 : index
    %785 = memref.load %arg2[%784, %c88] : memref<2x120xf32, #tpu.memory_space<smem>>
    %786 = arith.index_cast %arg0 : i32 to index
    %c89 = arith.constant 89 : index
    %787 = memref.load %arg2[%786, %c89] : memref<2x120xf32, #tpu.memory_space<smem>>
    %788 = vector.broadcast %759 : f32 to vector<16x128xf32>
    %789 = arith.subf %4, %788 : vector<16x128xf32>
    %790 = vector.broadcast %761 : f32 to vector<16x128xf32>
    %791 = arith.subf %6, %790 : vector<16x128xf32>
    %792 = vector.broadcast %763 : f32 to vector<16x128xf32>
    %793 = arith.subf %8, %792 : vector<16x128xf32>
    %794 = vector.broadcast %771 : f32 to vector<16x128xf32>
    %795 = arith.mulf %794, %789 : vector<16x128xf32>
    %796 = vector.broadcast %773 : f32 to vector<16x128xf32>
    %797 = arith.mulf %796, %791 : vector<16x128xf32>
    %798 = arith.addf %795, %797 : vector<16x128xf32>
    %799 = vector.broadcast %775 : f32 to vector<16x128xf32>
    %800 = arith.mulf %799, %793 : vector<16x128xf32>
    %801 = arith.addf %798, %800 : vector<16x128xf32>
    %802 = vector.broadcast %777 : f32 to vector<16x128xf32>
    %803 = arith.mulf %802, %789 : vector<16x128xf32>
    %804 = vector.broadcast %779 : f32 to vector<16x128xf32>
    %805 = arith.mulf %804, %791 : vector<16x128xf32>
    %806 = arith.addf %803, %805 : vector<16x128xf32>
    %807 = vector.broadcast %781 : f32 to vector<16x128xf32>
    %808 = arith.mulf %807, %793 : vector<16x128xf32>
    %809 = arith.addf %806, %808 : vector<16x128xf32>
    %810 = vector.broadcast %783 : f32 to vector<16x128xf32>
    %811 = arith.mulf %810, %789 : vector<16x128xf32>
    %812 = vector.broadcast %785 : f32 to vector<16x128xf32>
    %813 = arith.mulf %812, %791 : vector<16x128xf32>
    %814 = arith.addf %811, %813 : vector<16x128xf32>
    %815 = vector.broadcast %787 : f32 to vector<16x128xf32>
    %816 = arith.mulf %815, %793 : vector<16x128xf32>
    %817 = arith.addf %814, %816 : vector<16x128xf32>
    %818 = vector.broadcast %771 : f32 to vector<16x128xf32>
    %819 = arith.mulf %818, %10 : vector<16x128xf32>
    %820 = vector.broadcast %773 : f32 to vector<16x128xf32>
    %821 = arith.mulf %820, %12 : vector<16x128xf32>
    %822 = arith.addf %819, %821 : vector<16x128xf32>
    %823 = vector.broadcast %775 : f32 to vector<16x128xf32>
    %824 = arith.mulf %823, %14 : vector<16x128xf32>
    %825 = arith.addf %822, %824 : vector<16x128xf32>
    %826 = vector.broadcast %777 : f32 to vector<16x128xf32>
    %827 = arith.mulf %826, %10 : vector<16x128xf32>
    %828 = vector.broadcast %779 : f32 to vector<16x128xf32>
    %829 = arith.mulf %828, %12 : vector<16x128xf32>
    %830 = arith.addf %827, %829 : vector<16x128xf32>
    %831 = vector.broadcast %781 : f32 to vector<16x128xf32>
    %832 = arith.mulf %831, %14 : vector<16x128xf32>
    %833 = arith.addf %830, %832 : vector<16x128xf32>
    %834 = vector.broadcast %783 : f32 to vector<16x128xf32>
    %835 = arith.mulf %834, %10 : vector<16x128xf32>
    %836 = vector.broadcast %785 : f32 to vector<16x128xf32>
    %837 = arith.mulf %836, %12 : vector<16x128xf32>
    %838 = arith.addf %835, %837 : vector<16x128xf32>
    %839 = vector.broadcast %787 : f32 to vector<16x128xf32>
    %840 = arith.mulf %839, %14 : vector<16x128xf32>
    %841 = arith.addf %838, %840 : vector<16x128xf32>
    %842 = arith.mulf %16, %825 : vector<16x128xf32>
    %843 = arith.addf %801, %842 : vector<16x128xf32>
    %844 = arith.mulf %16, %833 : vector<16x128xf32>
    %845 = arith.addf %809, %844 : vector<16x128xf32>
    %846 = arith.mulf %16, %841 : vector<16x128xf32>
    %847 = arith.addf %817, %846 : vector<16x128xf32>
    %848 = math.absf %825 : vector<16x128xf32>
    %849 = math.absf %833 : vector<16x128xf32>
    %850 = math.absf %841 : vector<16x128xf32>
    %851 = arith.cmpf ogt, %849, %848 : vector<16x128xf32>
    %852 = arith.select %851, %849, %848 : vector<16x128xi1>, vector<16x128xf32>
    %853 = arith.cmpf ogt, %850, %852 : vector<16x128xf32>
    %cst_104 = arith.constant dense<true> : vector<16x128xi1>
    %854 = arith.xori %853, %cst_104 : vector<16x128xi1>
    %cst_105 = arith.constant dense<true> : vector<16x128xi1>
    %855 = arith.xori %851, %cst_105 : vector<16x128xi1>
    %856 = arith.andi %855, %854 : vector<16x128xi1>
    %857 = arith.andi %851, %854 : vector<16x128xi1>
    %cst_106 = arith.constant 0.000000e+00 : f32
    %858 = vector.broadcast %cst_106 : f32 to vector<16x128xf32>
    %859 = arith.cmpf ogt, %825, %858 : vector<16x128xf32>
    %cst_107 = arith.constant 0.000000e+00 : f32
    %860 = arith.subf %cst_107, %765 : f32
    %861 = vector.broadcast %765 : f32 to vector<16x128xf32>
    %862 = vector.broadcast %860 : f32 to vector<16x128xf32>
    %863 = arith.select %859, %861, %862 : vector<16x128xi1>, vector<16x128xf32>
    %cst_108 = arith.constant 0.000000e+00 : f32
    %864 = vector.broadcast %cst_108 : f32 to vector<16x128xf32>
    %865 = arith.cmpf ogt, %833, %864 : vector<16x128xf32>
    %cst_109 = arith.constant 0.000000e+00 : f32
    %866 = arith.subf %cst_109, %767 : f32
    %867 = vector.broadcast %767 : f32 to vector<16x128xf32>
    %868 = vector.broadcast %866 : f32 to vector<16x128xf32>
    %869 = arith.select %865, %867, %868 : vector<16x128xi1>, vector<16x128xf32>
    %cst_110 = arith.constant 0.000000e+00 : f32
    %870 = vector.broadcast %cst_110 : f32 to vector<16x128xf32>
    %871 = arith.cmpf ogt, %841, %870 : vector<16x128xf32>
    %cst_111 = arith.constant 0.000000e+00 : f32
    %872 = arith.subf %cst_111, %769 : f32
    %873 = vector.broadcast %769 : f32 to vector<16x128xf32>
    %874 = vector.broadcast %872 : f32 to vector<16x128xf32>
    %875 = arith.select %871, %873, %874 : vector<16x128xi1>, vector<16x128xf32>
    %876 = vector.broadcast %765 : f32 to vector<16x128xf32>
    %877 = arith.minimumf %843, %876 : vector<16x128xf32>
    %cst_112 = arith.constant 0.000000e+00 : f32
    %878 = arith.subf %cst_112, %765 : f32
    %879 = vector.broadcast %878 : f32 to vector<16x128xf32>
    %880 = arith.maximumf %877, %879 : vector<16x128xf32>
    %881 = arith.select %856, %863, %880 : vector<16x128xi1>, vector<16x128xf32>
    %882 = vector.broadcast %767 : f32 to vector<16x128xf32>
    %883 = arith.minimumf %845, %882 : vector<16x128xf32>
    %cst_113 = arith.constant 0.000000e+00 : f32
    %884 = arith.subf %cst_113, %767 : f32
    %885 = vector.broadcast %884 : f32 to vector<16x128xf32>
    %886 = arith.maximumf %883, %885 : vector<16x128xf32>
    %887 = arith.select %857, %869, %886 : vector<16x128xi1>, vector<16x128xf32>
    %888 = vector.broadcast %769 : f32 to vector<16x128xf32>
    %889 = arith.minimumf %847, %888 : vector<16x128xf32>
    %cst_114 = arith.constant 0.000000e+00 : f32
    %890 = arith.subf %cst_114, %769 : f32
    %891 = vector.broadcast %890 : f32 to vector<16x128xf32>
    %892 = arith.maximumf %889, %891 : vector<16x128xf32>
    %893 = arith.select %853, %875, %892 : vector<16x128xi1>, vector<16x128xf32>
    %894 = arith.subf %881, %801 : vector<16x128xf32>
    %895 = arith.mulf %894, %894 : vector<16x128xf32>
    %896 = arith.subf %887, %809 : vector<16x128xf32>
    %897 = arith.mulf %896, %896 : vector<16x128xf32>
    %898 = arith.addf %895, %897 : vector<16x128xf32>
    %899 = arith.subf %893, %817 : vector<16x128xf32>
    %900 = arith.mulf %899, %899 : vector<16x128xf32>
    %901 = arith.addf %898, %900 : vector<16x128xf32>
    %c0_115 = arith.constant 0 : index
    %c5_116 = arith.constant 5 : index
    %c0_117 = arith.constant 0 : index
    %c0_118 = arith.constant 0 : index
    %902 = vector.load %arg4[%c0_115, %c5_116, %c0_117, %c0_118] : memref<1x8x16x128xf32, #tpu.memory_space<vmem>>, vector<1x1x16x128xf32>
    %903 = vector.shape_cast %902 : vector<1x1x16x128xf32> to vector<16x128xf32>
    %904 = arith.mulf %901, %903 : vector<16x128xf32>
    %905 = arith.addf %757, %904 : vector<16x128xf32>
    %906 = arith.index_cast %arg0 : i32 to index
    %c90 = arith.constant 90 : index
    %907 = memref.load %arg2[%906, %c90] : memref<2x120xf32, #tpu.memory_space<smem>>
    %908 = arith.index_cast %arg0 : i32 to index
    %c91 = arith.constant 91 : index
    %909 = memref.load %arg2[%908, %c91] : memref<2x120xf32, #tpu.memory_space<smem>>
    %910 = arith.index_cast %arg0 : i32 to index
    %c92 = arith.constant 92 : index
    %911 = memref.load %arg2[%910, %c92] : memref<2x120xf32, #tpu.memory_space<smem>>
    %912 = arith.index_cast %arg0 : i32 to index
    %c93 = arith.constant 93 : index
    %913 = memref.load %arg2[%912, %c93] : memref<2x120xf32, #tpu.memory_space<smem>>
    %914 = arith.index_cast %arg0 : i32 to index
    %c94 = arith.constant 94 : index
    %915 = memref.load %arg2[%914, %c94] : memref<2x120xf32, #tpu.memory_space<smem>>
    %916 = arith.index_cast %arg0 : i32 to index
    %c95 = arith.constant 95 : index
    %917 = memref.load %arg2[%916, %c95] : memref<2x120xf32, #tpu.memory_space<smem>>
    %918 = arith.index_cast %arg0 : i32 to index
    %c96 = arith.constant 96 : index
    %919 = memref.load %arg2[%918, %c96] : memref<2x120xf32, #tpu.memory_space<smem>>
    %920 = arith.index_cast %arg0 : i32 to index
    %c97 = arith.constant 97 : index
    %921 = memref.load %arg2[%920, %c97] : memref<2x120xf32, #tpu.memory_space<smem>>
    %922 = arith.index_cast %arg0 : i32 to index
    %c98 = arith.constant 98 : index
    %923 = memref.load %arg2[%922, %c98] : memref<2x120xf32, #tpu.memory_space<smem>>
    %924 = arith.index_cast %arg0 : i32 to index
    %c99 = arith.constant 99 : index
    %925 = memref.load %arg2[%924, %c99] : memref<2x120xf32, #tpu.memory_space<smem>>
    %926 = arith.index_cast %arg0 : i32 to index
    %c100 = arith.constant 100 : index
    %927 = memref.load %arg2[%926, %c100] : memref<2x120xf32, #tpu.memory_space<smem>>
    %928 = arith.index_cast %arg0 : i32 to index
    %c101 = arith.constant 101 : index
    %929 = memref.load %arg2[%928, %c101] : memref<2x120xf32, #tpu.memory_space<smem>>
    %930 = arith.index_cast %arg0 : i32 to index
    %c102 = arith.constant 102 : index
    %931 = memref.load %arg2[%930, %c102] : memref<2x120xf32, #tpu.memory_space<smem>>
    %932 = arith.index_cast %arg0 : i32 to index
    %c103 = arith.constant 103 : index
    %933 = memref.load %arg2[%932, %c103] : memref<2x120xf32, #tpu.memory_space<smem>>
    %934 = arith.index_cast %arg0 : i32 to index
    %c104 = arith.constant 104 : index
    %935 = memref.load %arg2[%934, %c104] : memref<2x120xf32, #tpu.memory_space<smem>>
    %936 = vector.broadcast %907 : f32 to vector<16x128xf32>
    %937 = arith.subf %4, %936 : vector<16x128xf32>
    %938 = vector.broadcast %909 : f32 to vector<16x128xf32>
    %939 = arith.subf %6, %938 : vector<16x128xf32>
    %940 = vector.broadcast %911 : f32 to vector<16x128xf32>
    %941 = arith.subf %8, %940 : vector<16x128xf32>
    %942 = vector.broadcast %919 : f32 to vector<16x128xf32>
    %943 = arith.mulf %942, %937 : vector<16x128xf32>
    %944 = vector.broadcast %921 : f32 to vector<16x128xf32>
    %945 = arith.mulf %944, %939 : vector<16x128xf32>
    %946 = arith.addf %943, %945 : vector<16x128xf32>
    %947 = vector.broadcast %923 : f32 to vector<16x128xf32>
    %948 = arith.mulf %947, %941 : vector<16x128xf32>
    %949 = arith.addf %946, %948 : vector<16x128xf32>
    %950 = vector.broadcast %925 : f32 to vector<16x128xf32>
    %951 = arith.mulf %950, %937 : vector<16x128xf32>
    %952 = vector.broadcast %927 : f32 to vector<16x128xf32>
    %953 = arith.mulf %952, %939 : vector<16x128xf32>
    %954 = arith.addf %951, %953 : vector<16x128xf32>
    %955 = vector.broadcast %929 : f32 to vector<16x128xf32>
    %956 = arith.mulf %955, %941 : vector<16x128xf32>
    %957 = arith.addf %954, %956 : vector<16x128xf32>
    %958 = vector.broadcast %931 : f32 to vector<16x128xf32>
    %959 = arith.mulf %958, %937 : vector<16x128xf32>
    %960 = vector.broadcast %933 : f32 to vector<16x128xf32>
    %961 = arith.mulf %960, %939 : vector<16x128xf32>
    %962 = arith.addf %959, %961 : vector<16x128xf32>
    %963 = vector.broadcast %935 : f32 to vector<16x128xf32>
    %964 = arith.mulf %963, %941 : vector<16x128xf32>
    %965 = arith.addf %962, %964 : vector<16x128xf32>
    %966 = vector.broadcast %919 : f32 to vector<16x128xf32>
    %967 = arith.mulf %966, %10 : vector<16x128xf32>
    %968 = vector.broadcast %921 : f32 to vector<16x128xf32>
    %969 = arith.mulf %968, %12 : vector<16x128xf32>
    %970 = arith.addf %967, %969 : vector<16x128xf32>
    %971 = vector.broadcast %923 : f32 to vector<16x128xf32>
    %972 = arith.mulf %971, %14 : vector<16x128xf32>
    %973 = arith.addf %970, %972 : vector<16x128xf32>
    %974 = vector.broadcast %925 : f32 to vector<16x128xf32>
    %975 = arith.mulf %974, %10 : vector<16x128xf32>
    %976 = vector.broadcast %927 : f32 to vector<16x128xf32>
    %977 = arith.mulf %976, %12 : vector<16x128xf32>
    %978 = arith.addf %975, %977 : vector<16x128xf32>
    %979 = vector.broadcast %929 : f32 to vector<16x128xf32>
    %980 = arith.mulf %979, %14 : vector<16x128xf32>
    %981 = arith.addf %978, %980 : vector<16x128xf32>
    %982 = vector.broadcast %931 : f32 to vector<16x128xf32>
    %983 = arith.mulf %982, %10 : vector<16x128xf32>
    %984 = vector.broadcast %933 : f32 to vector<16x128xf32>
    %985 = arith.mulf %984, %12 : vector<16x128xf32>
    %986 = arith.addf %983, %985 : vector<16x128xf32>
    %987 = vector.broadcast %935 : f32 to vector<16x128xf32>
    %988 = arith.mulf %987, %14 : vector<16x128xf32>
    %989 = arith.addf %986, %988 : vector<16x128xf32>
    %990 = arith.mulf %16, %973 : vector<16x128xf32>
    %991 = arith.addf %949, %990 : vector<16x128xf32>
    %992 = arith.mulf %16, %981 : vector<16x128xf32>
    %993 = arith.addf %957, %992 : vector<16x128xf32>
    %994 = arith.mulf %16, %989 : vector<16x128xf32>
    %995 = arith.addf %965, %994 : vector<16x128xf32>
    %996 = math.absf %973 : vector<16x128xf32>
    %997 = math.absf %981 : vector<16x128xf32>
    %998 = math.absf %989 : vector<16x128xf32>
    %999 = arith.cmpf ogt, %997, %996 : vector<16x128xf32>
    %1000 = arith.select %999, %997, %996 : vector<16x128xi1>, vector<16x128xf32>
    %1001 = arith.cmpf ogt, %998, %1000 : vector<16x128xf32>
    %cst_119 = arith.constant dense<true> : vector<16x128xi1>
    %1002 = arith.xori %1001, %cst_119 : vector<16x128xi1>
    %cst_120 = arith.constant dense<true> : vector<16x128xi1>
    %1003 = arith.xori %999, %cst_120 : vector<16x128xi1>
    %1004 = arith.andi %1003, %1002 : vector<16x128xi1>
    %1005 = arith.andi %999, %1002 : vector<16x128xi1>
    %cst_121 = arith.constant 0.000000e+00 : f32
    %1006 = vector.broadcast %cst_121 : f32 to vector<16x128xf32>
    %1007 = arith.cmpf ogt, %973, %1006 : vector<16x128xf32>
    %cst_122 = arith.constant 0.000000e+00 : f32
    %1008 = arith.subf %cst_122, %913 : f32
    %1009 = vector.broadcast %913 : f32 to vector<16x128xf32>
    %1010 = vector.broadcast %1008 : f32 to vector<16x128xf32>
    %1011 = arith.select %1007, %1009, %1010 : vector<16x128xi1>, vector<16x128xf32>
    %cst_123 = arith.constant 0.000000e+00 : f32
    %1012 = vector.broadcast %cst_123 : f32 to vector<16x128xf32>
    %1013 = arith.cmpf ogt, %981, %1012 : vector<16x128xf32>
    %cst_124 = arith.constant 0.000000e+00 : f32
    %1014 = arith.subf %cst_124, %915 : f32
    %1015 = vector.broadcast %915 : f32 to vector<16x128xf32>
    %1016 = vector.broadcast %1014 : f32 to vector<16x128xf32>
    %1017 = arith.select %1013, %1015, %1016 : vector<16x128xi1>, vector<16x128xf32>
    %cst_125 = arith.constant 0.000000e+00 : f32
    %1018 = vector.broadcast %cst_125 : f32 to vector<16x128xf32>
    %1019 = arith.cmpf ogt, %989, %1018 : vector<16x128xf32>
    %cst_126 = arith.constant 0.000000e+00 : f32
    %1020 = arith.subf %cst_126, %917 : f32
    %1021 = vector.broadcast %917 : f32 to vector<16x128xf32>
    %1022 = vector.broadcast %1020 : f32 to vector<16x128xf32>
    %1023 = arith.select %1019, %1021, %1022 : vector<16x128xi1>, vector<16x128xf32>
    %1024 = vector.broadcast %913 : f32 to vector<16x128xf32>
    %1025 = arith.minimumf %991, %1024 : vector<16x128xf32>
    %cst_127 = arith.constant 0.000000e+00 : f32
    %1026 = arith.subf %cst_127, %913 : f32
    %1027 = vector.broadcast %1026 : f32 to vector<16x128xf32>
    %1028 = arith.maximumf %1025, %1027 : vector<16x128xf32>
    %1029 = arith.select %1004, %1011, %1028 : vector<16x128xi1>, vector<16x128xf32>
    %1030 = vector.broadcast %915 : f32 to vector<16x128xf32>
    %1031 = arith.minimumf %993, %1030 : vector<16x128xf32>
    %cst_128 = arith.constant 0.000000e+00 : f32
    %1032 = arith.subf %cst_128, %915 : f32
    %1033 = vector.broadcast %1032 : f32 to vector<16x128xf32>
    %1034 = arith.maximumf %1031, %1033 : vector<16x128xf32>
    %1035 = arith.select %1005, %1017, %1034 : vector<16x128xi1>, vector<16x128xf32>
    %1036 = vector.broadcast %917 : f32 to vector<16x128xf32>
    %1037 = arith.minimumf %995, %1036 : vector<16x128xf32>
    %cst_129 = arith.constant 0.000000e+00 : f32
    %1038 = arith.subf %cst_129, %917 : f32
    %1039 = vector.broadcast %1038 : f32 to vector<16x128xf32>
    %1040 = arith.maximumf %1037, %1039 : vector<16x128xf32>
    %1041 = arith.select %1001, %1023, %1040 : vector<16x128xi1>, vector<16x128xf32>
    %1042 = arith.subf %1029, %949 : vector<16x128xf32>
    %1043 = arith.mulf %1042, %1042 : vector<16x128xf32>
    %1044 = arith.subf %1035, %957 : vector<16x128xf32>
    %1045 = arith.mulf %1044, %1044 : vector<16x128xf32>
    %1046 = arith.addf %1043, %1045 : vector<16x128xf32>
    %1047 = arith.subf %1041, %965 : vector<16x128xf32>
    %1048 = arith.mulf %1047, %1047 : vector<16x128xf32>
    %1049 = arith.addf %1046, %1048 : vector<16x128xf32>
    %c0_130 = arith.constant 0 : index
    %c6_131 = arith.constant 6 : index
    %c0_132 = arith.constant 0 : index
    %c0_133 = arith.constant 0 : index
    %1050 = vector.load %arg4[%c0_130, %c6_131, %c0_132, %c0_133] : memref<1x8x16x128xf32, #tpu.memory_space<vmem>>, vector<1x1x16x128xf32>
    %1051 = vector.shape_cast %1050 : vector<1x1x16x128xf32> to vector<16x128xf32>
    %1052 = arith.mulf %1049, %1051 : vector<16x128xf32>
    %1053 = arith.addf %905, %1052 : vector<16x128xf32>
    %1054 = arith.index_cast %arg0 : i32 to index
    %c105 = arith.constant 105 : index
    %1055 = memref.load %arg2[%1054, %c105] : memref<2x120xf32, #tpu.memory_space<smem>>
    %1056 = arith.index_cast %arg0 : i32 to index
    %c106 = arith.constant 106 : index
    %1057 = memref.load %arg2[%1056, %c106] : memref<2x120xf32, #tpu.memory_space<smem>>
    %1058 = arith.index_cast %arg0 : i32 to index
    %c107 = arith.constant 107 : index
    %1059 = memref.load %arg2[%1058, %c107] : memref<2x120xf32, #tpu.memory_space<smem>>
    %1060 = arith.index_cast %arg0 : i32 to index
    %c108 = arith.constant 108 : index
    %1061 = memref.load %arg2[%1060, %c108] : memref<2x120xf32, #tpu.memory_space<smem>>
    %1062 = arith.index_cast %arg0 : i32 to index
    %c109 = arith.constant 109 : index
    %1063 = memref.load %arg2[%1062, %c109] : memref<2x120xf32, #tpu.memory_space<smem>>
    %1064 = arith.index_cast %arg0 : i32 to index
    %c110 = arith.constant 110 : index
    %1065 = memref.load %arg2[%1064, %c110] : memref<2x120xf32, #tpu.memory_space<smem>>
    %1066 = arith.index_cast %arg0 : i32 to index
    %c111 = arith.constant 111 : index
    %1067 = memref.load %arg2[%1066, %c111] : memref<2x120xf32, #tpu.memory_space<smem>>
    %1068 = arith.index_cast %arg0 : i32 to index
    %c112 = arith.constant 112 : index
    %1069 = memref.load %arg2[%1068, %c112] : memref<2x120xf32, #tpu.memory_space<smem>>
    %1070 = arith.index_cast %arg0 : i32 to index
    %c113 = arith.constant 113 : index
    %1071 = memref.load %arg2[%1070, %c113] : memref<2x120xf32, #tpu.memory_space<smem>>
    %1072 = arith.index_cast %arg0 : i32 to index
    %c114 = arith.constant 114 : index
    %1073 = memref.load %arg2[%1072, %c114] : memref<2x120xf32, #tpu.memory_space<smem>>
    %1074 = arith.index_cast %arg0 : i32 to index
    %c115 = arith.constant 115 : index
    %1075 = memref.load %arg2[%1074, %c115] : memref<2x120xf32, #tpu.memory_space<smem>>
    %1076 = arith.index_cast %arg0 : i32 to index
    %c116 = arith.constant 116 : index
    %1077 = memref.load %arg2[%1076, %c116] : memref<2x120xf32, #tpu.memory_space<smem>>
    %1078 = arith.index_cast %arg0 : i32 to index
    %c117 = arith.constant 117 : index
    %1079 = memref.load %arg2[%1078, %c117] : memref<2x120xf32, #tpu.memory_space<smem>>
    %1080 = arith.index_cast %arg0 : i32 to index
    %c118 = arith.constant 118 : index
    %1081 = memref.load %arg2[%1080, %c118] : memref<2x120xf32, #tpu.memory_space<smem>>
    %1082 = arith.index_cast %arg0 : i32 to index
    %c119 = arith.constant 119 : index
    %1083 = memref.load %arg2[%1082, %c119] : memref<2x120xf32, #tpu.memory_space<smem>>
    %1084 = vector.broadcast %1055 : f32 to vector<16x128xf32>
    %1085 = arith.subf %4, %1084 : vector<16x128xf32>
    %1086 = vector.broadcast %1057 : f32 to vector<16x128xf32>
    %1087 = arith.subf %6, %1086 : vector<16x128xf32>
    %1088 = vector.broadcast %1059 : f32 to vector<16x128xf32>
    %1089 = arith.subf %8, %1088 : vector<16x128xf32>
    %1090 = vector.broadcast %1067 : f32 to vector<16x128xf32>
    %1091 = arith.mulf %1090, %1085 : vector<16x128xf32>
    %1092 = vector.broadcast %1069 : f32 to vector<16x128xf32>
    %1093 = arith.mulf %1092, %1087 : vector<16x128xf32>
    %1094 = arith.addf %1091, %1093 : vector<16x128xf32>
    %1095 = vector.broadcast %1071 : f32 to vector<16x128xf32>
    %1096 = arith.mulf %1095, %1089 : vector<16x128xf32>
    %1097 = arith.addf %1094, %1096 : vector<16x128xf32>
    %1098 = vector.broadcast %1073 : f32 to vector<16x128xf32>
    %1099 = arith.mulf %1098, %1085 : vector<16x128xf32>
    %1100 = vector.broadcast %1075 : f32 to vector<16x128xf32>
    %1101 = arith.mulf %1100, %1087 : vector<16x128xf32>
    %1102 = arith.addf %1099, %1101 : vector<16x128xf32>
    %1103 = vector.broadcast %1077 : f32 to vector<16x128xf32>
    %1104 = arith.mulf %1103, %1089 : vector<16x128xf32>
    %1105 = arith.addf %1102, %1104 : vector<16x128xf32>
    %1106 = vector.broadcast %1079 : f32 to vector<16x128xf32>
    %1107 = arith.mulf %1106, %1085 : vector<16x128xf32>
    %1108 = vector.broadcast %1081 : f32 to vector<16x128xf32>
    %1109 = arith.mulf %1108, %1087 : vector<16x128xf32>
    %1110 = arith.addf %1107, %1109 : vector<16x128xf32>
    %1111 = vector.broadcast %1083 : f32 to vector<16x128xf32>
    %1112 = arith.mulf %1111, %1089 : vector<16x128xf32>
    %1113 = arith.addf %1110, %1112 : vector<16x128xf32>
    %1114 = vector.broadcast %1067 : f32 to vector<16x128xf32>
    %1115 = arith.mulf %1114, %10 : vector<16x128xf32>
    %1116 = vector.broadcast %1069 : f32 to vector<16x128xf32>
    %1117 = arith.mulf %1116, %12 : vector<16x128xf32>
    %1118 = arith.addf %1115, %1117 : vector<16x128xf32>
    %1119 = vector.broadcast %1071 : f32 to vector<16x128xf32>
    %1120 = arith.mulf %1119, %14 : vector<16x128xf32>
    %1121 = arith.addf %1118, %1120 : vector<16x128xf32>
    %1122 = vector.broadcast %1073 : f32 to vector<16x128xf32>
    %1123 = arith.mulf %1122, %10 : vector<16x128xf32>
    %1124 = vector.broadcast %1075 : f32 to vector<16x128xf32>
    %1125 = arith.mulf %1124, %12 : vector<16x128xf32>
    %1126 = arith.addf %1123, %1125 : vector<16x128xf32>
    %1127 = vector.broadcast %1077 : f32 to vector<16x128xf32>
    %1128 = arith.mulf %1127, %14 : vector<16x128xf32>
    %1129 = arith.addf %1126, %1128 : vector<16x128xf32>
    %1130 = vector.broadcast %1079 : f32 to vector<16x128xf32>
    %1131 = arith.mulf %1130, %10 : vector<16x128xf32>
    %1132 = vector.broadcast %1081 : f32 to vector<16x128xf32>
    %1133 = arith.mulf %1132, %12 : vector<16x128xf32>
    %1134 = arith.addf %1131, %1133 : vector<16x128xf32>
    %1135 = vector.broadcast %1083 : f32 to vector<16x128xf32>
    %1136 = arith.mulf %1135, %14 : vector<16x128xf32>
    %1137 = arith.addf %1134, %1136 : vector<16x128xf32>
    %1138 = arith.mulf %16, %1121 : vector<16x128xf32>
    %1139 = arith.addf %1097, %1138 : vector<16x128xf32>
    %1140 = arith.mulf %16, %1129 : vector<16x128xf32>
    %1141 = arith.addf %1105, %1140 : vector<16x128xf32>
    %1142 = arith.mulf %16, %1137 : vector<16x128xf32>
    %1143 = arith.addf %1113, %1142 : vector<16x128xf32>
    %1144 = math.absf %1121 : vector<16x128xf32>
    %1145 = math.absf %1129 : vector<16x128xf32>
    %1146 = math.absf %1137 : vector<16x128xf32>
    %1147 = arith.cmpf ogt, %1145, %1144 : vector<16x128xf32>
    %1148 = arith.select %1147, %1145, %1144 : vector<16x128xi1>, vector<16x128xf32>
    %1149 = arith.cmpf ogt, %1146, %1148 : vector<16x128xf32>
    %cst_134 = arith.constant dense<true> : vector<16x128xi1>
    %1150 = arith.xori %1149, %cst_134 : vector<16x128xi1>
    %cst_135 = arith.constant dense<true> : vector<16x128xi1>
    %1151 = arith.xori %1147, %cst_135 : vector<16x128xi1>
    %1152 = arith.andi %1151, %1150 : vector<16x128xi1>
    %1153 = arith.andi %1147, %1150 : vector<16x128xi1>
    %cst_136 = arith.constant 0.000000e+00 : f32
    %1154 = vector.broadcast %cst_136 : f32 to vector<16x128xf32>
    %1155 = arith.cmpf ogt, %1121, %1154 : vector<16x128xf32>
    %cst_137 = arith.constant 0.000000e+00 : f32
    %1156 = arith.subf %cst_137, %1061 : f32
    %1157 = vector.broadcast %1061 : f32 to vector<16x128xf32>
    %1158 = vector.broadcast %1156 : f32 to vector<16x128xf32>
    %1159 = arith.select %1155, %1157, %1158 : vector<16x128xi1>, vector<16x128xf32>
    %cst_138 = arith.constant 0.000000e+00 : f32
    %1160 = vector.broadcast %cst_138 : f32 to vector<16x128xf32>
    %1161 = arith.cmpf ogt, %1129, %1160 : vector<16x128xf32>
    %cst_139 = arith.constant 0.000000e+00 : f32
    %1162 = arith.subf %cst_139, %1063 : f32
    %1163 = vector.broadcast %1063 : f32 to vector<16x128xf32>
    %1164 = vector.broadcast %1162 : f32 to vector<16x128xf32>
    %1165 = arith.select %1161, %1163, %1164 : vector<16x128xi1>, vector<16x128xf32>
    %cst_140 = arith.constant 0.000000e+00 : f32
    %1166 = vector.broadcast %cst_140 : f32 to vector<16x128xf32>
    %1167 = arith.cmpf ogt, %1137, %1166 : vector<16x128xf32>
    %cst_141 = arith.constant 0.000000e+00 : f32
    %1168 = arith.subf %cst_141, %1065 : f32
    %1169 = vector.broadcast %1065 : f32 to vector<16x128xf32>
    %1170 = vector.broadcast %1168 : f32 to vector<16x128xf32>
    %1171 = arith.select %1167, %1169, %1170 : vector<16x128xi1>, vector<16x128xf32>
    %1172 = vector.broadcast %1061 : f32 to vector<16x128xf32>
    %1173 = arith.minimumf %1139, %1172 : vector<16x128xf32>
    %cst_142 = arith.constant 0.000000e+00 : f32
    %1174 = arith.subf %cst_142, %1061 : f32
    %1175 = vector.broadcast %1174 : f32 to vector<16x128xf32>
    %1176 = arith.maximumf %1173, %1175 : vector<16x128xf32>
    %1177 = arith.select %1152, %1159, %1176 : vector<16x128xi1>, vector<16x128xf32>
    %1178 = vector.broadcast %1063 : f32 to vector<16x128xf32>
    %1179 = arith.minimumf %1141, %1178 : vector<16x128xf32>
    %cst_143 = arith.constant 0.000000e+00 : f32
    %1180 = arith.subf %cst_143, %1063 : f32
    %1181 = vector.broadcast %1180 : f32 to vector<16x128xf32>
    %1182 = arith.maximumf %1179, %1181 : vector<16x128xf32>
    %1183 = arith.select %1153, %1165, %1182 : vector<16x128xi1>, vector<16x128xf32>
    %1184 = vector.broadcast %1065 : f32 to vector<16x128xf32>
    %1185 = arith.minimumf %1143, %1184 : vector<16x128xf32>
    %cst_144 = arith.constant 0.000000e+00 : f32
    %1186 = arith.subf %cst_144, %1065 : f32
    %1187 = vector.broadcast %1186 : f32 to vector<16x128xf32>
    %1188 = arith.maximumf %1185, %1187 : vector<16x128xf32>
    %1189 = arith.select %1149, %1171, %1188 : vector<16x128xi1>, vector<16x128xf32>
    %1190 = arith.subf %1177, %1097 : vector<16x128xf32>
    %1191 = arith.mulf %1190, %1190 : vector<16x128xf32>
    %1192 = arith.subf %1183, %1105 : vector<16x128xf32>
    %1193 = arith.mulf %1192, %1192 : vector<16x128xf32>
    %1194 = arith.addf %1191, %1193 : vector<16x128xf32>
    %1195 = arith.subf %1189, %1113 : vector<16x128xf32>
    %1196 = arith.mulf %1195, %1195 : vector<16x128xf32>
    %1197 = arith.addf %1194, %1196 : vector<16x128xf32>
    %c0_145 = arith.constant 0 : index
    %c7_146 = arith.constant 7 : index
    %c0_147 = arith.constant 0 : index
    %c0_148 = arith.constant 0 : index
    %1198 = vector.load %arg4[%c0_145, %c7_146, %c0_147, %c0_148] : memref<1x8x16x128xf32, #tpu.memory_space<vmem>>, vector<1x1x16x128xf32>
    %1199 = vector.shape_cast %1198 : vector<1x1x16x128xf32> to vector<16x128xf32>
    %1200 = arith.mulf %1197, %1199 : vector<16x128xf32>
    %1201 = arith.addf %1053, %1200 : vector<16x128xf32>
    %1202 = vector.extract_strided_slice %1201 {offsets = [0, 0], sizes = [8, 128], strides = [1, 1]} : vector<16x128xf32> to vector<8x128xf32>
    %1203 = vector.extract_strided_slice %1201 {offsets = [8, 0], sizes = [8, 128], strides = [1, 1]} : vector<16x128xf32> to vector<8x128xf32>
    %1204 = arith.addf %1202, %1203 : vector<8x128xf32>
    %c0_149 = arith.constant 0 : index
    %c0_150 = arith.constant 0 : index
    %c0_151 = arith.constant 0 : index
    %1205 = vector.load %arg5[%c0_149, %c0_150, %c0_151] : memref<1x8x128xf32, #tpu.memory_space<vmem>>, vector<1x8x128xf32>
    %1206 = vector.shape_cast %1205 : vector<1x8x128xf32> to vector<8x128xf32>
    %1207 = arith.addf %1206, %1204 : vector<8x128xf32>
    %c0_152 = arith.constant 0 : index
    %c0_153 = arith.constant 0 : index
    %c0_154 = arith.constant 0 : index
    %1208 = vector.load %arg5[%c0_152, %c0_153, %c0_154] : memref<1x8x128xf32, #tpu.memory_space<vmem>>, vector<1x8x128xf32>
    %1209 = vector.shape_cast %1208 : vector<1x8x128xf32> to vector<8x128xf32>
    %1210 = vector.shape_cast %1207 : vector<8x128xf32> to vector<1x8x128xf32>
    tpu.vector_store %arg5[%c0_152, %c0_153, %c0_154], %1210 {strides = array<i32>} : memref<1x8x128xf32, #tpu.memory_space<vmem>>, vector<1x8x128xf32>,
    return
  }
  func.func @transform_0(%arg0: i32, %arg1: i32, %arg2: memref<2x120xf32, #tpu.memory_space<smem>>) -> (i32, i32, i32, i32) {
    %c0_i32 = arith.constant 0 : i32
    %c0_i32_0 = arith.constant 0 : i32
    %c0_i32_1 = arith.constant 0 : i32
    return %arg0, %c0_i32, %arg1, %c0_i32_0 : i32, i32, i32, i32
  }
  func.func @transform_1(%arg0: i32, %arg1: i32, %arg2: memref<2x120xf32, #tpu.memory_space<smem>>) -> (i32, i32, i32, i32) {
    %c0_i32 = arith.constant 0 : i32
    %c0_i32_0 = arith.constant 0 : i32
    %c0_i32_1 = arith.constant 0 : i32
    return %arg0, %c0_i32, %arg1, %c0_i32_0 : i32, i32, i32, i32
  }
  func.func @transform_2(%arg0: i32, %arg1: i32, %arg2: memref<2x120xf32, #tpu.memory_space<smem>>) -> (i32, i32, i32) {
    %c0_i32 = arith.constant 0 : i32
    %c0_i32_0 = arith.constant 0 : i32
    %c0_i32_1 = arith.constant 0 : i32
    return %arg0, %c0_i32, %c0_i32_0 : i32, i32, i32
  }
}

</mosaic_0001>

<bundles_post_ra>
// kernel: compute_REC_pallas.1
= control target key start
LH: loop header
LB: loop body
LE: loop exit
PB: predicated region body
PF: predicated region fallthrough
CT: control target
= control target key end

     0   :  { %s4449_s0 = inlined_call_operand.vmem [shape: f32[2,120], index: 0, kind: input, shape index: {}]   ;;  %s4450_s1 = inlined_call_operand.vmem [shape: f32[2,7,32,128], index: 1, kind: input, shape index: {}]   ;;  %s4451_s2 = inlined_call_operand.vmem [shape: f32[2,8,32,128], index: 2, kind: input, shape index: {}]   ;;  %s4452_s3 = inlined_call_operand.vmem [shape: f32[2,8,128], index: 3, kind: output, shape index: {}]  }
   0x1   :  { %s8_s14 = sshll.u32 %s4449_s0, 4  ;;  %s9_s14 = int_to_ptr.vmem [resolvable:$true] %s8_s14 }
   0x2   :  { %s2246_s15 = scalar_lea.vmem %s9_s14, 32  ;;  %p2251_p1 = scmp.lt.s32.totalorder %s9_s14, %s9_s14 }
   0x3   :  { %p2247_p0 = scmp.ne.s32.totalorder %s9_s14, %s2246_s15  ;;  %p2252_p2 = scmp.lt.s32.totalorder %s2246_s15, %s2246_s15 }
   0x5   :  { %p2253_p3 = por %p2252_p2, %p2251_p1 }
   0x7   :  { %p2254_p4 = pnand %p2253_p3, %p2247_p0 }
   0x9   :  { %2257 = shalt.err (!%p2254_p4)  }
   0xa   :  { %s2316_s16 = smov [#allocation3]  }
   0xb   :  { %11 = dma.vmem_to_smem %s9_s14, 32, %s2316_s16, [#allocation2] }
   0xc   :  { %2286 = dma.done.wait [#allocation2], 32 }
   0xd   :  { %2287 = vsyncadd [#allocation2], 4294967264 }
   0xe   :  { %13 = sfence }
   0xf   :  { %s2342_s17 = smov 0   ;;  %s2344_s18 = smov 0  }
  0x10   :  { %s2346_s19 = smov 0   ;;  %s2348_s0 = smov 0  }
  0x11   :  { %s2350_s20 = smov 0   ;;  %s2352_s21 = smov 0  }
  0x12   :  { %s2354_s22 = smov 0  }
  0x13 LB: > { %s28_s23 = sadd.s32 1, %s2306_s20  ;;  %s31_s24 = sadd.s32 1, %s2310_s21  ;;  %s2314_s22 = sphi %s2354_s22, %s19_s22   ;;  %s2310_s21 = sphi %s2352_s21, %s4587_s21   ;;  %s2306_s20 = sphi %s2350_s20, %s4586_s20   ;;  %s2302_s0 = sphi %s2348_s0, %s4585_s0   ;;  %s2298_s19 = sphi %s2346_s19, %s4584_s19   ;;  %s2294_s18 = sphi %s2344_s18, %s4583_s18   ;;  %s2290_s17 = sphi %s2342_s17, %s4582_s17  }
  0x14   : > { %p29_p5 = scmp.ge.s32.totalorder %s28_s23, 2  ;;  %p47_p6 = scmp.ne.s32.totalorder %s2294_s18, %s2290_s17 }
  0x15   : > { %p48_p7 = scmp.eq.s32.totalorder %s2314_s22, 0  ;;  %s40_s29 = sadd.s32 1, %s2294_s18 }
  0x16   : > { %s4589_s23 = smov (%p29_p5, %s28_s23), 0  ;;  %s4591_s24 = smov (!%p29_p5, %s31_s24), %s2310_s21 }
  0x17   : > { %p2385_p8 = por %p48_p7, %p47_p6  ;;  %p33_p9 = scmp.ge.s32.totalorder %s4591_s24, 2 }
  0x18   : > { %s36_s26 = ssub.s32 %s2306_s20, %s4589_s23  ;;  %p2116_p11 = scmp.ge.s32.totalorder %s2314_s22, 4 }
  0x19   : > { %s4593_s24 = smov (%p33_p9, %s4591_s24), 0 }
  0x1a   : > { %s35_s27 = ssub.s32 %s2310_s21, %s4593_s24  ;;  %127 = sbr.rel (%p2116_p11) target bundleno = 61 (0x3d), region = 16 }
  0x1b   : > { %s37_s28 = sor.u32 %s36_s26, %s35_s27 }
  0x1c   : > { %p38_p10 = scmp.eq.s32.totalorder %s37_s28, 0 }
  0x1e   : > { %s2397_s30 = scalar_select %p38_p10, %s2294_s18, %s40_s29  }
  0x1f   : > { %130 = sbr.rel (!%p2385_p8) target bundleno = 46 (0x2e), region = 20  ;;  %s132_s4 = sand.u32 (%p2385_p8), 1, %s2294_s18  }
  0x20   : > { %s2156_s5 = smul.u32 (%p2385_p8), 112, %s132_s4  ;;  %s2117_s6 = sshll.u32 (%p2385_p8), %s2306_s20, 1 }
  0x21   : > { %s2157_s7 = smul.u32 (%p2385_p8), 28, %s2310_s21 }
  0x22   : > { %s134_s13 = scalar_lea.vmem (%p2385_p8), [#allocation4], %s2156_s5 }
  0x23   : > { %s137_s8 = sadd.s32 (%p2385_p8), %s2157_s7, %s2117_s6 }
  0x24   : > { %s2118_s9 = sshll.u32 %s137_s8, 3 }
  0x25   : > { %s139_s12 = scalar_lea.vmem %s4450_s1, %s2118_s9 }
  0x26   : > { %v194_v0 = vld [vmem:[%s139_s12] sm:$0xff]  ;;  %v196_v1 = vld [vmem:[%s139_s12 + $0x8] sm:$0xff] }
  0x27   : > { %v198_v2 = vld [vmem:[%s139_s12 + $0x20] sm:$0xff]  ;;  %195 = vst [vmem:[%s134_s13] sm:$0xff] %v194_v0  ;;  %197 = vst [vmem:[%s134_s13 + $0x8] sm:$0xff] %v196_v1  ;;  %v200_v3 = vld [vmem:[%s139_s12 + $0x28] sm:$0xff] }
  0x28   : > { %199 = vst [vmem:[%s134_s13 + $0x10] sm:$0xff] %v198_v2  ;;  %v202_v4 = vld [vmem:[%s139_s12 + $0x40] sm:$0xff]  ;;  %v204_v5 = vld [vmem:[%s139_s12 + $0x48] sm:$0xff]  ;;  %201 = vst [vmem:[%s134_s13 + $0x18] sm:$0xff] %v200_v3 }
  0x29   : > { %203 = vst [vmem:[%s134_s13 + $0x20] sm:$0xff] %v202_v4  ;;  %205 = vst [vmem:[%s134_s13 + $0x28] sm:$0xff] %v204_v5  ;;  %v206_v6 = vld [vmem:[%s139_s12 + $0x60] sm:$0xff]  ;;  %v208_v7 = vld [vmem:[%s139_s12 + $0x68] sm:$0xff] }
  0x2a   : > { %v210_v8 = vld [vmem:[%s139_s12 + $0x80] sm:$0xff]  ;;  %207 = vst [vmem:[%s134_s13 + $0x30] sm:$0xff] %v206_v6  ;;  %209 = vst [vmem:[%s134_s13 + $0x38] sm:$0xff] %v208_v7  ;;  %v212_v9 = vld [vmem:[%s139_s12 + $0x88] sm:$0xff] }
  0x2b   : > { %211 = vst [vmem:[%s134_s13 + $0x40] sm:$0xff] %v210_v8  ;;  %v214_v10 = vld [vmem:[%s139_s12 + $0xa0] sm:$0xff]  ;;  %v216_v11 = vld [vmem:[%s139_s12 + $0xa8] sm:$0xff]  ;;  %213 = vst [vmem:[%s134_s13 + $0x48] sm:$0xff] %v212_v9 }
  0x2c   : > { %215 = vst [vmem:[%s134_s13 + $0x50] sm:$0xff] %v214_v10  ;;  %217 = vst [vmem:[%s134_s13 + $0x58] sm:$0xff] %v216_v11  ;;  %v218_v12 = vld [vmem:[%s139_s12 + $0xc0] sm:$0xff]  ;;  %v220_v13 = vld [vmem:[%s139_s12 + $0xc8] sm:$0xff] }
  0x2d   : > { %219 = vst [vmem:[%s134_s13 + $0x60] sm:$0xff] %v218_v12  ;;  %221 = vst [vmem:[%s134_s13 + $0x68] sm:$0xff] %v220_v13 }
  0x2e PF: > { %227 = sbr.rel (!%p2385_p8) target bundleno = 61 (0x3d), region = 58  ;;  %s229_s14 = sand.u32 (%p2385_p8), 1, %s2294_s18  }
  0x2f   : > { %s2120_s15 = sshll.u32 (%p2385_p8), %s2306_s20, 1  ;;  %s2119_s16 = sshll.u32 (%p2385_p8), %s229_s14, 7 }
  0x30   : > { %s2121_s26 = sshll.u32 (%p2385_p8), %s2310_s21, 5  ;;  %s231_s25 = scalar_lea.vmem (%p2385_p8), [#allocation5], %s2119_s16 }
  0x31   : > { %s234_s27 = sadd.s32 (%p2385_p8), %s2121_s26, %s2120_s15 }
  0x32   : > { %s2122_s28 = sshll.u32 (%p2385_p8), %s234_s27, 3 }
  0x33   : > { %s2416_s5 = scalar_lea.vmem %s4451_s2, %s2122_s28 }
  0x34   : > { %v295_v14 = vld [vmem:[%s2416_s5] sm:$0xff]  ;;  %v297_v15 = vld [vmem:[%s2416_s5 + $0x8] sm:$0xff] }
  0x35   : > { %v299_v16 = vld [vmem:[%s2416_s5 + $0x20] sm:$0xff]  ;;  %296 = vst [vmem:[%s231_s25] sm:$0xff] %v295_v14  ;;  %298 = vst [vmem:[%s231_s25 + $0x8] sm:$0xff] %v297_v15  ;;  %v301_v17 = vld [vmem:[%s2416_s5 + $0x28] sm:$0xff] }
  0x36   : > { %300 = vst [vmem:[%s231_s25 + $0x10] sm:$0xff] %v299_v16  ;;  %v303_v18 = vld [vmem:[%s2416_s5 + $0x40] sm:$0xff]  ;;  %v305_v19 = vld [vmem:[%s2416_s5 + $0x48] sm:$0xff]  ;;  %302 = vst [vmem:[%s231_s25 + $0x18] sm:$0xff] %v301_v17 }
  0x37   : > { %304 = vst [vmem:[%s231_s25 + $0x20] sm:$0xff] %v303_v18  ;;  %306 = vst [vmem:[%s231_s25 + $0x28] sm:$0xff] %v305_v19  ;;  %v307_v20 = vld [vmem:[%s2416_s5 + $0x60] sm:$0xff]  ;;  %v309_v21 = vld [vmem:[%s2416_s5 + $0x68] sm:$0xff] }
  0x38   : > { %v311_v22 = vld [vmem:[%s2416_s5 + $0x80] sm:$0xff]  ;;  %308 = vst [vmem:[%s231_s25 + $0x30] sm:$0xff] %v307_v20  ;;  %310 = vst [vmem:[%s231_s25 + $0x38] sm:$0xff] %v309_v21  ;;  %v313_v23 = vld [vmem:[%s2416_s5 + $0x88] sm:$0xff] }
  0x39   : > { %312 = vst [vmem:[%s231_s25 + $0x40] sm:$0xff] %v311_v22  ;;  %v315_v24 = vld [vmem:[%s2416_s5 + $0xa0] sm:$0xff]  ;;  %v317_v25 = vld [vmem:[%s2416_s5 + $0xa8] sm:$0xff]  ;;  %314 = vst [vmem:[%s231_s25 + $0x48] sm:$0xff] %v313_v23 }
  0x3a   : > { %316 = vst [vmem:[%s231_s25 + $0x50] sm:$0xff] %v315_v24  ;;  %318 = vst [vmem:[%s231_s25 + $0x58] sm:$0xff] %v317_v25  ;;  %v319_v26 = vld [vmem:[%s2416_s5 + $0xc0] sm:$0xff]  ;;  %v321_v27 = vld [vmem:[%s2416_s5 + $0xc8] sm:$0xff] }
  0x3b   : > { %v323_v28 = vld [vmem:[%s2416_s5 + $0xe0] sm:$0xff]  ;;  %320 = vst [vmem:[%s231_s25 + $0x60] sm:$0xff] %v319_v26  ;;  %322 = vst [vmem:[%s231_s25 + $0x68] sm:$0xff] %v321_v27  ;;  %v325_v29 = vld [vmem:[%s2416_s5 + $0xe8] sm:$0xff] }
  0x3c   : > { %324 = vst [vmem:[%s231_s25 + $0x70] sm:$0xff] %v323_v28  ;;  %326 = vst [vmem:[%s231_s25 + $0x78] sm:$0xff] %v325_v29 }
  0x3d PF: > { %p2123_p12 = scmp.ge.s32.totalorder %s2314_s22, 1  ;;  %p331_p13 = scmp.lt.s32.totalorder %s2314_s22, 5 }
  0x3f   : > { %p332_p0 = pnand %p2123_p12, %p331_p13 }
  0x40   : > { %s338_s6 = sand.u32 (!%p332_p0), 1, %s2290_s17   ;;  %p371_p1 = scmp.lt.s32.totalorder (!%p332_p0), %s2302_s0, 1 }
  0x41   : > { %335 = sbr.rel (%p332_p0) target bundleno = 416 (0x1a0), region = 96  ;;  %s2124_s8 = sshll.u32 (!%p332_p0), %s338_s6, 7 }
  0x42   : > { %s2158_s7 = smul.u32 (!%p332_p0), 112, %s338_s6  ;;  %s2446_s15 = scalar_lea.vmem (!%p332_p0), [#allocation5], %s2124_s8 }
  0x43   : > { %p2126_p2 = scmp.ne.s32.totalorder (!%p332_p0), %s2298_s19, 0 }
  0x44   : > { %s2444_s14 = scalar_lea.vmem (!%p332_p0), [#allocation4], %s2158_s7 }
  0x46   : > { %s372_s9 = scalar_select %p371_p1, %s2302_s0, 1 }
  0x47   : > { %378 = sbr.rel (%p2126_p2) target bundleno = 78 (0x4e), region = 108 }
  0x48   : > { %s2125_s10 = sshll.u32 %s372_s9, 3 }
  0x49   : > { %s2442_s13 = scalar_lea.vmem %s4452_s3, %s2125_s10 }
  0x4c   : > { %v2317_v30 = vmov 0.0  }
  0x4d   : > { %379 = vst [vmem:[%s2442_s13] sm:$0xff] %v2317_v30 }
  0x4e PF: > { %s2451_s17 = sshll.u32 %s2302_s0, 7  ;;  %v2471_v31 = vld [vmem:[%s2444_s14] sm:$0xff]  ;;  %v2474_v32 = vld [vmem:[%s2444_s14 + $0x8] sm:$0xff]  ;;  %v2480_v34 = vld [vmem:[%s2444_s14 + $0x10] sm:$0xff]  ;;  %vm2318_vm4 = vmmov 1  }
  0x4f   : > { %s401_s16 = sld [smem:[#allocation3 + %s2451_s17]]  ;;  %s402_s19 = sadd.s32 1, %s2451_s17  ;;  %v2483_v35 = vld [vmem:[%s2444_s14 + $0x18] sm:$0xff]  ;;  %v2490_v37 = vld [vmem:[%s2444_s14 + $0x20] sm:$0xff]  ;;  %v2493_v38 = vld [vmem:[%s2444_s14 + $0x28] sm:$0xff] }
  0x50   : > { %s2455_s26 = sld [smem:[#allocation3 + %s402_s19]]  ;;  %s404_s27 = sadd.s32 2, %s2451_s17  ;;  %v2505_v42 = vld [vmem:[%s2444_s14 + $0x30] sm:$0xff]  ;;  %v2513_v45 = vld [vmem:[%s2444_s14 + $0x38] sm:$0xff]  ;;  %v2516_v46 = vld [vmem:[%s2444_s14 + $0x40] sm:$0xff] }
  0x51   : > { %s2458_s28 = sld [smem:[#allocation3 + %s404_s27]]  ;;  %s406_s0 = sadd.s32 3, %s2451_s17  ;;  %v2542_v57 = vld [vmem:[%s2444_s14 + $0x48] sm:$0xff]  ;;  %v2560_v18 = vld [vmem:[%s2444_s14 + $0x50] sm:$0xff]  ;;  %v2563_v19 = vld [vmem:[%s2444_s14 + $0x58] sm:$0xff] }
  0x52   : > { %s2461_s29 = sld [smem:[#allocation3 + %s406_s0]]  ;;  %s408_s4 = sadd.s32 4, %s2451_s17 }
  0x53   : > { %s2464_s5 = sld [smem:[#allocation3 + %s408_s4]]  ;;  %s410_s25 = sadd.s32 5, %s2451_s17 }
  0x54   : > { %s2467_s6 = sld [smem:[#allocation3 + %s410_s25]]  ;;  %s412_s7 = sadd.s32 6, %s2451_s17 }
  0x55   : > { %s2476_s8 = sld [smem:[#allocation3 + %s412_s7]]  ;;  %s414_s9 = sadd.s32 7, %s2451_s17  ;;  %v430_v33 = vstv %s401_s16 }
  0x56   : > { %s2485_s10 = sld [smem:[#allocation3 + %s414_s9]]  ;;  %s416_s11 = sadd.s32 8, %s2451_s17  ;;  %v433_v36 = vstv %s2455_s26  ;;  %v431_v40 = vsub.f32 %v2471_v31, %v430_v33  ;;  %v432_v41 = vsub.f32 %v2474_v32, %v430_v33 }
  0x57   : > { %s2495_s12 = sld [smem:[#allocation3 + %s416_s11]]  ;;  %s418_s19 = sadd.s32 9, %s2451_s17  ;;  %v436_v39 = vstv %s2458_s28  ;;  %v434_v43 = vsub.f32 %v2480_v34, %v433_v36  ;;  %v435_v44 = vsub.f32 %v2483_v35, %v433_v36 }
  0x58   : > { %s2499_s16 = sld [smem:[#allocation3 + %s418_s19]]  ;;  %s420_s27 = sadd.s32 10, %s2451_s17  ;;  %v437_v47 = vsub.f32 %v2490_v37, %v436_v39  ;;  %v438_v48 = vsub.f32 %v2493_v38, %v436_v39  ;;  %v2528_v50 = vstv %s2461_s29 }
  0x59   : > { %s2507_s26 = sld [smem:[#allocation3 + %s420_s27]]  ;;  %s422_s0 = sadd.s32 11, %s2451_s17  ;;  %v2531_v51 = vstv %s2464_s5 }
  0x5a   : > { %s2518_s28 = sld [smem:[#allocation3 + %s422_s0]]  ;;  %s424_s4 = sadd.s32 12, %s2451_s17  ;;  %v2534_v52 = vstv %s2467_s6 }
  0x5b   : > { %s2523_s25 = sld [smem:[#allocation3 + %s424_s4]]  ;;  %s426_s7 = sadd.s32 13, %s2451_s17  ;;  %v439_v49 = vstv %s2476_s8 }
  0x5c   : > { %s2536_s9 = sld [smem:[#allocation3 + %s426_s7]]  ;;  %s428_s11 = sadd.s32 14, %s2451_s17  ;;  %v440_v53 = vmul.f32 %v439_v49, %v431_v40  ;;  %v441_v54 = vmul.f32 %v439_v49, %v432_v41  ;;  %v442_v55 = vstv %s2485_s10  ;;  %v478_v56 = vmul.f32 %v2505_v42, %v439_v49 }
  0x5d   : > { %s2544_s8 = sld [smem:[#allocation3 + %s428_s11]]  ;;  %v443_v58 = vmul.f32 %v442_v55, %v434_v43  ;;  %v444_v59 = vmul.f32 %v442_v55, %v435_v44  ;;  %v447_v60 = vstv %s2495_s12  ;;  %v479_v61 = vmul.f32 %v2513_v45, %v439_v49  ;;  %s601_s10 = sadd.s32 15, %s2451_s17 }
  0x5e   : > { %v448_v62 = vmul.f32 %v447_v60, %v437_v47  ;;  %v449_v63 = vmul.f32 %v447_v60, %v438_v48  ;;  %v452_v0 = vstv %s2499_s16  ;;  %v480_v1 = vmul.f32 %v2516_v46, %v442_v55  ;;  %s542_s12 = ssub.f32 0.0, %s2461_s29  ;;  %s603_s19 = sadd.s32 16, %s2451_s17 }
  0x5f   : > { %v445_v2 = vadd.f32 %v443_v58, %v440_v53  ;;  %v446_v3 = vadd.f32 %v444_v59, %v441_v54  ;;  %v453_v4 = vmul.f32 %v452_v0, %v431_v40  ;;  %v454_v5 = vmul.f32 %v452_v0, %v432_v41  ;;  %v2584_v58 = vld [vmem:[%s2444_s14 + $0x68] sm:$0xff]  ;;  %s549_s16 = ssub.f32 0.0, %s2464_s5  ;;  %s615_s0 = sadd.s32 22, %s2451_s17 }
  0x60   : > { %v455_v6 = vstv %s2507_s26  ;;  %v460_v7 = vstv %s2518_s28  ;;  %v481_v8 = vmul.f32 %v2542_v57, %v442_v55  ;;  %v482_v9 = vadd.f32 %v480_v1, %v478_v56  ;;  %v2581_v56 = vld [vmem:[%s2444_s14 + $0x60] sm:$0xff]  ;;  %s2608_s27 = sld [smem:[#allocation3 + %s601_s10]]  ;;  %s605_s26 = sadd.s32 17, %s2451_s17 }
  0x61   : > { %v2553_v10 = vadd.f32 %v448_v62, %v445_v2  ;;  %v2555_v11 = vadd.f32 %v449_v63, %v446_v3  ;;  %v456_v12 = vmul.f32 %v455_v6, %v434_v43  ;;  %v457_v13 = vmul.f32 %v455_v6, %v435_v44  ;;  %s2618_s29 = sld [smem:[#allocation3 + %s603_s19]]  ;;  %s617_s4 = sadd.s32 23, %s2451_s17 }
  0x62   : > { %v461_v14 = vmul.f32 %v460_v7, %v437_v47  ;;  %v462_v15 = vmul.f32 %v460_v7, %v438_v48  ;;  %v465_v16 = vstv %s2523_s25  ;;  %v468_v17 = vstv %s2536_s9  ;;  %s556_s5 = ssub.f32 0.0, %s2467_s6  ;;  %s613_s6 = sadd.s32 21, %s2451_s17 }
  0x63   : > { %v458_v20 = vadd.f32 %v456_v12, %v453_v4  ;;  %v459_v21 = vadd.f32 %v457_v13, %v454_v5  ;;  %v466_v22 = vmul.f32 %v465_v16, %v431_v40  ;;  %v467_v23 = vmul.f32 %v465_v16, %v432_v41  ;;  %s2679_s28 = sld [smem:[#allocation3 + %s605_s26]]  ;;  %s619_s7 = sadd.s32 24, %s2451_s17 }
  0x64   : > { %v469_v24 = vmul.f32 %v468_v17, %v434_v43  ;;  %v470_v25 = vmul.f32 %v468_v17, %v435_v44  ;;  %v473_v26 = vstv %s2544_s8  ;;  %v483_v27 = vadd.f32 %v481_v8, %v479_v61  ;;  %s2690_s25 = sld [smem:[#allocation3 + %s613_s6]]  ;;  %s621_s8 = sadd.s32 25, %s2451_s17 }
  0x65   : > { %v2566_v28 = vadd.f32 %v461_v14, %v458_v20  ;;  %v2568_v29 = vadd.f32 %v462_v15, %v459_v21  ;;  %v474_v30 = vmul.f32 %v473_v26, %v437_v47  ;;  %v475_v33 = vmul.f32 %v473_v26, %v438_v48  ;;  %s2698_s9 = sld [smem:[#allocation3 + %s615_s0]]  ;;  %s625_s19 = sadd.s32 27, %s2451_s17 }
  0x66   : > { %v471_v36 = vadd.f32 %v469_v24, %v466_v22  ;;  %v472_v39 = vadd.f32 %v470_v25, %v467_v23  ;;  %v484_v49 = vmul.f32 %v2560_v18, %v447_v60  ;;  %v485_v53 = vmul.f32 %v2563_v19, %v447_v60  ;;  %s2704_s11 = sld [smem:[#allocation3 + %s617_s4]]  ;;  %s629_s26 = sadd.s32 29, %s2451_s17 }
  0x67   : > { %v488_v40 = vmul.f32 %v2505_v42, %v452_v0  ;;  %v489_v41 = vmul.f32 %v2513_v45, %v452_v0  ;;  %v490_v43 = vmul.f32 %v2516_v46, %v455_v6  ;;  %v491_v44 = vmul.f32 %v2542_v57, %v455_v6  ;;  %s2719_s10 = sld [smem:[#allocation3 + %s619_s7]]  ;;  %s609_s4 = sadd.s32 19, %s2451_s17 }
  0x68   : > { %v2576_v54 = vadd.f32 %v474_v30, %v471_v36  ;;  %v2578_v55 = vadd.f32 %v475_v33, %v472_v39  ;;  %v486_v47 = vadd.f32 %v484_v49, %v482_v9  ;;  %v487_v48 = vadd.f32 %v485_v53, %v483_v27  ;;  %s2750_s0 = sld [smem:[#allocation3 + %s629_s26]]  ;;  %s815_s26 = sadd.s32 36, %s2451_s17 }
  0x69   : > { %v492_v59 = vadd.f32 %v490_v43, %v488_v40  ;;  %v493_v60 = vadd.f32 %v491_v44, %v489_v41  ;;  %v494_v61 = vmul.f32 %v2560_v18, %v460_v7  ;;  %v495_v62 = vmul.f32 %v2563_v19, %v460_v7  ;;  %s2789_s7 = sld [smem:[#allocation3 + %s609_s4]] }
  0x6a   : > { %v498_v63 = vmul.f32 %v2505_v42, %v465_v16  ;;  %v499_v0 = vmul.f32 %v2513_v45, %v465_v16  ;;  %v500_v1 = vmul.f32 %v2516_v46, %v468_v17  ;;  %v501_v2 = vmul.f32 %v2542_v57, %v468_v17  ;;  %s2909_s4 = sld [smem:[#allocation3 + %s815_s26]] }
  0x6b   : > { %v496_v3 = vadd.f32 %v494_v61, %v492_v59  ;;  %v497_v4 = vadd.f32 %v495_v62, %v493_v60  ;;  %v504_v5 = vmul.f32 %v2560_v18, %v473_v26  ;;  %v505_v6 = vmul.f32 %v2563_v19, %v473_v26 }
  0x6c   : > { %v502_v8 = vadd.f32 %v500_v1, %v498_v63  ;;  %v503_v9 = vadd.f32 %v501_v2, %v499_v0  ;;  %v508_v7 = vmul.f32 %v2581_v56, %v486_v47  ;;  %v509_v12 = vmul.f32 %v2584_v58, %v487_v48 }
  0x6d   : > { %v512_v13 = vmul.f32 %v2581_v56, %v496_v3  ;;  %v513_v14 = vmul.f32 %v2584_v58, %v497_v4  ;;  %v520_v15 = vand.u32 2147483647, %v486_v47  ;;  %v521_v16 = vand.u32 2147483647, %v487_v48 }
  0x6e   : > { %v506_v17 = vadd.f32 %v504_v5, %v502_v8  ;;  %v507_v20 = vadd.f32 %v505_v6, %v503_v9  ;;  %v510_v21 = vadd.f32 %v508_v7, %v2553_v10  ;;  %v511_v22 = vadd.f32 %v509_v12, %v2555_v11 }
  0x6f   : > { %v514_v23 = vadd.f32 %v512_v13, %v2566_v28  ;;  %v515_v24 = vadd.f32 %v513_v14, %v2568_v29  ;;  %v522_v25 = vand.u32 2147483647, %v496_v3  ;;  %v523_v26 = vand.u32 2147483647, %v497_v4 }
  0x70   : > { %v516_v27 = vmul.f32 %v2581_v56, %v506_v17  ;;  %v517_v30 = vmul.f32 %v2584_v58, %v507_v20  ;;  %v524_v33 = vand.u32 2147483647, %v506_v17  ;;  %v525_v36 = vand.u32 2147483647, %v507_v20 }
  0x71   : > { %vm2610_vm0 = vcmp.gt.f32.partialorder %v522_v25, %v520_v15  ;;  %vm2614_vm1 = vcmp.gt.f32.partialorder %v523_v26, %v521_v16  ;;  %vm540_vm2 = vcmp.gt.f32.partialorder %v486_v47, 0.0  ;;  %vm541_vm3 = vcmp.gt.f32.partialorder %v487_v48, 0.0 }
  0x72   : > { %v518_v53 = vadd.f32 %v516_v27, %v2576_v54  ;;  %v519_v40 = vadd.f32 %v517_v30, %v2578_v55  ;;  %v528_v41 = vsel %vm2610_vm0, %v522_v25, %v520_v15  ;;  %v529_v43 = vsel %vm2614_vm1, %v523_v26, %v521_v16  ;;  %vm2629_vm5 = vmxor %vm2610_vm0, %vm2318_vm4 }
  0x73   : > { %vm2634_vm6 = vcmp.gt.f32.partialorder %v524_v33, %v528_v41  ;;  %vm2638_vm7 = vcmp.gt.f32.partialorder %v525_v36, %v529_v43  ;;  %vm2645_vm8 = vmxor %vm2614_vm1, %vm2318_vm4  ;;  %v544_v62 = vstv %s542_s12  ;;  %vm547_vm9 = vcmp.gt.f32.partialorder %v496_v3, 0.0  ;;  %s623_s12 = sadd.s32 26, %s2451_s17 }
  0x74   : > { %vm2653_vm10 = vmxor %vm2634_vm6, %vm2318_vm4  ;;  %v545_v0 = vsel %vm540_vm2, %v2528_v50, %v544_v62  ;;  %v546_v1 = vsel %vm541_vm3, %v2528_v50, %v544_v62  ;;  %vm548_vm11 = vcmp.gt.f32.partialorder %v497_v4, 0.0  ;;  %v551_v2 = vstv %s549_s16  ;;  %s2732_s16 = sld [smem:[#allocation3 + %s621_s8]]  ;;  %s803_s8 = sadd.s32 30, %s2451_s17 }
  0x75   : > { %vm2665_vm12 = vmxor %vm2638_vm7, %vm2318_vm4  ;;  %v552_v5 = vsel %vm547_vm9, %v2531_v51, %v551_v2  ;;  %v553_v6 = vsel %vm548_vm11, %v2531_v51, %v551_v2  ;;  %vm554_vm13 = vcmp.gt.f32.partialorder %v506_v17, 0.0  ;;  %vm555_vm14 = vcmp.gt.f32.partialorder %v507_v20, 0.0 }
  0x76   : > { %vm536_vm15 = vmand %vm2629_vm5, %vm2653_vm10  ;;  %v558_v47 = vstv %s556_s5  ;;  %v561_v48 = vmin.f32 %v510_v21, %v2528_v50  ;;  %v562_v4 = vmin.f32 %v511_v22, %v2528_v50  ;;  %v567_v8 = vmin.f32 %v514_v23, %v2531_v51  ;;  %s2739_s5 = sld [smem:[#allocation3 + %s625_s19]] }
  0x77   : > { %vm537_vm2 = vmand %vm2645_vm8, %vm2665_vm12  ;;  %v559_v9 = vsel %vm554_vm13, %v2534_v52, %v558_v47  ;;  %v560_v7 = vsel %vm555_vm14, %v2534_v52, %v558_v47  ;;  %v568_v12 = vmin.f32 %v515_v24, %v2531_v51  ;;  %v573_v50 = vmin.f32 %v518_v53, %v2534_v52  ;;  %s750_s19 = ssub.f32 0.0, %s2789_s7 }
  0x78   : > { %vm538_vm3 = vmand %vm2610_vm0, %vm2653_vm10  ;;  %v563_v13 = vmax.f32 %v561_v48, %v544_v62  ;;  %v564_v14 = vmax.f32 %v562_v4, %v544_v62  ;;  %v569_v15 = vmax.f32 %v567_v8, %v551_v2  ;;  %v574_v16 = vmin.f32 %v519_v40, %v2534_v52 }
  0x79   : > { %vm539_vm9 = vmand %vm2614_vm1, %vm2665_vm12  ;;  %v570_v51 = vmax.f32 %v568_v12, %v551_v2  ;;  %v575_v17 = vmax.f32 %v573_v50, %v558_v47  ;;  %v631_v20 = vstv %s2608_s27  ;;  %v634_v21 = vstv %s2618_s29  ;;  %s627_s27 = sadd.s32 28, %s2451_s17  ;;  %s2736_s29 = sld [smem:[#allocation3 + %s623_s12]] }
  0x7a   : > { %v565_v52 = vsel %vm536_vm15, %v545_v0, %v563_v13  ;;  %v566_v22 = vsel %vm537_vm2, %v546_v1, %v564_v14  ;;  %v571_v23 = vsel %vm538_vm3, %v552_v5, %v569_v15  ;;  %v576_v24 = vmax.f32 %v574_v16, %v558_v47  ;;  %s2743_s6 = sld [smem:[#allocation3 + %s627_s27]] }
  0x7b   : > { %v572_v25 = vsel %vm539_vm9, %v553_v6, %v570_v51  ;;  %v577_v26 = vsel %vm2634_vm6, %v559_v9, %v575_v17  ;;  %v579_v27 = vsub.f32 %v565_v52, %v2553_v10  ;;  %v580_v30 = vsub.f32 %v566_v22, %v2555_v11 }
  0x7c   : > { %v578_v33 = vsel %vm2638_vm7, %v560_v7, %v576_v24  ;;  %v583_v36 = vsub.f32 %v571_v23, %v2566_v28  ;;  %v584_v39 = vsub.f32 %v572_v25, %v2568_v29  ;;  %v589_v49 = vsub.f32 %v577_v26, %v2576_v54 }
  0x7d   : > { %v581_v53 = vmul.f32 %v579_v27, %v579_v27  ;;  %v582_v40 = vmul.f32 %v580_v30, %v580_v30  ;;  %v590_v10 = vsub.f32 %v578_v33, %v2578_v55  ;;  %v632_v11 = vsub.f32 %v2471_v31, %v631_v20 }
  0x7e   : > { %v585_v41 = vmul.f32 %v583_v36, %v583_v36  ;;  %v586_v43 = vmul.f32 %v584_v39, %v584_v39  ;;  %v591_v28 = vmul.f32 %v589_v49, %v589_v49  ;;  %v633_v29 = vsub.f32 %v2474_v32, %v631_v20 }
  0x7f   : > { %v592_v54 = vmul.f32 %v590_v10, %v590_v10  ;;  %v635_v55 = vsub.f32 %v2480_v34, %v634_v21  ;;  %v636_v44 = vsub.f32 %v2483_v35, %v634_v21  ;;  %v637_v59 = vstv %s2679_s28  ;;  %s607_s28 = sadd.s32 18, %s2451_s17 }
  0x80   : > { %v587_v60 = vadd.f32 %v585_v41, %v581_v53  ;;  %v588_v61 = vadd.f32 %v586_v43, %v582_v40  ;;  %v638_v62 = vsub.f32 %v2490_v37, %v637_v59  ;;  %v639_v63 = vsub.f32 %v2493_v38, %v637_v59 }
  0x81   : > { %v640_v0 = vstv %s2690_s25  ;;  %v643_v1 = vstv %s2698_s9  ;;  %v648_v5 = vstv %s2704_s11  ;;  %v653_v6 = vstv %s2719_s10  ;;  %s2782_s25 = sld [smem:[#allocation3 + %s607_s28]]  ;;  %s611_s9 = sadd.s32 20, %s2451_s17 }
  0x82   : > { %v641_v2 = vmul.f32 %v640_v0, %v632_v11  ;;  %v642_v3 = vmul.f32 %v640_v0, %v633_v29  ;;  %v644_v47 = vmul.f32 %v643_v1, %v635_v55  ;;  %v645_v48 = vmul.f32 %v643_v1, %v636_v44  ;;  %s2801_s11 = sld [smem:[#allocation3 + %s611_s9]]  ;;  %s805_s10 = sadd.s32 31, %s2451_s17 }
  0x83   : > { %v649_v4 = vmul.f32 %v648_v5, %v638_v62  ;;  %v650_v8 = vmul.f32 %v648_v5, %v639_v63  ;;  %v2756_v9 = vadd.f32 %v591_v28, %v587_v60  ;;  %v2758_v7 = vadd.f32 %v592_v54, %v588_v61  ;;  %s2853_s27 = sld [smem:[#allocation3 + %s805_s10]]  ;;  %s819_s28 = sadd.s32 38, %s2451_s17 }
  0x84   : > { %v654_v12 = vmul.f32 %v653_v6, %v632_v11  ;;  %v655_v50 = vmul.f32 %v653_v6, %v633_v29  ;;  %v646_v13 = vadd.f32 %v644_v47, %v641_v2  ;;  %v647_v14 = vadd.f32 %v645_v48, %v642_v3  ;;  %s2924_s9 = sld [smem:[#allocation3 + %s819_s28]]  ;;  %s825_s10 = sadd.s32 41, %s2451_s17 }
  0x85   : > { %v656_v15 = vstv %s2732_s16  ;;  %v661_v16 = vstv %s2736_s29  ;;  %v666_v23 = vstv %s2739_s5  ;;  %v669_v24 = vstv %s2743_s6  ;;  %s2839_s16 = sld [smem:[#allocation3 + %s803_s8]]  ;;  %s807_s5 = sadd.s32 32, %s2451_s17 }
  0x86   : > { %v657_v51 = vmul.f32 %v656_v15, %v635_v55  ;;  %v658_v17 = vmul.f32 %v656_v15, %v636_v44  ;;  %v662_v20 = vmul.f32 %v661_v16, %v638_v62  ;;  %v663_v21 = vmul.f32 %v661_v16, %v639_v63  ;;  %s817_s6 = sadd.s32 37, %s2451_s17  ;;  %s823_s8 = sadd.s32 40, %s2451_s17 }
  0x87   : > { %v2762_v52 = vadd.f32 %v649_v4, %v646_v13  ;;  %v2764_v22 = vadd.f32 %v650_v8, %v647_v14  ;;  %v667_v27 = vmul.f32 %v666_v23, %v632_v11  ;;  %v668_v30 = vmul.f32 %v666_v23, %v633_v29  ;;  %s743_s12 = ssub.f32 0.0, %s2782_s25  ;;  %s811_s28 = sadd.s32 34, %s2451_s17 }
  0x88   : > { %v659_v25 = vadd.f32 %v657_v51, %v654_v12  ;;  %v660_v26 = vadd.f32 %v658_v17, %v655_v50  ;;  %v670_v33 = vmul.f32 %v669_v24, %v635_v55  ;;  %v671_v36 = vmul.f32 %v669_v24, %v636_v44  ;;  %s757_s29 = ssub.f32 0.0, %s2801_s11 }
  0x89   : > { %v674_v39 = vstv %s2750_s0  ;;  %v679_v49 = vmul.f32 %v2505_v42, %v640_v0  ;;  %v680_v54 = vmul.f32 %v2513_v45, %v640_v0  ;;  %v681_v11 = vmul.f32 %v2516_v46, %v643_v1  ;;  %s2900_s0 = sld [smem:[#allocation3 + %s807_s5]]  ;;  %s831_s5 = sadd.s32 44, %s2451_s17 }
  0x8a   : > { %v2771_v53 = vadd.f32 %v662_v20, %v659_v25  ;;  %v2773_v40 = vadd.f32 %v663_v21, %v660_v26  ;;  %v675_v10 = vmul.f32 %v674_v39, %v638_v62  ;;  %v676_v41 = vmul.f32 %v674_v39, %v639_v63 }
  0x8b   : > { %v672_v43 = vadd.f32 %v670_v33, %v667_v27  ;;  %v673_v28 = vadd.f32 %v671_v36, %v668_v30  ;;  %v682_v29 = vmul.f32 %v2542_v57, %v643_v1  ;;  %v685_v55 = vmul.f32 %v2560_v18, %v648_v5 }
  0x8c   : > { %v686_v44 = vmul.f32 %v2563_v19, %v648_v5  ;;  %v689_v59 = vmul.f32 %v2505_v42, %v653_v6  ;;  %v683_v62 = vadd.f32 %v681_v11, %v679_v49  ;;  %v690_v63 = vmul.f32 %v2513_v45, %v653_v6 }
  0x8d   : > { %v2784_v60 = vadd.f32 %v675_v10, %v672_v43  ;;  %v2786_v61 = vadd.f32 %v676_v41, %v673_v28  ;;  %v684_v0 = vadd.f32 %v682_v29, %v680_v54  ;;  %v691_v1 = vmul.f32 %v2516_v46, %v656_v15 }
  0x8e   : > { %v692_v2 = vmul.f32 %v2542_v57, %v656_v15  ;;  %v695_v3 = vmul.f32 %v2560_v18, %v661_v16  ;;  %v2795_v5 = vadd.f32 %v685_v55, %v683_v62  ;;  %v696_v47 = vmul.f32 %v2563_v19, %v661_v16 }
  0x8f   : > { %v699_v48 = vmul.f32 %v2505_v42, %v666_v23  ;;  %v700_v4 = vmul.f32 %v2513_v45, %v666_v23  ;;  %v688_v8 = vadd.f32 %v686_v44, %v684_v0  ;;  %v693_v6 = vadd.f32 %v691_v1, %v689_v59 }
  0x90   : > { %v694_v12 = vadd.f32 %v692_v2, %v690_v63  ;;  %v701_v50 = vmul.f32 %v2516_v46, %v669_v24  ;;  %v702_v13 = vmul.f32 %v2542_v57, %v669_v24  ;;  %v705_v14 = vmul.f32 %v2560_v18, %v674_v39 }
  0x91   : > { %v706_v15 = vmul.f32 %v2563_v19, %v674_v39  ;;  %v709_v16 = vmul.f32 %v2581_v56, %v2795_v5  ;;  %v697_v51 = vadd.f32 %v695_v3, %v693_v6  ;;  %v710_v21 = vmul.f32 %v2584_v58, %v688_v8 }
  0x92   : > { %v698_v17 = vadd.f32 %v696_v47, %v694_v12  ;;  %v703_v20 = vadd.f32 %v701_v50, %v699_v48  ;;  %v704_v23 = vadd.f32 %v702_v13, %v700_v4  ;;  %v721_v24 = vand.u32 2147483647, %v2795_v5 }
  0x93   : > { %v2810_v25 = vadd.f32 %v709_v16, %v2762_v52  ;;  %v722_v26 = vand.u32 2147483647, %v688_v8  ;;  %v2816_v30 = vadd.f32 %v710_v21, %v2764_v22  ;;  %v713_v33 = vmul.f32 %v2581_v56, %v697_v51 }
  0x94   : > { %v2813_v27 = vadd.f32 %v705_v14, %v703_v20  ;;  %v714_v36 = vmul.f32 %v2584_v58, %v698_v17  ;;  %v708_v39 = vadd.f32 %v706_v15, %v704_v23  ;;  %v723_v49 = vand.u32 2147483647, %v697_v51 }
  0x95   : > { %v724_v10 = vand.u32 2147483647, %v698_v17  ;;  %vm741_vm0 = vcmp.gt.f32.partialorder %v2795_v5, 0.0  ;;  %v715_v41 = vadd.f32 %v713_v33, %v2771_v53  ;;  %vm742_vm7 = vcmp.gt.f32.partialorder %v688_v8, 0.0 }
  0x96   : > { %v716_v43 = vadd.f32 %v714_v36, %v2773_v40  ;;  %v717_v28 = vmul.f32 %v2581_v56, %v2813_v27  ;;  %v725_v54 = vand.u32 2147483647, %v2813_v27  ;;  %v718_v11 = vmul.f32 %v2584_v58, %v708_v39 }
  0x97   : > { %v726_v29 = vand.u32 2147483647, %v708_v39  ;;  %vm2831_vm1 = vcmp.gt.f32.partialorder %v723_v49, %v721_v24  ;;  %vm2835_vm5 = vcmp.gt.f32.partialorder %v724_v10, %v722_v26  ;;  %v744_v48 = vstv %s2782_s25  ;;  %s821_s25 = sadd.s32 39, %s2451_s17 }
  0x98   : > { %v719_v59 = vadd.f32 %v717_v28, %v2784_v60  ;;  %v729_v62 = vsel %vm2831_vm1, %v723_v49, %v721_v24  ;;  %v730_v63 = vsel %vm2835_vm5, %v724_v10, %v722_v26  ;;  %vm2849_vm6 = vmxor %vm2831_vm1, %vm2318_vm4  ;;  %v720_v1 = vadd.f32 %v718_v11, %v2786_v61 }
  0x99   : > { %vm2856_vm8 = vcmp.gt.f32.partialorder %v725_v54, %v729_v62  ;;  %vm2860_vm10 = vcmp.gt.f32.partialorder %v726_v29, %v730_v63  ;;  %vm2867_vm11 = vmxor %vm2835_vm5, %vm2318_vm4  ;;  %v745_v6 = vstv %s743_s12  ;;  %vm748_vm13 = vcmp.gt.f32.partialorder %v697_v51, 0.0  ;;  %s827_s12 = sadd.s32 42, %s2451_s17 }
  0x9a   : > { %vm2877_vm12 = vmxor %vm2856_vm8, %vm2318_vm4  ;;  %vm749_vm14 = vcmp.gt.f32.partialorder %v698_v17, 0.0  ;;  %v751_v12 = vstv %s2789_s7  ;;  %v746_v13 = vsel %vm741_vm0, %v744_v48, %v745_v6  ;;  %v747_v14 = vsel %vm742_vm7, %v744_v48, %v745_v6  ;;  %s2918_s7 = sld [smem:[#allocation3 + %s817_s6]] }
  0x9b   : > { %vm2886_vm15 = vmxor %vm2860_vm10, %vm2318_vm4  ;;  %v752_v15 = vstv %s750_s19  ;;  %vm755_vm2 = vcmp.gt.f32.partialorder %v2813_v27, 0.0  ;;  %vm756_vm9 = vcmp.gt.f32.partialorder %v708_v39, 0.0  ;;  %v758_v17 = vstv %s2801_s11  ;;  %s2926_s11 = sld [smem:[#allocation3 + %s821_s25]] }
  0x9c   : > { %vm737_vm3 = vmand %vm2849_vm6, %vm2877_vm12  ;;  %v753_v16 = vsel %vm748_vm13, %v751_v12, %v752_v15  ;;  %v754_v51 = vsel %vm749_vm14, %v751_v12, %v752_v15  ;;  %v759_v5 = vstv %s757_s29  ;;  %v762_v8 = vmin.f32 %v2810_v25, %v744_v48  ;;  %s2963_s19 = sld [smem:[#allocation3 + %s823_s8]] }
  0x9d   : > { %vm738_vm0 = vmand %vm2867_vm11, %vm2886_vm15  ;;  %v763_v20 = vmin.f32 %v2816_v30, %v744_v48  ;;  %v768_v21 = vmin.f32 %v715_v41, %v751_v12  ;;  %v760_v23 = vsel %vm755_vm2, %v758_v17, %v759_v5  ;;  %v761_v24 = vsel %vm756_vm9, %v758_v17, %v759_v5  ;;  %s2970_s29 = sld [smem:[#allocation3 + %s827_s12]] }
  0x9e   : > { %vm739_vm7 = vmand %vm2831_vm1, %vm2877_vm12  ;;  %v769_v26 = vmin.f32 %v716_v43, %v751_v12  ;;  %v774_v33 = vmin.f32 %v719_v59, %v758_v17  ;;  %v764_v25 = vmax.f32 %v762_v8, %v745_v6  ;;  %v775_v39 = vmin.f32 %v720_v1, %v758_v17  ;;  %v596_v12 = vld [vmem:[%s2446_s15 + $0x8] sm:$0xff]  ;;  %v2140_v8 = vld [vmem:[%s2446_s15 + $0x10] sm:$0xff]  ;;  %s2987_s6 = sld [smem:[#allocation3 + %s831_s5]]  ;;  %s1017_s5 = sadd.s32 51, %s2451_s17 }
  0x9f   : > { %vm740_vm13 = vmand %vm2835_vm5, %vm2886_vm15  ;;  %v765_v30 = vmax.f32 %v763_v20, %v745_v6  ;;  %v770_v36 = vmax.f32 %v768_v21, %v752_v15  ;;  %v833_v10 = vstv %s2839_s16  ;;  %v836_v41 = vstv %s2853_s27  ;;  %s829_s16 = sadd.s32 43, %s2451_s17  ;;  %s2967_s27 = sld [smem:[#allocation3 + %s825_s10]]  ;;  %v595_v6 = vld [vmem:[%s2446_s15] sm:$0xff]  ;;  %v2141_v21 = vld [vmem:[%s2446_s15 + $0x18] sm:$0xff] }
  0xa0   : > { %v771_v27 = vmax.f32 %v769_v26, %v752_v15  ;;  %v776_v49 = vmax.f32 %v774_v33, %v759_v5  ;;  %v766_v43 = vsel %vm737_vm3, %v746_v13, %v764_v25  ;;  %v777_v11 = vmax.f32 %v775_v39, %v759_v5  ;;  %s2978_s26 = sld [smem:[#allocation3 + %s829_s16]]  ;;  %s1007_s10 = sadd.s32 46, %s2451_s17 }
  0xa1   : > { %v767_v28 = vsel %vm738_vm0, %v747_v14, %v765_v30  ;;  %v772_v54 = vsel %vm739_vm7, %v753_v16, %v770_v36  ;;  %v780_v62 = vsub.f32 %v766_v43, %v2762_v52  ;;  %v839_v4 = vstv %s2900_s0  ;;  %s809_s0 = sadd.s32 33, %s2451_s17  ;;  %s3028_s25 = sld [smem:[#allocation3 + %s811_s28]] }
  0xa2   : > { %v773_v29 = vsel %vm740_vm13, %v754_v51, %v771_v27  ;;  %v778_v59 = vsel %vm2856_vm8, %v760_v23, %v776_v49  ;;  %v781_v55 = vsub.f32 %v767_v28, %v2764_v22  ;;  %v779_v63 = vsel %vm2860_vm10, %v761_v24, %v777_v11  ;;  %s3073_s16 = sld [smem:[#allocation3 + %s1007_s10]]  ;;  %s1021_s28 = sadd.s32 53, %s2451_s17 }
  0xa3   : > { %v784_v0 = vsub.f32 %v772_v54, %v2771_v53  ;;  %v785_v1 = vsub.f32 %v773_v29, %v2773_v40  ;;  %v790_v44 = vsub.f32 %v778_v59, %v2784_v60  ;;  %v782_v47 = vmul.f32 %v780_v62, %v780_v62  ;;  %s1029_s10 = sadd.s32 57, %s2451_s17 }
  0xa4   : > { %v783_v2 = vmul.f32 %v781_v55, %v781_v55  ;;  %v791_v52 = vsub.f32 %v779_v63, %v2786_v61  ;;  %v834_v22 = vsub.f32 %v2471_v31, %v833_v10  ;;  %v835_v40 = vsub.f32 %v2474_v32, %v833_v10 }
  0xa5   : > { %v786_v3 = vmul.f32 %v784_v0, %v784_v0  ;;  %v787_v53 = vmul.f32 %v785_v1, %v785_v1  ;;  %v792_v48 = vmul.f32 %v790_v44, %v790_v44  ;;  %v837_v61 = vsub.f32 %v2480_v34, %v836_v41 }
  0xa6   : > { %v793_v60 = vmul.f32 %v791_v52, %v791_v52  ;;  %v838_v31 = vsub.f32 %v2483_v35, %v836_v41  ;;  %v840_v32 = vsub.f32 %v2490_v37, %v839_v4  ;;  %v841_v14 = vsub.f32 %v2493_v38, %v839_v4 }
  0xa7   : > { %v788_v50 = vadd.f32 %v786_v3, %v782_v47  ;;  %v789_v13 = vadd.f32 %v787_v53, %v783_v2  ;;  %v842_v15 = vstv %s2909_s4  ;;  %v845_v16 = vstv %s2918_s7  ;;  %s3020_s4 = sld [smem:[#allocation3 + %s809_s0]]  ;;  %s813_s7 = sadd.s32 35, %s2451_s17 }
  0xa8   : > { %v850_v51 = vstv %s2924_s9  ;;  %v855_v17 = vstv %s2926_s11  ;;  %v843_v35 = vmul.f32 %v842_v15, %v834_v22  ;;  %v844_v20 = vmul.f32 %v842_v15, %v835_v40  ;;  %s3038_s9 = sld [smem:[#allocation3 + %s813_s7]]  ;;  %s1005_s11 = sadd.s32 45, %s2451_s17 }
  0xa9   : > { %v794_v34 = vadd.f32 %v792_v48, %v788_v50  ;;  %v795_v5 = vadd.f32 %v793_v60, %v789_v13  ;;  %v846_v23 = vmul.f32 %v845_v16, %v837_v61  ;;  %v847_v24 = vmul.f32 %v845_v16, %v838_v31  ;;  %s952_s12 = ssub.f32 0.0, %s3028_s25 }
  0xaa   : > { %v851_v26 = vmul.f32 %v850_v51, %v840_v32  ;;  %v852_v37 = vmul.f32 %v850_v51, %v841_v14  ;;  %v2991_v38 = vmul.f32 %v595_v6, %v2756_v9  ;;  %v2994_v33 = vmul.f32 %v596_v12, %v2758_v7  ;;  %s3138_s0 = sld [smem:[#allocation3 + %s1017_s5]] }
  0xab   : > { %v856_v25 = vmul.f32 %v855_v17, %v834_v22  ;;  %v857_v30 = vmul.f32 %v855_v17, %v835_v40  ;;  %v2996_v36 = vmul.f32 %v2140_v8, %v794_v34  ;;  %v848_v39 = vadd.f32 %v846_v23, %v843_v35  ;;  %s3159_s7 = sld [smem:[#allocation3 + %s1021_s28]] }
  0xac   : > { %v849_v27 = vadd.f32 %v847_v24, %v844_v20  ;;  %v858_v49 = vstv %s2963_s19  ;;  %v2999_v10 = vmul.f32 %v2141_v21, %v795_v5  ;;  %v863_v28 = vstv %s2967_s27  ;;  %s3062_s19 = sld [smem:[#allocation3 + %s1005_s11]] }
  0xad   : > { %v859_v41 = vmul.f32 %v858_v49, %v837_v61  ;;  %v860_v43 = vmul.f32 %v858_v49, %v838_v31  ;;  %v3002_v9 = vadd.f32 %v851_v26, %v848_v39  ;;  %v864_v54 = vmul.f32 %v863_v28, %v840_v32  ;;  %s945_s8 = ssub.f32 0.0, %s3020_s4 }
  0xae   : > { %v3004_v7 = vadd.f32 %v852_v37, %v849_v27  ;;  %v865_v11 = vmul.f32 %v863_v28, %v841_v14  ;;  %v868_v62 = vstv %s2970_s29  ;;  %v871_v55 = vstv %s2978_s26  ;;  %s959_s27 = ssub.f32 0.0, %s3038_s9  ;;  %s1009_s29 = sadd.s32 47, %s2451_s17 }
  0xaf   : > { %v861_v29 = vadd.f32 %v859_v41, %v856_v25  ;;  %v862_v59 = vadd.f32 %v860_v43, %v857_v30  ;;  %v869_v63 = vmul.f32 %v868_v62, %v834_v22  ;;  %v870_v0 = vmul.f32 %v868_v62, %v835_v40  ;;  %s1019_s26 = sadd.s32 52, %s2451_s17 }
  0xb0   : > { %v872_v1 = vmul.f32 %v871_v55, %v837_v61  ;;  %v873_v44 = vmul.f32 %v871_v55, %v838_v31  ;;  %v876_v52 = vstv %s2987_s6  ;;  %v881_v3 = vmul.f32 %v2505_v42, %v842_v15  ;;  %s3131_s6 = sld [smem:[#allocation3 + %s1009_s29]]  ;;  %s1033_s29 = sadd.s32 59, %s2451_s17 }
  0xb1   : > { %v3009_v47 = vadd.f32 %v864_v54, %v861_v29  ;;  %v3011_v2 = vadd.f32 %v865_v11, %v862_v59  ;;  %v877_v60 = vmul.f32 %v876_v52, %v840_v32  ;;  %v878_v4 = vmul.f32 %v876_v52, %v841_v14 }
  0xb2   : > { %v874_v53 = vadd.f32 %v872_v1, %v869_v63  ;;  %v875_v48 = vadd.f32 %v873_v44, %v870_v0  ;;  %v882_v6 = vmul.f32 %v2513_v45, %v842_v15  ;;  %v883_v22 = vmul.f32 %v2516_v46, %v845_v16 }
  0xb3   : > { %v884_v40 = vmul.f32 %v2542_v57, %v845_v16  ;;  %v887_v61 = vmul.f32 %v2560_v18, %v850_v51  ;;  %v888_v50 = vmul.f32 %v2563_v19, %v850_v51  ;;  %v891_v13 = vmul.f32 %v2505_v42, %v855_v17 }
  0xb4   : > { %v3022_v31 = vadd.f32 %v877_v60, %v874_v53  ;;  %v3024_v12 = vadd.f32 %v878_v4, %v875_v48  ;;  %v885_v32 = vadd.f32 %v883_v22, %v881_v3  ;;  %v892_v15 = vmul.f32 %v2513_v45, %v855_v17 }
  0xb5   : > { %v886_v14 = vadd.f32 %v884_v40, %v882_v6  ;;  %v893_v16 = vmul.f32 %v2516_v46, %v858_v49  ;;  %v894_v34 = vmul.f32 %v2542_v57, %v858_v49  ;;  %v897_v5 = vmul.f32 %v2560_v18, %v863_v28  ;;  %v3223_v6 = vld [vmem:[%s2444_s14 + $0x20] sm:$0xff] }
  0xb6   : > { %v898_v8 = vmul.f32 %v2563_v19, %v863_v28  ;;  %v901_v35 = vmul.f32 %v2505_v42, %v868_v62  ;;  %v889_v51 = vadd.f32 %v887_v61, %v885_v32  ;;  %v902_v23 = vmul.f32 %v2513_v45, %v868_v62 }
  0xb7   : > { %v890_v20 = vadd.f32 %v888_v50, %v886_v14  ;;  %v895_v21 = vadd.f32 %v893_v16, %v891_v13  ;;  %v896_v24 = vadd.f32 %v894_v34, %v892_v15  ;;  %v903_v17 = vmul.f32 %v2516_v46, %v871_v55 }
  0xb8   : > { %v904_v26 = vmul.f32 %v2542_v57, %v871_v55  ;;  %v907_v37 = vmul.f32 %v2560_v18, %v876_v52  ;;  %v908_v30 = vmul.f32 %v2563_v19, %v876_v52  ;;  %v911_v42 = vmul.f32 %v2581_v56, %v889_v51 }
  0xb9   : > { %v899_v25 = vadd.f32 %v897_v5, %v895_v21  ;;  %v912_v39 = vmul.f32 %v2584_v58, %v890_v20  ;;  %v900_v45 = vadd.f32 %v898_v8, %v896_v24  ;;  %v905_v27 = vadd.f32 %v903_v17, %v901_v35 }
  0xba   : > { %v906_v49 = vadd.f32 %v904_v26, %v902_v23  ;;  %v923_v41 = vand.u32 2147483647, %v889_v51  ;;  %v3047_v46 = vadd.f32 %v911_v42, %v3002_v9  ;;  %v924_v19 = vand.u32 2147483647, %v890_v20 }
  0xbb   : > { %v3050_v57 = vadd.f32 %v912_v39, %v3004_v7  ;;  %v915_v18 = vmul.f32 %v2581_v56, %v899_v25  ;;  %v909_v43 = vadd.f32 %v907_v37, %v905_v27  ;;  %v916_v54 = vmul.f32 %v2584_v58, %v900_v45 }
  0xbc   : > { %v910_v28 = vadd.f32 %v908_v30, %v906_v49  ;;  %v925_v11 = vand.u32 2147483647, %v899_v25  ;;  %v926_v59 = vand.u32 2147483647, %v900_v45  ;;  %vm943_vm1 = vcmp.gt.f32.partialorder %v889_v51, 0.0 }
  0xbd   : > { %v917_v29 = vadd.f32 %v915_v18, %v3009_v47  ;;  %vm944_vm5 = vcmp.gt.f32.partialorder %v890_v20, 0.0  ;;  %v918_v62 = vadd.f32 %v916_v54, %v3011_v2  ;;  %v919_v55 = vmul.f32 %v2581_v56, %v909_v43 }
  0xbe   : > { %v920_v63 = vmul.f32 %v2584_v58, %v910_v28  ;;  %v927_v0 = vand.u32 2147483647, %v909_v43  ;;  %v928_v1 = vand.u32 2147483647, %v910_v28  ;;  %vm3064_vm6 = vcmp.gt.f32.partialorder %v925_v11, %v923_v41 }
  0xbf   : > { %vm3068_vm8 = vcmp.gt.f32.partialorder %v926_v59, %v924_v19  ;;  %v946_v3 = vstv %s3020_s4  ;;  %v921_v56 = vadd.f32 %v919_v55, %v3022_v31  ;;  %v931_v53 = vsel %vm3064_vm6, %v925_v11, %v923_v41  ;;  %vm3084_vm10 = vmxor %vm3064_vm6, %vm2318_vm4  ;;  %s3145_s4 = sld [smem:[#allocation3 + %s1019_s26]] }
  0xc0   : > { %v922_v58 = vadd.f32 %v920_v63, %v3024_v12  ;;  %v932_v48 = vsel %vm3068_vm8, %v926_v59, %v924_v19  ;;  %vm3089_vm11 = vcmp.gt.f32.partialorder %v927_v0, %v931_v53  ;;  %vm3100_vm14 = vmxor %vm3068_vm8, %vm2318_vm4  ;;  %v947_v40 = vstv %s945_s8  ;;  %s1027_s8 = sadd.s32 56, %s2451_s17  ;;  %v3177_v19 = vld [vmem:[%s2444_s14] sm:$0xff]  ;;  %s3230_s26 = sld [smem:[#allocation3 + %s1033_s29]] }
  0xc1   : > { %vm3093_vm12 = vcmp.gt.f32.partialorder %v928_v1, %v932_v48  ;;  %vm950_vm15 = vcmp.gt.f32.partialorder %v899_v25, 0.0  ;;  %vm3108_vm2 = vmxor %vm3089_vm11, %vm2318_vm4  ;;  %v948_v50 = vsel %vm943_vm1, %v946_v3, %v947_v40  ;;  %v949_v13 = vsel %vm944_vm5, %v946_v3, %v947_v40  ;;  %v3207_v1 = vld [vmem:[%s2444_s14 + $0x10] sm:$0xff]  ;;  %s1219_s29 = sadd.s32 66, %s2451_s17 }
  0xc2   : > { %vm951_vm3 = vcmp.gt.f32.partialorder %v900_v45, 0.0  ;;  %v953_v32 = vstv %s3028_s25  ;;  %vm3119_vm9 = vmxor %vm3093_vm12, %vm2318_vm4  ;;  %v954_v15 = vstv %s952_s12  ;;  %vm957_vm0 = vcmp.gt.f32.partialorder %v909_v43, 0.0  ;;  %s1023_s25 = sadd.s32 54, %s2451_s17 }
  0xc3   : > { %vm958_vm7 = vcmp.gt.f32.partialorder %v910_v28, 0.0  ;;  %v960_v16 = vstv %s3038_s9  ;;  %vm939_vm13 = vmand %vm3084_vm10, %vm3108_vm2  ;;  %v955_v34 = vsel %vm950_vm15, %v953_v32, %v954_v15  ;;  %v956_v5 = vsel %vm951_vm3, %v953_v32, %v954_v15  ;;  %s1025_s9 = sadd.s32 55, %s2451_s17  ;;  %s3173_s11 = sld [smem:[#allocation3 + %s1023_s25]] }
  0xc4   : > { %v961_v8 = vstv %s959_s27  ;;  %v964_v35 = vmin.f32 %v3047_v46, %v946_v3  ;;  %vm940_vm1 = vmand %vm3100_vm14, %vm3119_vm9  ;;  %v965_v21 = vmin.f32 %v3050_v57, %v946_v3  ;;  %v970_v23 = vmin.f32 %v917_v29, %v953_v32  ;;  %s3196_s12 = sld [smem:[#allocation3 + %s1025_s9]]  ;;  %s1015_s25 = sadd.s32 50, %s2451_s17 }
  0xc5   : > { %v962_v51 = vsel %vm957_vm0, %v960_v16, %v961_v8  ;;  %v963_v20 = vsel %vm958_vm7, %v960_v16, %v961_v8  ;;  %vm941_vm5 = vmand %vm3064_vm6, %vm3108_vm2  ;;  %v971_v17 = vmin.f32 %v918_v62, %v953_v32  ;;  %v976_v26 = vmin.f32 %v921_v56, %v960_v16  ;;  %s3210_s27 = sld [smem:[#allocation3 + %s1029_s10]]  ;;  %s1207_s9 = sadd.s32 60, %s2451_s17 }
  0xc6   : > { %v966_v24 = vmax.f32 %v964_v35, %v947_v40  ;;  %v977_v37 = vmin.f32 %v922_v58, %v960_v16  ;;  %vm942_vm15 = vmand %vm3068_vm8, %vm3119_vm9  ;;  %v967_v25 = vmax.f32 %v965_v21, %v947_v40  ;;  %v972_v30 = vmax.f32 %v970_v23, %v954_v15  ;;  %v3227_v40 = vld [vmem:[%s2444_s14 + $0x28] sm:$0xff] }
  0xc7   : > { %v1035_v42 = vstv %s3062_s19  ;;  %v1038_v39 = vstv %s3073_s16  ;;  %v973_v27 = vmax.f32 %v971_v17, %v954_v15  ;;  %v978_v49 = vmax.f32 %v976_v26, %v961_v8  ;;  %s1031_s19 = sadd.s32 58, %s2451_s17  ;;  %s3200_s16 = sld [smem:[#allocation3 + %s1027_s8]] }
  0xc8   : > { %v968_v45 = vsel %vm939_vm13, %v948_v50, %v966_v24  ;;  %v979_v41 = vmax.f32 %v977_v37, %v961_v8  ;;  %v969_v46 = vsel %vm940_vm1, %v949_v13, %v967_v25  ;;  %v974_v57 = vsel %vm941_vm5, %v955_v34, %v972_v30  ;;  %s3217_s5 = sld [smem:[#allocation3 + %s1031_s19]]  ;;  %v2142_v34 = vld [vmem:[%s2446_s15 + $0x20] sm:$0xff] }
  0xc9   : > { %v982_v18 = vsub.f32 %v968_v45, %v3002_v9  ;;  %v3180_v43 = vsub.f32 %v3177_v19, %v1035_v42  ;;  %v975_v28 = vsel %vm942_vm15, %v956_v5, %v973_v27  ;;  %v980_v54 = vsel %vm3089_vm11, %v962_v51, %v978_v49  ;;  %v2143_v5 = vld [vmem:[%s2446_s15 + $0x28] sm:$0xff] }
  0xca   : > { %v981_v9 = vsel %vm3093_vm12, %v963_v20, %v979_v41  ;;  %v983_v11 = vsub.f32 %v969_v46, %v3004_v7  ;;  %v986_v59 = vsub.f32 %v974_v57, %v3009_v47  ;;  %v987_v62 = vsub.f32 %v975_v28, %v3011_v2  ;;  %v3203_v7 = vld [vmem:[%s2444_s14 + $0x8] sm:$0xff] }
  0xcb   : > { %v984_v29 = vmul.f32 %v982_v18, %v982_v18  ;;  %v992_v55 = vsub.f32 %v980_v54, %v3022_v31  ;;  %v993_v0 = vsub.f32 %v981_v9, %v3024_v12  ;;  %v1037_v47 = vsub.f32 %v3203_v7, %v1035_v42  ;;  %v3214_v12 = vld [vmem:[%s2444_s14 + $0x18] sm:$0xff] }
  0xcc   : > { %v985_v63 = vmul.f32 %v983_v11, %v983_v11  ;;  %v1039_v2 = vsub.f32 %v3207_v1, %v1038_v39  ;;  %v988_v31 = vmul.f32 %v986_v59, %v986_v59  ;;  %v989_v44 = vmul.f32 %v987_v62, %v987_v62 }
  0xcd   : > { %v994_v52 = vmul.f32 %v992_v55, %v992_v55  ;;  %v1040_v3 = vsub.f32 %v3214_v12, %v1038_v39  ;;  %v995_v56 = vmul.f32 %v993_v0, %v993_v0  ;;  %v1041_v58 = vstv %s3131_s6  ;;  %s1011_s6 = sadd.s32 48, %s2451_s17 }
  0xce   : > { %v1044_v53 = vstv %s3138_s0  ;;  %v1047_v48 = vstv %s3145_s4  ;;  %v990_v60 = vadd.f32 %v988_v31, %v984_v29  ;;  %v991_v4 = vadd.f32 %v989_v44, %v985_v63  ;;  %v3261_v29 = vld [vmem:[%s2444_s14 + $0x30] sm:$0xff]  ;;  %s1013_s0 = sadd.s32 49, %s2451_s17  ;;  %v3275_v44 = vld [vmem:[%s2444_s14 + $0x40] sm:$0xff]  ;;  %s3291_s28 = sld [smem:[#allocation3 + %s1011_s6]] }
  0xcf   : > { %v1042_v22 = vsub.f32 %v3223_v6, %v1041_v58  ;;  %v1043_v61 = vsub.f32 %v3227_v40, %v1041_v58  ;;  %v1045_v50 = vmul.f32 %v1044_v53, %v3180_v43  ;;  %v1046_v13 = vmul.f32 %v1044_v53, %v1037_v47  ;;  %v3283_v58 = vld [vmem:[%s2444_s14 + $0x50] sm:$0xff]  ;;  %s3298_s4 = sld [smem:[#allocation3 + %s1013_s0]]  ;;  %s1223_s6 = sadd.s32 68, %s2451_s17 }
  0xd0   : > { %v1048_v32 = vmul.f32 %v1047_v48, %v1039_v2  ;;  %v1049_v14 = vmul.f32 %v1047_v48, %v1040_v3  ;;  %v996_v15 = vadd.f32 %v994_v52, %v990_v60  ;;  %v997_v16 = vadd.f32 %v995_v56, %v991_v4  ;;  %v3287_v4 = vld [vmem:[%s2444_s14 + $0x58] sm:$0xff]  ;;  %s3430_s0 = sld [smem:[#allocation3 + %s1219_s29]] }
  0xd1   : > { %v1052_v8 = vstv %s3159_s7  ;;  %v1057_v35 = vstv %s3173_s11  ;;  %v3239_v24 = vadd.f32 %v2996_v36, %v2991_v38  ;;  %v3243_v17 = vadd.f32 %v2999_v10, %v2994_v33  ;;  %s3312_s7 = sld [smem:[#allocation3 + %s1015_s25]]  ;;  %s1209_s11 = sadd.s32 61, %s2451_s17 }
  0xd2   : > { %v1050_v51 = vadd.f32 %v1048_v32, %v1045_v50  ;;  %v1051_v20 = vadd.f32 %v1049_v14, %v1046_v13  ;;  %v1053_v21 = vmul.f32 %v1052_v8, %v1042_v22  ;;  %v1054_v23 = vmul.f32 %v1052_v8, %v1043_v61  ;;  %s3373_s19 = sld [smem:[#allocation3 + %s1209_s11]]  ;;  %s1229_s11 = sadd.s32 71, %s2451_s17 }
  0xd3   : > { %v1058_v26 = vmul.f32 %v1057_v35, %v3180_v43  ;;  %v1059_v37 = vmul.f32 %v1057_v35, %v1037_v47  ;;  %v3246_v25 = vmul.f32 %v2142_v34, %v996_v15  ;;  %v3248_v30 = vmul.f32 %v2143_v5, %v997_v16  ;;  %s3445_s25 = sld [smem:[#allocation3 + %s1223_s6]]  ;;  %s1215_s6 = sadd.s32 64, %s2451_s17 }
  0xd4   : > { %v3250_v42 = vadd.f32 %v1053_v21, %v1050_v51  ;;  %v1060_v39 = vstv %s3196_s12  ;;  %v3253_v45 = vadd.f32 %v1054_v23, %v1051_v20  ;;  %v1065_v27 = vstv %s3200_s16  ;;  %s1147_s8 = ssub.f32 0.0, %s3291_s28 }
  0xd5   : > { %v1061_v38 = vmul.f32 %v1060_v39, %v1039_v2  ;;  %v1062_v36 = vmul.f32 %v1060_v39, %v1040_v3  ;;  %v1066_v33 = vmul.f32 %v1065_v27, %v1042_v22  ;;  %v1067_v10 = vmul.f32 %v1065_v27, %v1043_v61  ;;  %s1154_s10 = ssub.f32 0.0, %s3298_s4 }
  0xd6   : > { %v1070_v49 = vstv %s3210_s27  ;;  %v1073_v41 = vstv %s3217_s5  ;;  %v1078_v11 = vstv %s3230_s26  ;;  %v1083_v59 = vmul.f32 %v3261_v29, %v1044_v53  ;;  %s3358_s12 = sld [smem:[#allocation3 + %s1207_s9]]  ;;  %s1211_s27 = sadd.s32 62, %s2451_s17 }
  0xd7   : > { %v1063_v46 = vadd.f32 %v1061_v38, %v1058_v26  ;;  %v1064_v57 = vadd.f32 %v1062_v36, %v1059_v37  ;;  %v1071_v18 = vmul.f32 %v1070_v49, %v3180_v43  ;;  %v1072_v28 = vmul.f32 %v1070_v49, %v1037_v47  ;;  %v3318_v38 = vld [vmem:[%s2444_s14 + $0x60] sm:$0xff]  ;;  %s1161_s16 = ssub.f32 0.0, %s3312_s7  ;;  %s1221_s5 = sadd.s32 67, %s2451_s17 }
  0xd8   : > { %v1074_v54 = vmul.f32 %v1073_v41, %v1039_v2  ;;  %v1075_v9 = vmul.f32 %v1073_v41, %v1040_v3  ;;  %v1079_v63 = vmul.f32 %v1078_v11, %v1042_v22  ;;  %v1080_v0 = vmul.f32 %v1078_v11, %v1043_v61  ;;  %v3271_v2 = vld [vmem:[%s2444_s14 + $0x38] sm:$0xff]  ;;  %v3279_v3 = vld [vmem:[%s2444_s14 + $0x48] sm:$0xff]  ;;  %s3421_s26 = sld [smem:[#allocation3 + %s1211_s27]]  ;;  %s1227_s9 = sadd.s32 70, %s2451_s17 }
  0xd9   : > { %v3265_v62 = vadd.f32 %v1066_v33, %v1063_v46  ;;  %v3267_v55 = vadd.f32 %v1067_v10, %v1064_v57  ;;  %v1084_v31 = vmul.f32 %v3271_v2, %v1044_v53  ;;  %v1085_v52 = vmul.f32 %v3275_v44, %v1047_v48  ;;  %s1235_s27 = sadd.s32 74, %s2451_s17 }
  0xda   : > { %v1076_v43 = vadd.f32 %v1074_v54, %v1071_v18  ;;  %v1077_v47 = vadd.f32 %v1075_v9, %v1072_v28  ;;  %v1086_v56 = vmul.f32 %v3279_v3, %v1047_v48  ;;  %v1089_v60 = vmul.f32 %v3283_v58, %v1052_v8 }
  0xdb   : > { %v1090_v22 = vmul.f32 %v3287_v4, %v1052_v8  ;;  %v1093_v61 = vmul.f32 %v3261_v29, %v1057_v35  ;;  %v1087_v13 = vadd.f32 %v1085_v52, %v1083_v59  ;;  %v1094_v32 = vmul.f32 %v3271_v2, %v1057_v35 }
  0xdc   : > { %v3293_v53 = vadd.f32 %v1079_v63, %v1076_v43  ;;  %v3295_v50 = vadd.f32 %v1080_v0, %v1077_v47  ;;  %v1088_v48 = vadd.f32 %v1086_v56, %v1084_v31  ;;  %v1095_v14 = vmul.f32 %v3275_v44, %v1060_v39 }
  0xdd   : > { %v1096_v15 = vmul.f32 %v3279_v3, %v1060_v39  ;;  %v1099_v16 = vmul.f32 %v3283_v58, %v1065_v27  ;;  %v3304_v34 = vadd.f32 %v1089_v60, %v1087_v13  ;;  %v1100_v5 = vmul.f32 %v3287_v4, %v1065_v27 }
  0xde   : > { %v1103_v8 = vmul.f32 %v3261_v29, %v1070_v49  ;;  %v1104_v35 = vmul.f32 %v3271_v2, %v1070_v49  ;;  %v3309_v51 = vadd.f32 %v1090_v22, %v1088_v48  ;;  %v1097_v20 = vadd.f32 %v1095_v14, %v1093_v61  ;;  %v3323_v49 = vld [vmem:[%s2444_s14 + $0x68] sm:$0xff] }
  0xdf   : > { %v1098_v21 = vadd.f32 %v1096_v15, %v1094_v32  ;;  %v1105_v23 = vmul.f32 %v3275_v44, %v1073_v41  ;;  %v1106_v26 = vmul.f32 %v3279_v3, %v1073_v41  ;;  %v1109_v37 = vmul.f32 %v3283_v58, %v1078_v11 }
  0xe0   : > { %v1110_v39 = vmul.f32 %v3287_v4, %v1078_v11  ;;  %v1113_v36 = vmul.f32 %v3318_v38, %v3304_v34  ;;  %v1101_v27 = vadd.f32 %v1099_v16, %v1097_v20  ;;  %v1114_v41 = vmul.f32 %v3323_v49, %v3309_v51 }
  0xe1   : > { %v1102_v33 = vadd.f32 %v1100_v5, %v1098_v21  ;;  %v1107_v10 = vadd.f32 %v1105_v23, %v1103_v8  ;;  %v1108_v46 = vadd.f32 %v1106_v26, %v1104_v35  ;;  %v1125_v18 = vand.u32 2147483647, %v3304_v34 }
  0xe2   : > { %v3328_v57 = vadd.f32 %v1113_v36, %v3250_v42  ;;  %v1126_v28 = vand.u32 2147483647, %v3309_v51  ;;  %v3335_v9 = vadd.f32 %v1114_v41, %v3253_v45  ;;  %v1117_v11 = vmul.f32 %v3318_v38, %v1101_v27 }
  0xe3   : > { %v3332_v54 = vadd.f32 %v1109_v37, %v1107_v10  ;;  %v1118_v59 = vmul.f32 %v3323_v49, %v1102_v33  ;;  %v1112_v63 = vadd.f32 %v1110_v39, %v1108_v46  ;;  %v1127_v0 = vand.u32 2147483647, %v1101_v27 }
  0xe4   : > { %v1128_v43 = vand.u32 2147483647, %v1102_v33  ;;  %vm1145_vm6 = vcmp.gt.f32.partialorder %v3304_v34, 0.0  ;;  %v1119_v47 = vadd.f32 %v1117_v11, %v3265_v62  ;;  %vm1146_vm12 = vcmp.gt.f32.partialorder %v3309_v51, 0.0 }
  0xe5   : > { %v1120_v31 = vadd.f32 %v1118_v59, %v3267_v55  ;;  %v1121_v52 = vmul.f32 %v3318_v38, %v3332_v54  ;;  %v1129_v56 = vand.u32 2147483647, %v3332_v54  ;;  %v1122_v60 = vmul.f32 %v3323_v49, %v1112_v63 }
  0xe6   : > { %v1130_v22 = vand.u32 2147483647, %v1112_v63  ;;  %vm3350_vm8 = vcmp.gt.f32.partialorder %v1127_v0, %v1125_v18  ;;  %vm3354_vm10 = vcmp.gt.f32.partialorder %v1128_v43, %v1126_v28  ;;  %v1148_v20 = vstv %s3291_s28  ;;  %s1225_s28 = sadd.s32 69, %s2451_s17 }
  0xe7   : > { %v1123_v32 = vadd.f32 %v1121_v52, %v3293_v53  ;;  %v1133_v48 = vsel %vm3350_vm8, %v1127_v0, %v1125_v18  ;;  %v1134_v14 = vsel %vm3354_vm10, %v1128_v43, %v1126_v28  ;;  %vm3368_vm11 = vmxor %vm3350_vm8, %vm2318_vm4  ;;  %v1124_v16 = vadd.f32 %v1122_v60, %v3295_v50 }
  0xe8   : > { %vm3376_vm14 = vcmp.gt.f32.partialorder %v1129_v56, %v1133_v48  ;;  %vm3380_vm2 = vcmp.gt.f32.partialorder %v1130_v22, %v1134_v14  ;;  %vm3387_vm3 = vmxor %vm3354_vm10, %vm2318_vm4  ;;  %v1149_v23 = vstv %s1147_s8  ;;  %vm1152_vm0 = vcmp.gt.f32.partialorder %v1101_v27, 0.0  ;;  %s1231_s8 = sadd.s32 72, %s2451_s17 }
  0xe9   : > { %vm3397_vm9 = vmxor %vm3376_vm14, %vm2318_vm4  ;;  %vm1153_vm7 = vcmp.gt.f32.partialorder %v1102_v33, 0.0  ;;  %v1155_v26 = vstv %s3298_s4  ;;  %v1150_v39 = vsel %vm1145_vm6, %v1148_v20, %v1149_v23  ;;  %v1151_v36 = vsel %vm1146_vm12, %v1148_v20, %v1149_v23  ;;  %s3439_s4 = sld [smem:[#allocation3 + %s1221_s5]] }
  0xea   : > { %vm3406_vm13 = vmxor %vm3380_vm2, %vm2318_vm4  ;;  %v1156_v10 = vstv %s1154_s10  ;;  %vm1159_vm1 = vcmp.gt.f32.partialorder %v3332_v54, 0.0  ;;  %vm1160_vm15 = vcmp.gt.f32.partialorder %v1112_v63, 0.0  ;;  %v1162_v41 = vstv %s3312_s7  ;;  %s3447_s7 = sld [smem:[#allocation3 + %s1225_s28]] }
  0xeb   : > { %vm1141_vm5 = vmand %vm3368_vm11, %vm3397_vm9  ;;  %v1157_v27 = vsel %vm1152_vm0, %v1155_v26, %v1156_v10  ;;  %v1158_v33 = vsel %vm1153_vm7, %v1155_v26, %v1156_v10  ;;  %v1163_v34 = vstv %s1161_s16  ;;  %v1166_v51 = vmin.f32 %v3328_v57, %v1148_v20  ;;  %s3484_s10 = sld [smem:[#allocation3 + %s1227_s9]] }
  0xec   : > { %vm1142_vm6 = vmand %vm3387_vm3, %vm3406_vm13  ;;  %v1167_v46 = vmin.f32 %v3335_v9, %v1148_v20  ;;  %v1172_v18 = vmin.f32 %v1119_v47, %v1155_v26  ;;  %v1164_v28 = vsel %vm1159_vm1, %v1162_v41, %v1163_v34  ;;  %v1165_v11 = vsel %vm1160_vm15, %v1162_v41, %v1163_v34  ;;  %s3491_s16 = sld [smem:[#allocation3 + %s1231_s8]] }
  0xed   : > { %vm1143_vm12 = vmand %vm3350_vm8, %vm3397_vm9  ;;  %v1173_v59 = vmin.f32 %v1120_v31, %v1155_v26  ;;  %v1178_v63 = vmin.f32 %v1123_v32, %v1162_v41  ;;  %v1168_v57 = vmax.f32 %v1166_v51, %v1149_v23  ;;  %v1179_v43 = vmin.f32 %v1124_v16, %v1162_v41  ;;  %s3506_s5 = sld [smem:[#allocation3 + %s1235_s27]]  ;;  %s1421_s27 = sadd.s32 81, %s2451_s17 }
  0xee   : > { %vm1144_vm0 = vmand %vm3354_vm10, %vm3406_vm13  ;;  %v1169_v9 = vmax.f32 %v1167_v46, %v1149_v23  ;;  %v1174_v0 = vmax.f32 %v1172_v18, %v1156_v10  ;;  %v1237_v31 = vstv %s3358_s12  ;;  %v1240_v52 = vstv %s3373_s19  ;;  %s1233_s12 = sadd.s32 73, %s2451_s17  ;;  %s3488_s19 = sld [smem:[#allocation3 + %s1229_s11]] }
  0xef   : > { %v1175_v54 = vmax.f32 %v1173_v59, %v1156_v10  ;;  %v1180_v47 = vmax.f32 %v1178_v63, %v1163_v34  ;;  %v1170_v56 = vsel %vm1141_vm5, %v1150_v39, %v1168_v57  ;;  %v1181_v32 = vmax.f32 %v1179_v43, %v1163_v34  ;;  %s3497_s29 = sld [smem:[#allocation3 + %s1233_s12]]  ;;  %v2145_v63 = vld [vmem:[%s2446_s15 + $0x38] sm:$0xff]  ;;  %s1411_s11 = sadd.s32 76, %s2451_s17 }
  0xf0   : > { %v1171_v60 = vsel %vm1142_vm6, %v1151_v36, %v1169_v9  ;;  %v1176_v22 = vsel %vm1143_vm12, %v1157_v27, %v1174_v0  ;;  %v1184_v15 = vsub.f32 %v1170_v56, %v3250_v42  ;;  %v1238_v42 = vsub.f32 %v3177_v19, %v1237_v31  ;;  %s3549_s28 = sld [smem:[#allocation3 + %s1215_s6]]  ;;  %s1425_s6 = sadd.s32 83, %s2451_s17 }
  0xf1   : > { %v1177_v48 = vsel %vm1144_vm0, %v1158_v33, %v1175_v54  ;;  %v1182_v14 = vsel %vm3376_vm14, %v1164_v28, %v1180_v47  ;;  %v1185_v61 = vsub.f32 %v1171_v60, %v3253_v45  ;;  %v1183_v16 = vsel %vm3380_vm2, %v1165_v11, %v1181_v32  ;;  %v2144_v28 = vld [vmem:[%s2446_s15 + $0x30] sm:$0xff]  ;;  %s3594_s12 = sld [smem:[#allocation3 + %s1411_s11]]  ;;  %s1433_s11 = sadd.s32 87, %s2451_s17 }
  0xf2   : > { %v1188_v35 = vsub.f32 %v1176_v22, %v3265_v62  ;;  %v1189_v20 = vsub.f32 %v1177_v48, %v3267_v55  ;;  %v1194_v13 = vsub.f32 %v1182_v14, %v3293_v53  ;;  %v1186_v21 = vmul.f32 %v1184_v15, %v1184_v15 }
  0xf3   : > { %v1187_v5 = vmul.f32 %v1185_v61, %v1185_v61  ;;  %v1195_v23 = vsub.f32 %v1183_v16, %v3295_v50  ;;  %v1239_v55 = vsub.f32 %v3203_v7, %v1237_v31  ;;  %v1241_v50 = vsub.f32 %v3207_v1, %v1240_v52 }
  0xf4   : > { %v1190_v45 = vmul.f32 %v1188_v35, %v1188_v35  ;;  %v1191_v8 = vmul.f32 %v1189_v20, %v1189_v20  ;;  %v1196_v62 = vmul.f32 %v1194_v13, %v1194_v13  ;;  %v1242_v26 = vsub.f32 %v3214_v12, %v1240_v52 }
  0xf5   : > { %v1197_v53 = vmul.f32 %v1195_v23, %v1195_v23  ;;  %v1243_v37 = vstv %s3421_s26  ;;  %v1246_v33 = vstv %s3430_s0  ;;  %v1249_v41 = vstv %s3439_s4  ;;  %s1213_s26 = sadd.s32 63, %s2451_s17  ;;  %s1217_s4 = sadd.s32 65, %s2451_s17 }
  0xf6   : > { %v1192_v39 = vadd.f32 %v1190_v45, %v1186_v21  ;;  %v1193_v36 = vadd.f32 %v1191_v8, %v1187_v5  ;;  %v1244_v10 = vsub.f32 %v3223_v6, %v1243_v37  ;;  %v1245_v27 = vsub.f32 %v3227_v40, %v1243_v37  ;;  %s3541_s0 = sld [smem:[#allocation3 + %s1213_s26]] }
  0xf7   : > { %v1254_v34 = vstv %s3445_s25  ;;  %v1259_v51 = vstv %s3447_s7  ;;  %v1247_v11 = vmul.f32 %v1246_v33, %v1238_v42  ;;  %v1248_v59 = vmul.f32 %v1246_v33, %v1239_v55  ;;  %s3559_s25 = sld [smem:[#allocation3 + %s1217_s4]]  ;;  %s1409_s7 = sadd.s32 75, %s2451_s17 }
  0xf8   : > { %v1198_v46 = vadd.f32 %v1196_v62, %v1192_v39  ;;  %v1199_v18 = vadd.f32 %v1197_v53, %v1193_v36  ;;  %v1250_v57 = vmul.f32 %v1249_v41, %v1241_v50  ;;  %v1251_v9 = vmul.f32 %v1249_v41, %v1242_v26  ;;  %s1356_s8 = ssub.f32 0.0, %s3549_s28 }
  0xf9   : > { %v1255_v0 = vmul.f32 %v1254_v34, %v1244_v10  ;;  %v1256_v43 = vmul.f32 %v1254_v34, %v1245_v27  ;;  %v3511_v54 = vadd.f32 %v3246_v25, %v3239_v24  ;;  %v3515_v47 = vadd.f32 %v3248_v30, %v3243_v17  ;;  %s3659_s26 = sld [smem:[#allocation3 + %s1421_s27]] }
  0xfa   : > { %v1260_v31 = vmul.f32 %v1259_v51, %v1238_v42  ;;  %v1261_v52 = vmul.f32 %v1259_v51, %v1239_v55  ;;  %v3517_v56 = vmul.f32 %v2144_v28, %v1198_v46  ;;  %v1252_v60 = vadd.f32 %v1250_v57, %v1247_v11  ;;  %s3680_s4 = sld [smem:[#allocation3 + %s1425_s6]] }
  0xfb   : > { %v1253_v22 = vadd.f32 %v1251_v9, %v1248_v59  ;;  %v1262_v32 = vstv %s3484_s10  ;;  %v3520_v48 = vmul.f32 %v2145_v63, %v1199_v18  ;;  %v1267_v24 = vstv %s3488_s19  ;;  %s3583_s10 = sld [smem:[#allocation3 + %s1409_s7]] }
  0xfc   : > { %v1263_v14 = vmul.f32 %v1262_v32, %v1241_v50  ;;  %v1264_v15 = vmul.f32 %v1262_v32, %v1242_v26  ;;  %v3523_v25 = vadd.f32 %v1255_v0, %v1252_v60  ;;  %v1268_v30 = vmul.f32 %v1267_v24, %v1244_v10  ;;  %s1349_s9 = ssub.f32 0.0, %s3541_s0 }
  0xfd   : > { %v3525_v17 = vadd.f32 %v1256_v43, %v1253_v22  ;;  %v1269_v61 = vmul.f32 %v1267_v24, %v1245_v27  ;;  %v1272_v20 = vstv %s3491_s16  ;;  %v1275_v13 = vstv %s3497_s29  ;;  %s1363_s19 = ssub.f32 0.0, %s3559_s25  ;;  %s1413_s16 = sadd.s32 77, %s2451_s17 }
  0xfe   : > { %v1265_v16 = vadd.f32 %v1263_v14, %v1260_v31  ;;  %v1266_v35 = vadd.f32 %v1264_v15, %v1261_v52  ;;  %v1273_v21 = vmul.f32 %v1272_v20, %v1238_v42  ;;  %v1274_v5 = vmul.f32 %v1272_v20, %v1239_v55  ;;  %s1423_s29 = sadd.s32 82, %s2451_s17 }
  0xff   : > { %v1276_v23 = vmul.f32 %v1275_v13, %v1241_v50  ;;  %v1277_v45 = vmul.f32 %v1275_v13, %v1242_v26  ;;  %v1280_v53 = vstv %s3506_s5  ;;  %v1285_v37 = vmul.f32 %v3261_v29, %v1246_v33  ;;  %s3652_s5 = sld [smem:[#allocation3 + %s1413_s16]]  ;;  %s1437_s16 = sadd.s32 89, %s2451_s17 }
 0x100   : > { %v3530_v8 = vadd.f32 %v1268_v30, %v1265_v16  ;;  %v3532_v62 = vadd.f32 %v1269_v61, %v1266_v35  ;;  %v1281_v46 = vmul.f32 %v1280_v53, %v1244_v10  ;;  %v1282_v18 = vmul.f32 %v1280_v53, %v1245_v27 }
 0x101   : > { %v1278_v39 = vadd.f32 %v1276_v23, %v1273_v21  ;;  %v1279_v36 = vadd.f32 %v1277_v45, %v1274_v5  ;;  %v1286_v28 = vmul.f32 %v3271_v2, %v1246_v33  ;;  %v1287_v42 = vmul.f32 %v3275_v44, %v1249_v41 }
 0x102   : > { %v1288_v55 = vmul.f32 %v3279_v3, %v1249_v41  ;;  %v1291_v50 = vmul.f32 %v3283_v58, %v1254_v34  ;;  %v1292_v59 = vmul.f32 %v3287_v4, %v1254_v34  ;;  %v1295_v63 = vmul.f32 %v3261_v29, %v1259_v51 }
 0x103   : > { %v3543_v26 = vadd.f32 %v1281_v46, %v1278_v39  ;;  %v3545_v11 = vadd.f32 %v1282_v18, %v1279_v36  ;;  %v1289_v10 = vadd.f32 %v1287_v42, %v1285_v37  ;;  %v1296_v33 = vmul.f32 %v3271_v2, %v1259_v51 }
 0x104   : > { %v1290_v27 = vadd.f32 %v1288_v55, %v1286_v28  ;;  %v1297_v41 = vmul.f32 %v3275_v44, %v1262_v32  ;;  %v1298_v57 = vmul.f32 %v3279_v3, %v1262_v32  ;;  %v1301_v9 = vmul.f32 %v3283_v58, %v1267_v24 }
 0x105   : > { %v1302_v0 = vmul.f32 %v3287_v4, %v1267_v24  ;;  %v1305_v43 = vmul.f32 %v3261_v29, %v1272_v20  ;;  %v1293_v34 = vadd.f32 %v1291_v50, %v1289_v10  ;;  %v1306_v60 = vmul.f32 %v3271_v2, %v1272_v20 }
 0x106   : > { %v1294_v31 = vadd.f32 %v1292_v59, %v1290_v27  ;;  %v1299_v52 = vadd.f32 %v1297_v41, %v1295_v63  ;;  %v1300_v22 = vadd.f32 %v1298_v57, %v1296_v33  ;;  %v1307_v51 = vmul.f32 %v3275_v44, %v1275_v13 }
 0x107   : > { %v1308_v14 = vmul.f32 %v3279_v3, %v1275_v13  ;;  %v1311_v32 = vmul.f32 %v3283_v58, %v1280_v53  ;;  %v1312_v24 = vmul.f32 %v3287_v4, %v1280_v53  ;;  %v1315_v30 = vmul.f32 %v3318_v38, %v1293_v34 }
 0x108   : > { %v1303_v15 = vadd.f32 %v1301_v9, %v1299_v52  ;;  %v1316_v61 = vmul.f32 %v3323_v49, %v1294_v31  ;;  %v1304_v16 = vadd.f32 %v1302_v0, %v1300_v22  ;;  %v1309_v35 = vadd.f32 %v1307_v51, %v1305_v43 }
 0x109   : > { %v1310_v20 = vadd.f32 %v1308_v14, %v1306_v60  ;;  %v1327_v21 = vand.u32 2147483647, %v1293_v34  ;;  %v3568_v5 = vadd.f32 %v1315_v30, %v3523_v25  ;;  %v1328_v45 = vand.u32 2147483647, %v1294_v31 }
 0x10a   : > { %v3571_v13 = vadd.f32 %v1316_v61, %v3525_v17  ;;  %v1319_v23 = vmul.f32 %v3318_v38, %v1303_v15  ;;  %v1313_v53 = vadd.f32 %v1311_v32, %v1309_v35  ;;  %v1320_v39 = vmul.f32 %v3323_v49, %v1304_v16 }
 0x10b   : > { %v1314_v37 = vadd.f32 %v1312_v24, %v1310_v20  ;;  %v1329_v36 = vand.u32 2147483647, %v1303_v15  ;;  %v1330_v18 = vand.u32 2147483647, %v1304_v16  ;;  %vm1347_vm8 = vcmp.gt.f32.partialorder %v1293_v34, 0.0 }
 0x10c   : > { %v1321_v46 = vadd.f32 %v1319_v23, %v3530_v8  ;;  %vm1348_vm10 = vcmp.gt.f32.partialorder %v1294_v31, 0.0  ;;  %v1322_v28 = vadd.f32 %v1320_v39, %v3532_v62  ;;  %v1323_v42 = vmul.f32 %v3318_v38, %v1313_v53 }
 0x10d   : > { %v1324_v55 = vmul.f32 %v3323_v49, %v1314_v37  ;;  %v1331_v50 = vand.u32 2147483647, %v1313_v53  ;;  %v1332_v59 = vand.u32 2147483647, %v1314_v37  ;;  %vm3585_vm11 = vcmp.gt.f32.partialorder %v1329_v36, %v1327_v21 }
 0x10e   : > { %vm3589_vm14 = vcmp.gt.f32.partialorder %v1330_v18, %v1328_v45  ;;  %v1350_v27 = vstv %s3541_s0  ;;  %v1325_v33 = vadd.f32 %v1323_v42, %v3543_v26  ;;  %v1335_v57 = vsel %vm3585_vm11, %v1329_v36, %v1327_v21  ;;  %vm3605_vm2 = vmxor %vm3585_vm11, %vm2318_vm4  ;;  %s3666_s0 = sld [smem:[#allocation3 + %s1423_s29]] }
 0x10f   : > { %v1326_v41 = vadd.f32 %v1324_v55, %v3545_v11  ;;  %v1336_v9 = vsel %vm3589_vm14, %v1330_v18, %v1328_v45  ;;  %vm3610_vm3 = vcmp.gt.f32.partialorder %v1331_v50, %v1335_v57  ;;  %vm3621_vm7 = vmxor %vm3589_vm14, %vm2318_vm4  ;;  %v1351_v22 = vstv %s1349_s9  ;;  %s1431_s9 = sadd.s32 86, %s2451_s17  ;;  %s3731_s29 = sld [smem:[#allocation3 + %s1437_s16]] }
 0x110   : > { %vm3614_vm9 = vcmp.gt.f32.partialorder %v1332_v59, %v1336_v9  ;;  %vm1354_vm13 = vcmp.gt.f32.partialorder %v1303_v15, 0.0  ;;  %vm3629_vm1 = vmxor %vm3610_vm3, %vm2318_vm4  ;;  %v1352_v14 = vsel %vm1347_vm8, %v1350_v27, %v1351_v22  ;;  %v1353_v32 = vsel %vm1348_vm10, %v1350_v27, %v1351_v22  ;;  %s1623_s16 = sadd.s32 96, %s2451_s17 }
 0x111   : > { %vm1355_vm5 = vcmp.gt.f32.partialorder %v1304_v16, 0.0  ;;  %v1357_v24 = vstv %s3549_s28  ;;  %vm3640_vm15 = vmxor %vm3614_vm9, %vm2318_vm4  ;;  %v1358_v61 = vstv %s1356_s8  ;;  %vm1361_vm6 = vcmp.gt.f32.partialorder %v1313_v53, 0.0  ;;  %s1427_s28 = sadd.s32 84, %s2451_s17 }
 0x112   : > { %vm1362_vm12 = vcmp.gt.f32.partialorder %v1314_v37, 0.0  ;;  %v1364_v35 = vstv %s3559_s25  ;;  %vm1343_vm0 = vmand %vm3605_vm2, %vm3629_vm1  ;;  %v1359_v34 = vsel %vm1354_vm13, %v1357_v24, %v1358_v61  ;;  %v1360_v31 = vsel %vm1355_vm5, %v1357_v24, %v1358_v61  ;;  %s1429_s25 = sadd.s32 85, %s2451_s17  ;;  %s3694_s7 = sld [smem:[#allocation3 + %s1427_s28]] }
 0x113   : > { %v1365_v16 = vstv %s1363_s19  ;;  %v1368_v20 = vmin.f32 %v3568_v5, %v1350_v27  ;;  %vm1344_vm8 = vmand %vm3621_vm7, %vm3640_vm15  ;;  %v1369_v45 = vmin.f32 %v3571_v13, %v1350_v27  ;;  %v1374_v15 = vmin.f32 %v1321_v46, %v1357_v24  ;;  %s3712_s8 = sld [smem:[#allocation3 + %s1429_s25]]  ;;  %s1611_s25 = sadd.s32 90, %s2451_s17 }
 0x114   : > { %v1366_v21 = vsel %vm1361_vm6, %v1364_v35, %v1365_v16  ;;  %v1367_v23 = vsel %vm1362_vm12, %v1364_v35, %v1365_v16  ;;  %vm1345_vm10 = vmand %vm3585_vm11, %vm3629_vm1  ;;  %v1375_v53 = vmin.f32 %v1322_v28, %v1357_v24  ;;  %v1380_v37 = vmin.f32 %v1325_v33, %v1364_v35  ;;  %s3720_s19 = sld [smem:[#allocation3 + %s1433_s11]] }
 0x115   : > { %v1370_v5 = vmax.f32 %v1368_v20, %v1351_v22  ;;  %v1381_v39 = vmin.f32 %v1326_v41, %v1364_v35  ;;  %vm1346_vm13 = vmand %vm3589_vm14, %vm3640_vm15  ;;  %v1371_v13 = vmax.f32 %v1369_v45, %v1351_v22  ;;  %v1376_v36 = vmax.f32 %v1374_v15, %v1358_v61 }
 0x116   : > { %v1439_v46 = vstv %s3583_s10  ;;  %v1442_v18 = vstv %s3594_s12  ;;  %v1377_v42 = vmax.f32 %v1375_v53, %v1358_v61  ;;  %v1382_v55 = vmax.f32 %v1380_v37, %v1365_v16  ;;  %s1435_s10 = sadd.s32 88, %s2451_s17  ;;  %s3716_s12 = sld [smem:[#allocation3 + %s1431_s9]] }
 0x117   : > { %v1372_v28 = vsel %vm1343_vm0, %v1352_v14, %v1370_v5  ;;  %v1383_v50 = vmax.f32 %v1381_v39, %v1365_v16  ;;  %v1373_v59 = vsel %vm1344_vm8, %v1353_v32, %v1371_v13  ;;  %v1378_v27 = vsel %vm1345_vm10, %v1359_v34, %v1376_v36  ;;  %s3724_s27 = sld [smem:[#allocation3 + %s1435_s10]] }
 0x118   : > { %v1386_v33 = vsub.f32 %v1372_v28, %v3523_v25  ;;  %v1440_v41 = vsub.f32 %v3177_v19, %v1439_v46  ;;  %v1379_v57 = vsel %vm1346_vm13, %v1360_v31, %v1377_v42  ;;  %v1384_v63 = vsel %vm3610_vm3, %v1366_v21, %v1382_v55  ;;  %s3808_s9 = sld [smem:[#allocation3 + %s1611_s25]]  ;;  %s1631_s25 = sadd.s32 100, %s2451_s17 }
 0x119   : > { %v1385_v9 = vsel %vm3614_vm9, %v1367_v23, %v1383_v50  ;;  %v1387_v0 = vsub.f32 %v1373_v59, %v3525_v17  ;;  %v1390_v60 = vsub.f32 %v1378_v27, %v3530_v8  ;;  %v1391_v19 = vsub.f32 %v1379_v57, %v3532_v62 }
 0x11a   : > { %v1388_v25 = vmul.f32 %v1386_v33, %v1386_v33  ;;  %v1396_v10 = vsub.f32 %v1384_v63, %v3543_v26  ;;  %v1397_v52 = vsub.f32 %v1385_v9, %v3545_v11  ;;  %v1441_v17 = vsub.f32 %v3203_v7, %v1439_v46 }
 0x11b   : > { %v1389_v43 = vmul.f32 %v1387_v0, %v1387_v0  ;;  %v1443_v22 = vsub.f32 %v3207_v1, %v1442_v18  ;;  %v1392_v8 = vmul.f32 %v1390_v60, %v1390_v60  ;;  %v1393_v51 = vmul.f32 %v1391_v19, %v1391_v19 }
 0x11c   : > { %v1398_v62 = vmul.f32 %v1396_v10, %v1396_v10  ;;  %v1444_v26 = vsub.f32 %v3214_v12, %v1442_v18  ;;  %v1399_v14 = vmul.f32 %v1397_v52, %v1397_v52  ;;  %v1445_v11 = vstv %s3652_s5  ;;  %s1415_s5 = sadd.s32 78, %s2451_s17 }
 0x11d   : > { %v1448_v32 = vstv %s3659_s26  ;;  %v1451_v24 = vstv %s3666_s0  ;;  %v1394_v30 = vadd.f32 %v1392_v8, %v1388_v25  ;;  %v1395_v7 = vadd.f32 %v1393_v51, %v1389_v43  ;;  %s1417_s26 = sadd.s32 79, %s2451_s17  ;;  %s3774_s6 = sld [smem:[#allocation3 + %s1415_s5]] }
 0x11e   : > { %v1446_v1 = vsub.f32 %v3223_v6, %v1445_v11  ;;  %v1447_v61 = vsub.f32 %v3227_v40, %v1445_v11  ;;  %v1449_v35 = vmul.f32 %v1448_v32, %v1440_v41  ;;  %v1450_v34 = vmul.f32 %v1448_v32, %v1441_v17  ;;  %s1419_s0 = sadd.s32 80, %s2451_s17  ;;  %s3780_s28 = sld [smem:[#allocation3 + %s1417_s26]] }
 0x11f   : > { %v1452_v31 = vmul.f32 %v1451_v24, %v1443_v22  ;;  %v1453_v12 = vmul.f32 %v1451_v24, %v1444_v26  ;;  %v1456_v16 = vstv %s3680_s4  ;;  %v1461_v20 = vstv %s3694_s7  ;;  %s3788_s4 = sld [smem:[#allocation3 + %s1419_s0]]  ;;  %s1613_s7 = sadd.s32 91, %s2451_s17 }
 0x120   : > { %v1457_v45 = vmul.f32 %v1456_v16, %v1446_v1  ;;  %v1458_v15 = vmul.f32 %v1456_v16, %v1447_v61  ;;  %v3737_v6 = vadd.f32 %v3517_v56, %v3511_v54  ;;  %v3741_v40 = vadd.f32 %v3520_v48, %v3515_v47  ;;  %s3836_s10 = sld [smem:[#allocation3 + %s1613_s7]]  ;;  %s1627_s5 = sadd.s32 98, %s2451_s17 }
 0x121   : > { %v1454_v21 = vadd.f32 %v1452_v31, %v1449_v35  ;;  %v1455_v23 = vadd.f32 %v1453_v12, %v1450_v34  ;;  %v1462_v5 = vmul.f32 %v1461_v20, %v1440_v41  ;;  %v1463_v53 = vmul.f32 %v1461_v20, %v1441_v17  ;;  %s3896_s26 = sld [smem:[#allocation3 + %s1623_s16]]  ;;  %s1633_s7 = sadd.s32 101, %s2451_s17 }
 0x122   : > { %v3743_v37 = vadd.f32 %v1398_v62, %v1394_v30  ;;  %v3745_v39 = vadd.f32 %v1399_v14, %v1395_v7  ;;  %v1464_v36 = vstv %s3712_s8  ;;  %v1469_v54 = vstv %s3716_s12 }
 0x123   : > { %v3747_v13 = vadd.f32 %v1457_v45, %v1454_v21  ;;  %v3750_v46 = vadd.f32 %v1458_v15, %v1455_v23  ;;  %v1465_v18 = vmul.f32 %v1464_v36, %v1443_v22  ;;  %v1466_v28 = vmul.f32 %v1464_v36, %v1444_v26  ;;  %s1551_s11 = ssub.f32 0.0, %s3774_s6 }
 0x124   : > { %v1470_v56 = vmul.f32 %v1469_v54, %v1446_v1  ;;  %v1471_v42 = vmul.f32 %v1469_v54, %v1447_v61  ;;  %v1474_v47 = vstv %s3720_s19  ;;  %v1477_v48 = vstv %s3724_s27  ;;  %s1558_s8 = ssub.f32 0.0, %s3780_s28  ;;  %s1615_s19 = sadd.s32 92, %s2451_s17 }
 0x125   : > { %v1467_v55 = vadd.f32 %v1465_v18, %v1462_v5  ;;  %v1468_v50 = vadd.f32 %v1466_v28, %v1463_v53  ;;  %v1475_v59 = vmul.f32 %v1474_v47, %v1440_v41  ;;  %v1476_v27 = vmul.f32 %v1474_v47, %v1441_v17  ;;  %s1565_s12 = ssub.f32 0.0, %s3788_s4  ;;  %s1625_s27 = sadd.s32 97, %s2451_s17 }
 0x126   : > { %v1478_v33 = vmul.f32 %v1477_v48, %v1443_v22  ;;  %v1479_v57 = vmul.f32 %v1477_v48, %v1444_v26  ;;  %v1482_v63 = vstv %s3731_s29  ;;  %v1487_v9 = vmul.f32 %v3261_v29, %v1448_v32  ;;  %s3888_s29 = sld [smem:[#allocation3 + %s1615_s19]]  ;;  %s1639_s19 = sadd.s32 104, %s2451_s17 }
 0x127   : > { %v3757_v0 = vadd.f32 %v1470_v56, %v1467_v55  ;;  %v3759_v25 = vadd.f32 %v1471_v42, %v1468_v50  ;;  %v1483_v60 = vmul.f32 %v1482_v63, %v1446_v1  ;;  %v1484_v19 = vmul.f32 %v1482_v63, %v1447_v61  ;;  %s3903_s0 = sld [smem:[#allocation3 + %s1625_s27]] }
 0x128   : > { %v1480_v10 = vadd.f32 %v1478_v33, %v1475_v59  ;;  %v1481_v43 = vadd.f32 %v1479_v57, %v1476_v27  ;;  %v1488_v52 = vmul.f32 %v3271_v2, %v1448_v32  ;;  %v1489_v41 = vmul.f32 %v3275_v44, %v1451_v24  ;;  %s3985_s27 = sld [smem:[#allocation3 + %s1639_s19]]  ;;  %s1827_s19 = sadd.s32 112, %s2451_s17 }
 0x129   : > { %v1490_v17 = vmul.f32 %v3279_v3, %v1451_v24  ;;  %v1493_v22 = vmul.f32 %v3283_v58, %v1456_v16  ;;  %v1494_v8 = vmul.f32 %v3287_v4, %v1456_v16  ;;  %v1497_v51 = vmul.f32 %v3261_v29, %v1461_v20 }
 0x12a   : > { %v3769_v62 = vadd.f32 %v1483_v60, %v1480_v10  ;;  %v3771_v26 = vadd.f32 %v1484_v19, %v1481_v43  ;;  %v1491_v14 = vadd.f32 %v1489_v41, %v1487_v9  ;;  %v1498_v11 = vmul.f32 %v3271_v2, %v1461_v20 }
 0x12b   : > { %v1492_v32 = vadd.f32 %v1490_v17, %v1488_v52  ;;  %v1499_v30 = vmul.f32 %v3275_v44, %v1464_v36  ;;  %v1500_v24 = vmul.f32 %v3279_v3, %v1464_v36  ;;  %v1503_v7 = vmul.f32 %v3283_v58, %v1469_v54  ;;  %v3976_v52 = vld [vmem:[%s2444_s14 + $0x20] sm:$0xff] }
 0x12c   : > { %v3782_v1 = vadd.f32 %v1493_v22, %v1491_v14  ;;  %v1504_v61 = vmul.f32 %v3287_v4, %v1469_v54  ;;  %v1507_v35 = vmul.f32 %v3261_v29, %v1474_v47  ;;  %v1508_v34 = vmul.f32 %v3271_v2, %v1474_v47 }
 0x12d   : > { %v1496_v31 = vadd.f32 %v1494_v8, %v1492_v32  ;;  %v1501_v12 = vadd.f32 %v1499_v30, %v1497_v51  ;;  %v1502_v16 = vadd.f32 %v1500_v24, %v1498_v11  ;;  %v1509_v20 = vmul.f32 %v3275_v44, %v1477_v48 }
 0x12e   : > { %v1510_v21 = vmul.f32 %v3279_v3, %v1477_v48  ;;  %v1513_v23 = vmul.f32 %v3283_v58, %v1482_v63  ;;  %v1514_v45 = vmul.f32 %v3287_v4, %v1482_v63  ;;  %v1517_v15 = vmul.f32 %v3318_v38, %v3782_v1 }
 0x12f   : > { %v1505_v29 = vadd.f32 %v1503_v7, %v1501_v12  ;;  %v1506_v5 = vadd.f32 %v1504_v61, %v1502_v16  ;;  %v1511_v2 = vadd.f32 %v1509_v20, %v1507_v35  ;;  %v1518_v53 = vmul.f32 %v3323_v49, %v1496_v31 }
 0x130   : > { %v1512_v36 = vadd.f32 %v1510_v21, %v1508_v34  ;;  %v3798_v44 = vadd.f32 %v1517_v15, %v3747_v13  ;;  %v1529_v3 = vand.u32 2147483647, %v3782_v1  ;;  %v1530_v58 = vand.u32 2147483647, %v1496_v31 }
 0x131   : > { %v1515_v18 = vadd.f32 %v1513_v23, %v1511_v2  ;;  %v3802_v4 = vadd.f32 %v1518_v53, %v3750_v46  ;;  %v1521_v28 = vmul.f32 %v3318_v38, %v1505_v29  ;;  %v1522_v54 = vmul.f32 %v3323_v49, %v1506_v5 }
 0x132   : > { %v1516_v56 = vadd.f32 %v1514_v45, %v1512_v36  ;;  %v1531_v42 = vand.u32 2147483647, %v1505_v29  ;;  %v1532_v47 = vand.u32 2147483647, %v1506_v5  ;;  %vm1549_vm11 = vcmp.gt.f32.partialorder %v3782_v1, 0.0  ;;  %v2146_v36 = vld [vmem:[%s2446_s15 + $0x40] sm:$0xff] }
 0x133   : > { %v1523_v48 = vadd.f32 %v1521_v28, %v3757_v0  ;;  %v1524_v55 = vadd.f32 %v1522_v54, %v3759_v25  ;;  %v1525_v50 = vmul.f32 %v3318_v38, %v1515_v18  ;;  %v1533_v59 = vand.u32 2147483647, %v1515_v18 }
 0x134   : > { %v1526_v27 = vmul.f32 %v3323_v49, %v1516_v56  ;;  %v1534_v33 = vand.u32 2147483647, %v1516_v56  ;;  %vm3815_vm14 = vcmp.gt.f32.partialorder %v1531_v42, %v1529_v3  ;;  %vm3819_vm2 = vcmp.gt.f32.partialorder %v1532_v47, %v1530_v58 }
 0x135   : > { %v1527_v9 = vadd.f32 %v1525_v50, %v3769_v62  ;;  %v1537_v38 = vsel %vm3815_vm14, %v1531_v42, %v1529_v3  ;;  %v1538_v49 = vsel %vm3819_vm2, %v1532_v47, %v1530_v58  ;;  %vm3832_vm3 = vmxor %vm3815_vm14, %vm2318_vm4  ;;  %vm1550_vm9 = vcmp.gt.f32.partialorder %v1496_v31, 0.0  ;;  %v2147_v50 = vld [vmem:[%s2446_s15 + $0x48] sm:$0xff] }
 0x136   : > { %v1528_v19 = vadd.f32 %v1526_v27, %v3771_v26  ;;  %vm3839_vm7 = vcmp.gt.f32.partialorder %v1533_v59, %v1537_v38  ;;  %vm3843_vm1 = vcmp.gt.f32.partialorder %v1534_v33, %v1538_v49  ;;  %vm3850_vm5 = vmxor %vm3819_vm2, %vm2318_vm4  ;;  %v1552_v41 = vstv %s3774_s6  ;;  %s1629_s6 = sadd.s32 99, %s2451_s17  ;;  %v3968_v38 = vld [vmem:[%s2444_s14 + $0x18] sm:$0xff] }
 0x137   : > { %vm3859_vm15 = vmxor %vm3839_vm7, %vm2318_vm4  ;;  %v1553_v22 = vstv %s1551_s11  ;;  %vm1556_vm6 = vcmp.gt.f32.partialorder %v1505_v29, 0.0  ;;  %vm1557_vm12 = vcmp.gt.f32.partialorder %v1506_v5, 0.0  ;;  %v1559_v8 = vstv %s3780_s28  ;;  %s3905_s28 = sld [smem:[#allocation3 + %s1627_s5]]  ;;  %s1619_s5 = sadd.s32 94, %s2451_s17 }
 0x138   : > { %vm3868_vm0 = vmxor %vm3843_vm1, %vm2318_vm4  ;;  %v1554_v14 = vsel %vm1549_vm11, %v1552_v41, %v1553_v22  ;;  %v1555_v11 = vsel %vm1550_vm9, %v1552_v41, %v1553_v22  ;;  %v1560_v32 = vstv %s1558_s8  ;;  %vm1563_vm8 = vcmp.gt.f32.partialorder %v1515_v18, 0.0  ;;  %s3947_s11 = sld [smem:[#allocation3 + %s1631_s25]]  ;;  %s1637_s8 = sadd.s32 103, %s2451_s17 }
 0x139   : > { %vm1545_vm10 = vmand %vm3832_vm3, %vm3859_vm15  ;;  %v1561_v30 = vsel %vm1556_vm6, %v1559_v8, %v1560_v32  ;;  %v1562_v24 = vsel %vm1557_vm12, %v1559_v8, %v1560_v32  ;;  %vm1564_vm13 = vcmp.gt.f32.partialorder %v1516_v56, 0.0  ;;  %v1566_v7 = vstv %s3788_s4  ;;  %s3925_s4 = sld [smem:[#allocation3 + %s1629_s6]]  ;;  %s1621_s6 = sadd.s32 95, %s2451_s17 }
 0x13a   : > { %vm1546_vm11 = vmand %vm3850_vm5, %vm3868_vm0  ;;  %v1567_v1 = vstv %s1565_s12  ;;  %v1570_v61 = vmin.f32 %v3798_v44, %v1552_v41  ;;  %v1571_v35 = vmin.f32 %v3802_v4, %v1552_v41  ;;  %v1576_v34 = vmin.f32 %v1523_v48, %v1559_v8  ;;  %s3973_s16 = sld [smem:[#allocation3 + %s1637_s8]] }
 0x13b   : > { %vm1547_vm9 = vmand %vm3815_vm14, %vm3859_vm15  ;;  %v1568_v31 = vsel %vm1563_vm8, %v1566_v7, %v1567_v1  ;;  %v1569_v12 = vsel %vm1564_vm13, %v1566_v7, %v1567_v1  ;;  %v1577_v16 = vmin.f32 %v1524_v55, %v1559_v8  ;;  %v1582_v20 = vmin.f32 %v1527_v9, %v1566_v7 }
 0x13c   : > { %vm1548_vm6 = vmand %vm3819_vm2, %vm3868_vm0  ;;  %v1572_v21 = vmax.f32 %v1570_v61, %v1553_v22  ;;  %v1573_v23 = vmax.f32 %v1571_v35, %v1553_v22  ;;  %v1578_v45 = vmax.f32 %v1576_v34, %v1560_v32  ;;  %v1583_v15 = vmin.f32 %v1528_v19, %v1566_v7  ;;  %v3980_v22 = vld [vmem:[%s2444_s14 + $0x28] sm:$0xff] }
 0x13d   : > { %v1579_v29 = vmax.f32 %v1577_v16, %v1560_v32  ;;  %v1584_v5 = vmax.f32 %v1582_v20, %v1567_v1  ;;  %v1641_v2 = vstv %s3808_s9  ;;  %v1644_v53 = vstv %s3836_s10  ;;  %s1635_s9 = sadd.s32 102, %s2451_s17  ;;  %s3950_s10 = sld [smem:[#allocation3 + %s1633_s7]] }
 0x13e   : > { %v1574_v44 = vsel %vm1545_vm10, %v1554_v14, %v1572_v21  ;;  %v1575_v3 = vsel %vm1546_vm11, %v1555_v11, %v1573_v23  ;;  %v1580_v58 = vsel %vm1547_vm9, %v1561_v30, %v1578_v45  ;;  %v1585_v18 = vmax.f32 %v1583_v15, %v1567_v1  ;;  %s3960_s12 = sld [smem:[#allocation3 + %s1635_s9]]  ;;  %s1815_s7 = sadd.s32 106, %s2451_s17 }
 0x13f   : > { %v1581_v4 = vsel %vm1548_vm6, %v1562_v24, %v1579_v29  ;;  %v1586_v28 = vsel %vm3839_vm7, %v1568_v31, %v1584_v5  ;;  %v1588_v54 = vsub.f32 %v1574_v44, %v3747_v13  ;;  %v1589_v56 = vsub.f32 %v1575_v3, %v3750_v46  ;;  %v2148_v31 = vld [vmem:[%s2446_s15 + $0x50] sm:$0xff]  ;;  %s4132_s8 = sld [smem:[#allocation3 + %s1815_s7]]  ;;  %s1839_s7 = sadd.s32 118, %s2451_s17 }
 0x140   : > { %v1587_v42 = vsel %vm3843_vm1, %v1569_v12, %v1585_v18  ;;  %v1592_v47 = vsub.f32 %v1580_v58, %v3757_v0  ;;  %v1593_v48 = vsub.f32 %v1581_v4, %v3759_v25  ;;  %v1598_v55 = vsub.f32 %v1586_v28, %v3769_v62  ;;  %v3953_v25 = vld [vmem:[%s2444_s14] sm:$0xff] }
 0x141   : > { %v1405_v59 = vmul.f32 %v2146_v36, %v3743_v37  ;;  %v1590_v13 = vmul.f32 %v1588_v54, %v1588_v54  ;;  %v1591_v46 = vmul.f32 %v1589_v56, %v1589_v56  ;;  %v1599_v27 = vsub.f32 %v1587_v42, %v3771_v26  ;;  %v3957_v37 = vld [vmem:[%s2444_s14 + $0x8] sm:$0xff]  ;;  %v3964_v26 = vld [vmem:[%s2444_s14 + $0x10] sm:$0xff] }
 0x142   : > { %v1594_v0 = vmul.f32 %v1592_v47, %v1592_v47  ;;  %v1595_v33 = vmul.f32 %v1593_v48, %v1593_v48  ;;  %v1642_v62 = vsub.f32 %v3953_v25, %v1641_v2  ;;  %v1643_v57 = vsub.f32 %v3957_v37, %v1641_v2 }
 0x143   : > { %v1600_v63 = vmul.f32 %v1598_v55, %v1598_v55  ;;  %v1645_v9 = vsub.f32 %v3964_v26, %v1644_v53  ;;  %v1646_v49 = vsub.f32 %v3968_v38, %v1644_v53  ;;  %v1647_v60 = vstv %s3888_s29  ;;  %v4012_v55 = vld [vmem:[%s2444_s14 + $0x30] sm:$0xff]  ;;  %s1617_s29 = sadd.s32 93, %s2451_s17 }
 0x144   : > { %v1406_v19 = vmul.f32 %v2147_v50, %v3745_v39  ;;  %v1596_v10 = vadd.f32 %v1594_v0, %v1590_v13  ;;  %v1601_v43 = vmul.f32 %v1599_v27, %v1599_v27  ;;  %v1648_v41 = vsub.f32 %v3976_v52, %v1647_v60  ;;  %v4019_v0 = vld [vmem:[%s2444_s14 + $0x38] sm:$0xff] }
 0x145   : > { %v1597_v17 = vadd.f32 %v1595_v33, %v1591_v46  ;;  %v1649_v8 = vsub.f32 %v3980_v22, %v1647_v60  ;;  %v1650_v51 = vstv %s3896_s26  ;;  %v1653_v14 = vstv %s3903_s0  ;;  %s4042_s26 = sld [smem:[#allocation3 + %s1617_s29]]  ;;  %s1829_s29 = sadd.s32 113, %s2451_s17 }
 0x146   : > { %v1651_v11 = vmul.f32 %v1650_v51, %v1642_v62  ;;  %v1652_v39 = vmul.f32 %v1650_v51, %v1643_v57  ;;  %v1658_v32 = vstv %s3905_s28  ;;  %v1663_v30 = vstv %s3925_s4  ;;  %s4051_s0 = sld [smem:[#allocation3 + %s1619_s5]] }
 0x147   : > { %v1602_v24 = vadd.f32 %v1600_v63, %v1596_v10  ;;  %v1654_v7 = vmul.f32 %v1653_v14, %v1645_v9  ;;  %v1655_v1 = vmul.f32 %v1653_v14, %v1646_v49  ;;  %v1659_v61 = vmul.f32 %v1658_v32, %v1648_v41  ;;  %v4027_v63 = vld [vmem:[%s2444_s14 + $0x48] sm:$0xff]  ;;  %s4056_s28 = sld [smem:[#allocation3 + %s1621_s6]]  ;;  %s1833_s6 = sadd.s32 115, %s2451_s17 }
 0x148   : > { %v3990_v35 = vadd.f32 %v1405_v59, %v3737_v6  ;;  %v3993_v34 = vadd.f32 %v1406_v19, %v3741_v40  ;;  %v1664_v12 = vmul.f32 %v1663_v30, %v1642_v62  ;;  %v1665_v16 = vmul.f32 %v1663_v30, %v1643_v57  ;;  %s4184_s5 = sld [smem:[#allocation3 + %s1827_s19]]  ;;  %s1819_s19 = sadd.s32 108, %s2451_s17 }
 0x149   : > { %v3996_v20 = vadd.f32 %v1601_v43, %v1597_v17  ;;  %v1656_v21 = vadd.f32 %v1654_v7, %v1651_v11  ;;  %v1660_v23 = vmul.f32 %v1658_v32, %v1649_v8  ;;  %v1666_v45 = vstv %s3947_s11  ;;  %v4038_v43 = vld [vmem:[%s2444_s14 + $0x58] sm:$0xff] }
 0x14a   : > { %v1657_v15 = vadd.f32 %v1655_v1, %v1652_v39  ;;  %v1667_v29 = vmul.f32 %v1666_v45, %v1645_v9  ;;  %v1668_v5 = vmul.f32 %v1666_v45, %v1646_v49  ;;  %v1671_v2 = vstv %s3950_s10  ;;  %s1817_s10 = sadd.s32 107, %s2451_s17 }
 0x14b   : > { %v4000_v6 = vmul.f32 %v2148_v31, %v1602_v24  ;;  %v4002_v40 = vadd.f32 %v1659_v61, %v1656_v21  ;;  %v1672_v53 = vmul.f32 %v1671_v2, %v1648_v41  ;;  %v1673_v36 = vmul.f32 %v1671_v2, %v1649_v8  ;;  %s1753_s4 = ssub.f32 0.0, %s4042_s26 }
 0x14c   : > { %v1669_v44 = vadd.f32 %v1667_v29, %v1664_v12  ;;  %v1670_v3 = vadd.f32 %v1668_v5, %v1665_v16  ;;  %v1676_v58 = vstv %s3960_s12  ;;  %v1679_v18 = vstv %s3973_s16  ;;  %v4063_v29 = vld [vmem:[%s2444_s14 + $0x60] sm:$0xff]  ;;  %s1760_s9 = ssub.f32 0.0, %s4051_s0  ;;  %s1825_s12 = sadd.s32 111, %s2451_s17 }
 0x14d   : > { %v1677_v4 = vmul.f32 %v1676_v58, %v1642_v62  ;;  %v1678_v28 = vmul.f32 %v1676_v58, %v1643_v57  ;;  %v1680_v54 = vmul.f32 %v1679_v18, %v1645_v9  ;;  %v1681_v56 = vmul.f32 %v1679_v18, %v1646_v49  ;;  %v4023_v62 = vld [vmem:[%s2444_s14 + $0x40] sm:$0xff]  ;;  %v4031_v49 = vld [vmem:[%s2444_s14 + $0x50] sm:$0xff]  ;;  %s1767_s11 = ssub.f32 0.0, %s4056_s28 }
 0x14e   : > { %v4006_v42 = vadd.f32 %v1660_v23, %v1657_v15  ;;  %v4008_v47 = vadd.f32 %v1672_v53, %v1669_v44  ;;  %v1684_v48 = vstv %s3985_s27  ;;  %v1689_v50 = vmul.f32 %v4012_v55, %v1650_v51  ;;  %s4169_s16 = sld [smem:[#allocation3 + %s1817_s10]] }
 0x14f   : > { %v4016_v59 = vadd.f32 %v1673_v36, %v1670_v3  ;;  %v1682_v13 = vadd.f32 %v1680_v54, %v1677_v4  ;;  %v1683_v46 = vadd.f32 %v1681_v56, %v1678_v28  ;;  %v1685_v27 = vmul.f32 %v1684_v48, %v1648_v41  ;;  %s4175_s27 = sld [smem:[#allocation3 + %s1825_s12]] }
 0x150   : > { %v1690_v33 = vmul.f32 %v4019_v0, %v1650_v51  ;;  %v1691_v57 = vmul.f32 %v4023_v62, %v1653_v14  ;;  %v1692_v9 = vmul.f32 %v4027_v63, %v1653_v14  ;;  %v1695_v60 = vmul.f32 %v4031_v49, %v1658_v32  ;;  %s4240_s10 = sld [smem:[#allocation3 + %s1839_s7]] }
 0x151   : > { %v1686_v19 = vmul.f32 %v1684_v48, %v1649_v8  ;;  %v4035_v10 = vadd.f32 %v1685_v27, %v1682_v13  ;;  %v1696_v41 = vmul.f32 %v4038_v43, %v1658_v32  ;;  %v1699_v17 = vmul.f32 %v4012_v55, %v1663_v30 }
 0x152   : > { %v1693_v51 = vadd.f32 %v1691_v57, %v1689_v50  ;;  %v1694_v11 = vadd.f32 %v1692_v9, %v1690_v33  ;;  %v1700_v14 = vmul.f32 %v4019_v0, %v1663_v30  ;;  %v1701_v39 = vmul.f32 %v4023_v62, %v1666_v45 }
 0x153   : > { %v1702_v24 = vmul.f32 %v4027_v63, %v1666_v45  ;;  %v1705_v8 = vmul.f32 %v4031_v49, %v1671_v2  ;;  %v1706_v7 = vmul.f32 %v4038_v43, %v1671_v2  ;;  %v1709_v32 = vmul.f32 %v4012_v55, %v1676_v58  ;;  %v4067_v2 = vld [vmem:[%s2444_s14 + $0x68] sm:$0xff]  ;;  %s1813_s14 = sadd.s32 105, %s2451_s17 }
 0x154   : > { %v1697_v1 = vadd.f32 %v1695_v60, %v1693_v51  ;;  %v4053_v61 = vadd.f32 %v1696_v41, %v1694_v11  ;;  %v1703_v31 = vadd.f32 %v1701_v39, %v1699_v17  ;;  %v1710_v30 = vmul.f32 %v4019_v0, %v1676_v58  ;;  %s4089_s25 = sld [smem:[#allocation3 + %s1813_s14]] }
 0x155   : > { %v1704_v12 = vadd.f32 %v1702_v24, %v1700_v14  ;;  %v1711_v16 = vmul.f32 %v4023_v62, %v1679_v18  ;;  %v1712_v21 = vmul.f32 %v4027_v63, %v1679_v18  ;;  %v1715_v23 = vmul.f32 %v4031_v49, %v1684_v48 }
 0x156   : > { %v1707_v45 = vadd.f32 %v1705_v8, %v1703_v31  ;;  %v1716_v15 = vmul.f32 %v4038_v43, %v1684_v48  ;;  %v1719_v5 = vmul.f32 %v4063_v29, %v1697_v1  ;;  %v1720_v53 = vmul.f32 %v4067_v2, %v4053_v61 }
 0x157   : > { %v4071_v36 = vadd.f32 %v1686_v19, %v1683_v46  ;;  %v1708_v44 = vadd.f32 %v1706_v7, %v1704_v12  ;;  %v1713_v3 = vadd.f32 %v1711_v16, %v1709_v32  ;;  %v1714_v58 = vadd.f32 %v1712_v21, %v1710_v30 }
 0x158   : > { %v4074_v18 = vadd.f32 %v1719_v5, %v4002_v40  ;;  %v1723_v4 = vmul.f32 %v4063_v29, %v1707_v45  ;;  %v1731_v28 = vand.u32 2147483647, %v1697_v1  ;;  %v1732_v54 = vand.u32 2147483647, %v4053_v61 }
 0x159   : > { %v1717_v56 = vadd.f32 %v1715_v23, %v1713_v3  ;;  %v4079_v48 = vadd.f32 %v1716_v15, %v1714_v58  ;;  %v1724_v50 = vmul.f32 %v4067_v2, %v1708_v44  ;;  %v1733_v13 = vand.u32 2147483647, %v1707_v45 }
 0x15a   : > { %v1722_v46 = vadd.f32 %v1720_v53, %v4006_v42  ;;  %v1725_v27 = vadd.f32 %v1723_v4, %v4008_v47  ;;  %v1734_v33 = vand.u32 2147483647, %v1708_v44  ;;  %vm1751_vm14 = vcmp.gt.f32.partialorder %v1697_v1, 0.0 }
 0x15b   : > { %v1727_v57 = vmul.f32 %v4063_v29, %v1717_v56  ;;  %v1728_v9 = vmul.f32 %v4067_v2, %v4079_v48  ;;  %v1735_v60 = vand.u32 2147483647, %v1717_v56  ;;  %vm1752_vm2 = vcmp.gt.f32.partialorder %v4053_v61, 0.0 }
 0x15c   : > { %v1726_v19 = vadd.f32 %v1724_v50, %v4016_v59  ;;  %v1736_v41 = vand.u32 2147483647, %v4079_v48  ;;  %vm4094_vm3 = vcmp.gt.f32.partialorder %v1733_v13, %v1731_v28  ;;  %vm4098_vm7 = vcmp.gt.f32.partialorder %v1734_v33, %v1732_v54 }
 0x15d   : > { %v1729_v11 = vadd.f32 %v1727_v57, %v4035_v10  ;;  %v1739_v14 = vsel %vm4094_vm3, %v1733_v13, %v1731_v28  ;;  %v1740_v39 = vsel %vm4098_vm7, %v1734_v33, %v1732_v54  ;;  %vm4111_vm1 = vmxor %vm4094_vm3, %vm2318_vm4  ;;  %v1754_v8 = vstv %s4042_s26  ;;  %s1831_s26 = sadd.s32 114, %s2451_s17 }
 0x15e   : > { %vm4117_vm5 = vcmp.gt.f32.partialorder %v1735_v60, %v1739_v14  ;;  %vm4121_vm15 = vcmp.gt.f32.partialorder %v1736_v41, %v1740_v39  ;;  %vm4128_vm12 = vmxor %vm4098_vm7, %vm2318_vm4  ;;  %v1755_v30 = vstv %s1753_s4  ;;  %vm1758_vm0 = vcmp.gt.f32.partialorder %v1707_v45, 0.0  ;;  %s4220_s14 = sld [smem:[#allocation3 + %s1831_s26]]  ;;  %s1837_s4 = sadd.s32 117, %s2451_s17 }
 0x15f   : > { %v1730_v12 = vadd.f32 %v1728_v9, %v4071_v36  ;;  %vm4138_vm8 = vmxor %vm4117_vm5, %vm2318_vm4  ;;  %v1756_v21 = vsel %vm1751_vm14, %v1754_v8, %v1755_v30  ;;  %vm1759_vm10 = vcmp.gt.f32.partialorder %v1708_v44, 0.0  ;;  %v1761_v23 = vstv %s4051_s0  ;;  %s4206_s0 = sld [smem:[#allocation3 + %s1829_s29]]  ;;  %s1823_s29 = sadd.s32 110, %s2451_s17 }
 0x160   : > { %vm4148_vm13 = vmxor %vm4121_vm15, %vm2318_vm4  ;;  %v1757_v5 = vsel %vm1752_vm2, %v1754_v8, %v1755_v30  ;;  %v1762_v53 = vstv %s1760_s9  ;;  %vm1765_vm11 = vcmp.gt.f32.partialorder %v1717_v56, 0.0  ;;  %v1768_v3 = vstv %s4056_s28  ;;  %s1835_s28 = sadd.s32 116, %s2451_s17 }
 0x161   : > { %vm1747_vm9 = vmand %vm4111_vm1, %vm4138_vm8  ;;  %v1763_v1 = vsel %vm1758_vm0, %v1761_v23, %v1762_v53  ;;  %vm1766_vm6 = vcmp.gt.f32.partialorder %v4079_v48, 0.0  ;;  %v1769_v58 = vstv %s1767_s11  ;;  %v1772_v4 = vmin.f32 %v4074_v18, %v1754_v8  ;;  %v2149_v48 = vld [vmem:[%s2446_s15 + $0x58] sm:$0xff]  ;;  %s4230_s9 = sld [smem:[#allocation3 + %s1835_s28]] }
 0x162   : > { %vm1748_vm14 = vmand %vm4128_vm12, %vm4148_vm13  ;;  %v1764_v61 = vsel %vm1759_vm10, %v1761_v23, %v1762_v53  ;;  %v1770_v28 = vsel %vm1765_vm11, %v1768_v3, %v1769_v58  ;;  %v1773_v54 = vmin.f32 %v1722_v46, %v1754_v8  ;;  %v1778_v45 = vmin.f32 %v1725_v27, %v1761_v23  ;;  %s4236_s11 = sld [smem:[#allocation3 + %s1837_s4]] }
 0x163   : > { %vm1749_vm2 = vmand %vm4094_vm3, %vm4138_vm8  ;;  %v1774_v18 = vmax.f32 %v1772_v4, %v1755_v30  ;;  %v1779_v56 = vmin.f32 %v1726_v19, %v1761_v23  ;;  %v1784_v50 = vmin.f32 %v1729_v11, %v1768_v3  ;;  %v1785_v13 = vmin.f32 %v1730_v12, %v1768_v3 }
 0x164   : > { %vm1750_vm0 = vmand %vm4098_vm7, %vm4148_vm13  ;;  %v1771_v44 = vsel %vm1766_vm6, %v1768_v3, %v1769_v58  ;;  %v1775_v46 = vmax.f32 %v1773_v54, %v1755_v30  ;;  %v1780_v27 = vmax.f32 %v1778_v45, %v1762_v53  ;;  %v1843_v33 = vstv %s4089_s25  ;;  %s4226_s25 = sld [smem:[#allocation3 + %s1833_s6]] }
 0x165   : > { %v1776_v57 = vsel %vm1747_vm9, %v1756_v21, %v1774_v18  ;;  %v1781_v9 = vmax.f32 %v1779_v56, %v1762_v53  ;;  %v1786_v60 = vmax.f32 %v1784_v50, %v1769_v58  ;;  %v1787_v19 = vmax.f32 %v1785_v13, %v1769_v58 }
 0x166   : > { %v1777_v41 = vsel %vm1748_vm14, %v1757_v5, %v1775_v46  ;;  %v1782_v11 = vsel %vm1749_vm2, %v1763_v1, %v1780_v27  ;;  %v1790_v14 = vsub.f32 %v1776_v57, %v4002_v40  ;;  %v1846_v39 = vstv %s4132_s8  ;;  %s1841_s8 = sadd.s32 119, %s2451_s17 }
 0x167   : > { %v1783_v24 = vsel %vm1750_vm0, %v1764_v61, %v1781_v9  ;;  %v1788_v17 = vsel %vm4117_vm5, %v1770_v28, %v1786_v60  ;;  %v1789_v8 = vsel %vm4121_vm15, %v1771_v44, %v1787_v19  ;;  %v1791_v31 = vsub.f32 %v1777_v41, %v4006_v42  ;;  %s4247_s12 = sld [smem:[#allocation3 + %s1841_s8]] }
 0x168   : > { %v1792_v40 = vmul.f32 %v1790_v14, %v1790_v14  ;;  %v1794_v30 = vsub.f32 %v1782_v11, %v4008_v47  ;;  %v1795_v51 = vsub.f32 %v1783_v24, %v4016_v59  ;;  %v1800_v12 = vsub.f32 %v1788_v17, %v4035_v10 }
 0x169   : > { %v1608_v7 = vmul.f32 %v2149_v48, %v3996_v20  ;;  %v1844_v42 = vsub.f32 %v3953_v25, %v1843_v33  ;;  %v1845_v32 = vsub.f32 %v3957_v37, %v1843_v33  ;;  %v1847_v47 = vsub.f32 %v3964_v26, %v1846_v39 }
 0x16a   : > { %v1793_v16 = vmul.f32 %v1791_v31, %v1791_v31  ;;  %v1796_v59 = vmul.f32 %v1794_v30, %v1794_v30  ;;  %v1801_v10 = vsub.f32 %v1789_v8, %v4071_v36  ;;  %v1848_v21 = vsub.f32 %v3968_v38, %v1846_v39 }
 0x16b   : > { %v1797_v20 = vmul.f32 %v1795_v51, %v1795_v51  ;;  %v1802_v23 = vmul.f32 %v1800_v12, %v1800_v12  ;;  %v1849_v25 = vstv %s4169_s16  ;;  %v1852_v37 = vstv %s4175_s27  ;;  %s1821_s16 = sadd.s32 109, %s2451_s17  ;;  %s4289_s27 = sld [smem:[#allocation3 + %s1819_s19]] }
 0x16c   : > { %v1798_v15 = vadd.f32 %v1796_v59, %v1792_v40  ;;  %v1850_v26 = vsub.f32 %v3976_v52, %v1849_v25  ;;  %v1851_v5 = vsub.f32 %v3980_v22, %v1849_v25  ;;  %v1855_v53 = vstv %s4184_s5  ;;  %s4295_s5 = sld [smem:[#allocation3 + %s1821_s16]] }
 0x16d   : > { %v1853_v36 = vmul.f32 %v1852_v37, %v1844_v42  ;;  %v1854_v3 = vmul.f32 %v1852_v37, %v1845_v32  ;;  %v1856_v38 = vmul.f32 %v1855_v53, %v1847_v47  ;;  %v1857_v1 = vmul.f32 %v1855_v53, %v1848_v21  ;;  %s4301_s17 = sld [smem:[#allocation3 + %s1823_s29]] }
 0x16e   : > { %v4251_v58 = vadd.f32 %v4000_v6, %v3990_v35  ;;  %v1860_v4 = vstv %s4206_s0  ;;  %v4255_v61 = vadd.f32 %v1608_v7, %v3993_v34  ;;  %v1865_v22 = vstv %s4220_s14 }
 0x16f   : > { %v1858_v52 = vadd.f32 %v1856_v38, %v1853_v36  ;;  %v1861_v28 = vmul.f32 %v1860_v4, %v1850_v26  ;;  %v4258_v54 = vadd.f32 %v1797_v20, %v1793_v16  ;;  %v4260_v45 = vmul.f32 %v1801_v10, %v1801_v10 }
 0x170   : > { %v1866_v18 = vmul.f32 %v1865_v22, %v1844_v42  ;;  %v1867_v56 = vmul.f32 %v1865_v22, %v1845_v32  ;;  %v4262_v50 = vadd.f32 %v1802_v23, %v1798_v15  ;;  %v1859_v35 = vadd.f32 %v1857_v1, %v1854_v3 }
 0x171   : > { %v1862_v6 = vmul.f32 %v1860_v4, %v1851_v5  ;;  %v1868_v13 = vstv %s4226_s25  ;;  %v4265_v44 = vadd.f32 %v1861_v28, %v1858_v52  ;;  %v1873_v27 = vstv %s4230_s9  ;;  %s1955_s26 = ssub.f32 0.0, %s4289_s27 }
 0x172   : > { %v1869_v34 = vmul.f32 %v1868_v13, %v1847_v47  ;;  %v1870_v46 = vmul.f32 %v1868_v13, %v1848_v21  ;;  %v1874_v33 = vmul.f32 %v1873_v27, %v1850_v26  ;;  %v1875_v57 = vmul.f32 %v1873_v27, %v1851_v5  ;;  %s1962_s6 = ssub.f32 0.0, %s4295_s5 }
 0x173   : > { %v1878_v9 = vstv %s4236_s11  ;;  %v1881_v60 = vstv %s4240_s10  ;;  %v1886_v24 = vstv %s4247_s12  ;;  %v1891_v17 = vmul.f32 %v4012_v55, %v1852_v37  ;;  %s1969_s0 = ssub.f32 0.0, %s4301_s17 }
 0x174   : > { %v1871_v19 = vadd.f32 %v1869_v34, %v1866_v18  ;;  %v1872_v48 = vadd.f32 %v1870_v46, %v1867_v56  ;;  %v1879_v41 = vmul.f32 %v1878_v9, %v1844_v42  ;;  %v1880_v11 = vmul.f32 %v1878_v9, %v1845_v32 }
 0x175   : > { %v1882_v14 = vmul.f32 %v1881_v60, %v1847_v47  ;;  %v1883_v39 = vmul.f32 %v1881_v60, %v1848_v21  ;;  %v4272_v8 = vadd.f32 %v1862_v6, %v1859_v35  ;;  %v1887_v30 = vmul.f32 %v1886_v24, %v1850_v26 }
 0x176   : > { %v4274_v31 = vadd.f32 %v1874_v33, %v1871_v19  ;;  %v4276_v40 = vadd.f32 %v1875_v57, %v1872_v48  ;;  %v1888_v12 = vmul.f32 %v1886_v24, %v1851_v5  ;;  %v1892_v7 = vmul.f32 %v4019_v0, %v1852_v37 }
 0x177   : > { %v1884_v51 = vadd.f32 %v1882_v14, %v1879_v41  ;;  %v1893_v42 = vmul.f32 %v4023_v62, %v1855_v53  ;;  %v1894_v32 = vmul.f32 %v4027_v63, %v1855_v53  ;;  %v1897_v47 = vmul.f32 %v4031_v49, %v1860_v4 }
 0x178   : > { %v1898_v16 = vmul.f32 %v4038_v43, %v1860_v4  ;;  %v1901_v59 = vmul.f32 %v4012_v55, %v1865_v22  ;;  %v1885_v10 = vadd.f32 %v1883_v39, %v1880_v11  ;;  %v1902_v23 = vmul.f32 %v4019_v0, %v1865_v22 }
 0x179   : > { %v4286_v21 = vadd.f32 %v1887_v30, %v1884_v51  ;;  %v1895_v20 = vadd.f32 %v1893_v42, %v1891_v17  ;;  %v1896_v25 = vadd.f32 %v1894_v32, %v1892_v7  ;;  %v1903_v37 = vmul.f32 %v4023_v62, %v1868_v13  ;;  %v2016_v32 = vld [vmem:[%s2442_s13] sm:$0xff] }
 0x17a   : > { %v1904_v15 = vmul.f32 %v4027_v63, %v1868_v13  ;;  %v1907_v26 = vmul.f32 %v4031_v49, %v1873_v27  ;;  %v1908_v53 = vmul.f32 %v4038_v43, %v1873_v27  ;;  %v1911_v36 = vmul.f32 %v4012_v55, %v1878_v9 }
 0x17b   : > { %v1899_v5 = vadd.f32 %v1897_v47, %v1895_v20  ;;  %v1912_v3 = vmul.f32 %v4019_v0, %v1878_v9  ;;  %v1900_v38 = vadd.f32 %v1898_v16, %v1896_v25  ;;  %v1905_v1 = vadd.f32 %v1903_v37, %v1901_v59 }
 0x17c   : > { %v1906_v4 = vadd.f32 %v1904_v15, %v1902_v23  ;;  %v1913_v52 = vmul.f32 %v4023_v62, %v1881_v60  ;;  %v1914_v28 = vmul.f32 %v4027_v63, %v1881_v60  ;;  %v1917_v22 = vmul.f32 %v4031_v49, %v1886_v24 }
 0x17d   : > { %v1918_v18 = vmul.f32 %v4038_v43, %v1886_v24  ;;  %v1921_v56 = vmul.f32 %v4063_v29, %v1899_v5  ;;  %v1909_v35 = vadd.f32 %v1907_v26, %v1905_v1  ;;  %v1922_v0 = vmul.f32 %v4067_v2, %v1900_v38 }
 0x17e   : > { %v1910_v6 = vadd.f32 %v1908_v53, %v1906_v4  ;;  %v1915_v55 = vadd.f32 %v1913_v52, %v1911_v36  ;;  %v4308_v13 = vadd.f32 %v1888_v12, %v1885_v10  ;;  %v1916_v34 = vadd.f32 %v1914_v28, %v1912_v3 }
 0x17f   : > { %v1933_v62 = vand.u32 2147483647, %v1899_v5  ;;  %v1934_v46 = vand.u32 2147483647, %v1900_v38  ;;  %v1923_v63 = vadd.f32 %v1921_v56, %v4265_v44  ;;  %v1925_v49 = vmul.f32 %v4063_v29, %v1909_v35 }
 0x180   : > { %v1919_v27 = vadd.f32 %v1917_v22, %v1915_v55  ;;  %v1926_v43 = vmul.f32 %v4067_v2, %v1910_v6  ;;  %v1920_v33 = vadd.f32 %v1918_v18, %v1916_v34  ;;  %v1924_v57 = vadd.f32 %v1922_v0, %v4272_v8  ;;  %v2150_v34 = vld [vmem:[%s2446_s15 + $0x60] sm:$0xff] }
 0x181   : > { %v1935_v9 = vand.u32 2147483647, %v1909_v35  ;;  %v1936_v60 = vand.u32 2147483647, %v1910_v6  ;;  %v1927_v19 = vadd.f32 %v1925_v49, %v4274_v31  ;;  %vm1953_vm3 = vcmp.gt.f32.partialorder %v1899_v5, 0.0 }
 0x182   : > { %v1929_v48 = vmul.f32 %v4063_v29, %v1919_v27  ;;  %v1937_v41 = vand.u32 2147483647, %v1919_v27  ;;  %v1930_v11 = vmul.f32 %v4067_v2, %v1920_v33  ;;  %v1938_v14 = vand.u32 2147483647, %v1920_v33 }
 0x183   : > { %vm4318_vm7 = vcmp.gt.f32.partialorder %v1935_v9, %v1933_v62  ;;  %vm4322_vm1 = vcmp.gt.f32.partialorder %v1936_v60, %v1934_v46  ;;  %v1928_v29 = vadd.f32 %v1926_v43, %v4276_v40  ;;  %vm1954_vm10 = vcmp.gt.f32.partialorder %v1900_v38, 0.0 }
 0x184   : > { %v1931_v17 = vadd.f32 %v1929_v48, %v4286_v21  ;;  %v1941_v30 = vsel %vm4318_vm7, %v1935_v9, %v1933_v62  ;;  %v1942_v2 = vsel %vm4322_vm1, %v1936_v60, %v1934_v46  ;;  %vm4336_vm5 = vmxor %vm4318_vm7, %vm2318_vm4  ;;  %v1932_v12 = vadd.f32 %v1930_v11, %v4308_v13 }
 0x185   : > { %vm4341_vm15 = vcmp.gt.f32.partialorder %v1937_v41, %v1941_v30  ;;  %vm4345_vm12 = vcmp.gt.f32.partialorder %v1938_v14, %v1942_v2  ;;  %vm4352_vm8 = vmxor %vm4322_vm1, %vm2318_vm4  ;;  %v1956_v16 = vstv %s4289_s27  ;;  %v1957_v59 = vstv %s1955_s26  ;;  %v2153_v2 = vld [vmem:[%s2446_s15 + $0x78] sm:$0xff] }
 0x186   : > { %vm4360_vm13 = vmxor %vm4341_vm15, %vm2318_vm4  ;;  %vm1960_vm11 = vcmp.gt.f32.partialorder %v1909_v35, 0.0  ;;  %v1963_v10 = vstv %s4295_s5  ;;  %v1958_v23 = vsel %vm1953_vm3, %v1956_v16, %v1957_v59  ;;  %vm1961_vm6 = vcmp.gt.f32.partialorder %v1910_v6, 0.0 }
 0x187   : > { %vm4369_vm9 = vmxor %vm4345_vm12, %vm2318_vm4  ;;  %v1964_v25 = vstv %s1962_s6  ;;  %vm1967_vm14 = vcmp.gt.f32.partialorder %v1919_v27, 0.0  ;;  %v1959_v37 = vsel %vm1954_vm10, %v1956_v16, %v1957_v59  ;;  %vm1968_vm0 = vcmp.gt.f32.partialorder %v1920_v33, 0.0  ;;  %v2151_v27 = vld [vmem:[%s2446_s15 + $0x68] sm:$0xff] }
 0x188   : > { %vm1949_vm2 = vmand %vm4336_vm5, %vm4360_vm13  ;;  %v1965_v15 = vsel %vm1960_vm11, %v1963_v10, %v1964_v25  ;;  %v1970_v26 = vstv %s4301_s17  ;;  %v1971_v53 = vstv %s1969_s0  ;;  %v1974_v5 = vmin.f32 %v1923_v63, %v1956_v16 }
 0x189   : > { %vm1950_vm4 = vmand %vm4352_vm8, %vm4369_vm9  ;;  %v1975_v36 = vmin.f32 %v1924_v57, %v1956_v16  ;;  %v1980_v3 = vmin.f32 %v1927_v19, %v1963_v10  ;;  %v1966_v38 = vsel %vm1961_vm6, %v1963_v10, %v1964_v25  ;;  %v1972_v1 = vsel %vm1967_vm14, %v1970_v26, %v1971_v53 }
 0x18a   : > { %vm1951_vm3 = vmand %vm4318_vm7, %vm4360_vm13  ;;  %v1981_v4 = vmin.f32 %v1928_v29, %v1963_v10  ;;  %v1986_v52 = vmin.f32 %v1931_v17, %v1970_v26  ;;  %v1976_v28 = vmax.f32 %v1974_v5, %v1957_v59  ;;  %v1987_v56 = vmin.f32 %v1932_v12, %v1970_v26 }
 0x18b   : > { %vm1952_vm10 = vmand %vm4322_vm1, %vm4369_vm9  ;;  %v1977_v22 = vmax.f32 %v1975_v36, %v1957_v59  ;;  %v1982_v18 = vmax.f32 %v1980_v3, %v1964_v25  ;;  %v1805_v35 = vadd.f32 %v4260_v45, %v4258_v54  ;;  %v1973_v6 = vsel %vm1968_vm0, %v1970_v26, %v1971_v53 }
 0x18c   : > { %v1983_v55 = vmax.f32 %v1981_v4, %v1964_v25  ;;  %v1988_v0 = vmax.f32 %v1986_v52, %v1971_v53  ;;  %v1978_v62 = vsel %vm1949_vm2, %v1958_v23, %v1976_v28  ;;  %v1989_v45 = vmax.f32 %v1987_v56, %v1971_v53 }
 0x18d   : > { %v1979_v46 = vsel %vm1950_vm4, %v1959_v37, %v1977_v22  ;;  %v1984_v54 = vsel %vm1951_vm3, %v1965_v15, %v1982_v18  ;;  %v1992_v43 = vsub.f32 %v1978_v62, %v4265_v44  ;;  %v1809_v48 = vmul.f32 %v2150_v34, %v4262_v50 }
 0x18e   : > { %v1985_v63 = vsel %vm1952_vm10, %v1966_v38, %v1983_v55  ;;  %v1990_v49 = vsel %vm4341_vm15, %v1972_v1, %v1988_v0  ;;  %v1993_v33 = vsub.f32 %v1979_v46, %v4272_v8  ;;  %v1991_v57 = vsel %vm4345_vm12, %v1973_v6, %v1989_v45 }
 0x18f   : > { %v1996_v9 = vsub.f32 %v1984_v54, %v4274_v31  ;;  %v1997_v60 = vsub.f32 %v1985_v63, %v4276_v40  ;;  %v2002_v19 = vsub.f32 %v1990_v49, %v4286_v21  ;;  %v1994_v41 = vmul.f32 %v1992_v43, %v1992_v43  ;;  %v2152_v31 = vld [vmem:[%s2446_s15 + $0x70] sm:$0xff] }
 0x190   : > { %v1995_v11 = vmul.f32 %v1993_v33, %v1993_v33  ;;  %v2003_v14 = vsub.f32 %v1991_v57, %v4308_v13  ;;  %v1810_v44 = vmul.f32 %v2151_v27, %v1805_v35  ;;  %v1811_v40 = vadd.f32 %v1809_v48, %v4251_v58 }
 0x191   : > { %v1998_v39 = vmul.f32 %v1996_v9, %v1996_v9  ;;  %v1999_v8 = vmul.f32 %v1997_v60, %v1997_v60  ;;  %v2004_v24 = vmul.f32 %v2002_v19, %v2002_v19 }
 0x192   : > { %v2005_v29 = vmul.f32 %v2003_v14, %v2003_v14  ;;  %v1812_v21 = vadd.f32 %v1810_v44, %v4255_v61 }
 0x193   : > { %v2000_v17 = vadd.f32 %v1998_v39, %v1994_v41  ;;  %v2001_v30 = vadd.f32 %v1999_v8, %v1995_v11 }
 0x195   : > { %v2006_v50 = vadd.f32 %v2004_v24, %v2000_v17  ;;  %v2007_v51 = vadd.f32 %v2005_v29, %v2001_v30 }
 0x197   : > { %v2011_v12 = vmul.f32 %v2152_v31, %v2006_v50  ;;  %v2012_v7 = vmul.f32 %v2153_v2, %v2007_v51 }
 0x199   : > { %v2013_v13 = vadd.f32 %v2011_v12, %v1811_v40  ;;  %v2014_v42 = vadd.f32 %v2012_v7, %v1812_v21 }
 0x19b   : > { %v2015_v47 = vadd.f32 %v2014_v42, %v2013_v13 }
 0x19d   : > { %v2017_v16 = vadd.f32 %v2016_v32, %v2015_v47 }
 0x19f   : > { %2018 = vst [vmem:[%s2442_s13] sm:$0xff] %v2017_v16 }
 0x1a0 PF: > { %s19_s22 = sadd.s32 1, %s2314_s22   ;;  %s4582_s17 = smov %s2294_s18 }
 0x1a1   : > { %p16_p3 = scmp.ge.s32.totalorder %s19_s22, 6   ;;  %s4583_s18 = smov %s2397_s30 }
 0x1a2   : > { %s4584_s19 = smov %s2306_s20  ;;  %s4585_s0 = smov %s2310_s21 }
 0x1a3   : > { %s4586_s20 = smov %s4589_s23  ;;  %s4587_s21 = smov %s4593_s24 }
 0x1a4   :  { %18 = sbr.rel (!%p16_p3) target bundleno = 19 (0x13), region = 164 }

</bundles_post_ra>
